<compile_context>
chip_gen: v7x
topology: tpu7x:2x2x1
jax: 0.10.0
libtpu: 0.0.40
codegen_flags: <defaults>
</compile_context>

<pallas_src>
import math
from functools import partial, lru_cache

import jax
import jax.numpy as jnp
from jax.experimental import pallas as pl
from jax.experimental.pallas import tpu as pltpu

CP = 128  # lane-dense padded channel width carried between convs


def _round_up(x, m):
    return ((x + m - 1) // m) * m


def _choose_tm(M):
    """>=2 parallel M blocks whenever possible (v7x has 2 TCs), cap at 512."""
    if M <= 16:
        return _round_up(max(M, 1), 8)
    return min(512, _round_up((M + 1) // 2, 16))


# ----------------------------------------------------------------------------
# Pallas kernel: single-shot matmul (full K) with fused bias + ReLU / PReLU and
# optional scaled-residual epilogue:  o = s0*skip + s1*act(A @ B + bias)
# ----------------------------------------------------------------------------
def _mm_kernel(*refs, act, residual):
    a_ref, b_ref, bias_ref = refs[0], refs[1], refs[2]
    k = 3
    alpha_ref = skip_ref = scale_ref = None
    if act == 'prelu':
        alpha_ref = refs[k]; k += 1
    if residual:
        skip_ref, scale_ref = refs[k], refs[k + 1]; k += 2
    o_ref = refs[k]

    y = jnp.dot(a_ref[...], b_ref[...], preferred_element_type=jnp.float32)
    y = y + bias_ref[...]
    if act == 'relu':
        y = jnp.maximum(y, 0.0)
    elif act == 'prelu':
        y = jnp.where(y >= 0.0, y, alpha_ref[...] * y)
    if residual:
        y = scale_ref[0] * skip_ref[...].astype(jnp.float32) + scale_ref[1] * y
    o_ref[...] = y.astype(o_ref.dtype)


@lru_cache(maxsize=None)
def _mm_call(Mp, K, Np, tm, tn, act, residual, out_dtype_name):
    grid = (Mp // tm, Np // tn)
    in_specs = [
        pl.BlockSpec((tm, K), lambda i, j: (i, 0)),   # A tile, full K
        pl.BlockSpec((K, tn), lambda i, j: (0, j)),   # B tile, full K
        pl.BlockSpec((1, tn), lambda i, j: (0, j)),   # bias row
    ]
    if act == 'prelu':
        in_specs.append(pl.BlockSpec((1, tn), lambda i, j: (0, j)))   # alpha row
    if residual:
        in_specs.append(pl.BlockSpec((tm, tn), lambda i, j: (i, j)))  # skip tile
        in_specs.append(pl.BlockSpec(memory_space=pltpu.MemorySpace.SMEM))  # (s0,s1)
    return pl.pallas_call(
        partial(_mm_kernel, act=act, residual=residual),
        out_shape=jax.ShapeDtypeStruct((Mp, Np), jnp.dtype(out_dtype_name)),
        grid_spec=pltpu.PrefetchScalarGridSpec(
            num_scalar_prefetch=0,
            grid=grid,
            in_specs=in_specs,
            out_specs=pl.BlockSpec((tm, tn), lambda i, j: (i, j))),
        compiler_params=pltpu.CompilerParams(
            dimension_semantics=("parallel", "parallel")),
    )


def fused_matmul(a, wp, act='none', skip=None, scales=None,
                 out_dtype=jnp.bfloat16):
    """o = [s0*skip + s1*] act(a @ W + b).  W is pre-packed (K, 128) bf16."""
    M, K = a.shape
    Kw, Np = wp['w'].shape
    assert K == Kw, (K, Kw)
    tm = _choose_tm(M)
    Mp = _round_up(M, tm)
    tn = 256 if (Np % 256 == 0) else 128

    a_p = a.astype(jnp.bfloat16)
    if Mp != M:
        a_p = jnp.pad(a_p, ((0, Mp - M), (0, 0)))
    args = [a_p, wp['w'], wp['b']]
    residual = skip is not None
    if act == 'prelu':
        args.append(wp['alpha'])
    if residual:
        s = skip if Mp == M else jnp.pad(skip, ((0, Mp - M), (0, 0)))
        args.append(s)
        args.append(jnp.stack([scales[0], scales[1]]).astype(jnp.float32))

    out = _mm_call(Mp, K, Np, tm, tn, act, residual,
                   jnp.dtype(out_dtype).name)(*args)
    return out if Mp == M else out[:M]


# ----------------------------------------------------------------------------
# Plain-JAX glue on lane-dense (M, 128) slabs (fused by the whole-forward jit)
# ----------------------------------------------------------------------------
def im2col_3x3(slab, B, H, W, C):
    """(B*H*W, CP) slab -> (B*H*W, 9*C); spatial pad + window shifts are done on
    the lane-dense 128-wide slab, only the tap gather slices the true C chans.
    Feature order (kh, kw, c) matches the packed weight rows."""
    x = slab.reshape(B, H, W, slab.shape[-1])
    xp = jnp.pad(x, ((0, 0), (1, 1), (1, 1), (0, 0)))
    cols = [xp[:, i:i + H, j:j + W, :C] for i in range(3) for j in range(3)]
    return jnp.concatenate(cols, axis=-1).reshape(B * H * W, 9 * C)


def ca_layer_slab(slab, p, B, HW, C):
    """CALayer on a lane-dense slab. Tiny pooled 1x1 convs stay in plain jnp."""
    Cp = slab.shape[-1]
    t = slab.reshape(B, HW, Cp)
    y = t.astype(jnp.float32).mean(axis=1)[:, :C]          # (B, C)
    y = jnp.maximum(y @ p['w1'] + p['b1'], 0.0)
    y = jax.nn.sigmoid(y @ p['w2'] + p['b2'])               # (B, C)
    y = jnp.pad(y, ((0, 0), (0, Cp - C)))
    return (t * y[:, None, :].astype(slab.dtype)).reshape(B * HW, Cp)


# ----------------------------------------------------------------------------
# Raw parameter initialization (deterministic, PyTorch-default-like)
# ----------------------------------------------------------------------------
class ParamGen:
    def __init__(self, seed=0):
        self.key = jax.random.PRNGKey(seed)

    def _next(self):
        self.key, k = jax.random.split(self.key)
        return k

    def conv(self, cin, cout, k, bias=True):
        bound = 1.0 / math.sqrt(cin * k * k)
        w = jax.random.uniform(self._next(), (cout, cin, k, k), jnp.float32,
                               -bound, bound)
        b = (jax.random.uniform(self._next(), (cout,), jnp.float32,
                                -bound, bound) if bias else None)
        return {'w': w, 'b': b}


def init_one_conv(pg, n, g):
    return {'conv': pg.conv(n, g, 3, bias=True),
            'prelu': jnp.full((g,), 0.25, jnp.float32),
            'conv1': pg.conv(g, n, 3, bias=True),
            's1': jnp.float32(1.0), 's2': jnp.float32(1.0)}


def init_ca(pg, c, r=16):
    l1 = pg.conv(c, c // r, 1, bias=True)
    l2 = pg.conv(c // r, c, 1, bias=True)
    return {'w1': l1['w'].reshape(c // r, c).T, 'b1': l1['b'],
            'w2': l2['w'].reshape(c, c // r).T, 'b2': l2['b']}


def init_one_module(pg, n):
    return {'layer1': init_one_conv(pg, n, n // 2),
            'layer2': init_one_conv(pg, n, n // 2),
            'layer4': {'conv': pg.conv(n, n, 3, bias=False)},      # BasicConv 3x3
            'alise': {'conv': pg.conv(2 * n, n, 1, bias=False)},   # BasicConv 1x1
            'atten': init_ca(pg, n),
            'w2': jnp.float32(1.0), 'w3': jnp.float32(1.0),
            'w4': jnp.float32(1.0), 'w5': jnp.float32(1.0)}


# ----------------------------------------------------------------------------
# Weight pre-packing (runs ONCE, outside the jit): (K, 128) bf16, padded bias
# ----------------------------------------------------------------------------
def _pack_conv3(pc, cin, alpha=None):
    O = pc['w'].shape[0]
    wm = pc['w'].transpose(2, 3, 1, 0).reshape(9 * cin, O)           # (9cin, O)
    wm = jnp.pad(wm, ((0, 0), (0, CP - O))).astype(jnp.bfloat16)
    b = pc['b'] if pc['b'] is not None else jnp.zeros((O,), jnp.float32)
    out = {'w': wm,
           'b': jnp.pad(b.astype(jnp.float32)[None, :], ((0, 0), (0, CP - O)))}
    if alpha is not None:
        out['alpha'] = jnp.pad(alpha.astype(jnp.float32)[None, :],
                               ((0, 0), (0, CP - O)))
    return out


def _pack_alise(pc, n, w2, w3):
    """1x1 conv over cat([w2*x2, w3*x1]); the w2/w3 scales are folded into the
    weight rows, laid out for two concatenated CP-wide lane-dense slabs."""
    O = pc['w'].shape[0]
    w2d = pc['w'].reshape(O, 2 * n).T                                  # (2n, O)
    wm = jnp.zeros((2 * CP, CP), jnp.float32)
    wm = wm.at[:n, :O].set(w2 * w2d[:n])
    wm = wm.at[CP:CP + n, :O].set(w3 * w2d[n:])
    return {'w': wm.astype(jnp.bfloat16), 'b': jnp.zeros((1, CP), jnp.float32)}


def prepare_params(raw, n):
    g = n // 2

    def pack_one_conv(pr):
        return {'conv': _pack_conv3(pr['conv'], n, alpha=pr['prelu']),
                'conv1': _pack_conv3(pr['conv1'], g),
                's1': pr['s1'], 's2': pr['s2']}

    return {'layer1': pack_one_conv(raw['layer1']),
            'layer2': pack_one_conv(raw['layer2']),
            'alise': _pack_alise(raw['alise']['conv'], n, raw['w2'], raw['w3']),
            'layer4': _pack_conv3(raw['layer4']['conv'], n),
            'atten': raw['atten'],
            'w4': raw['w4'], 'w5': raw['w5']}


# ----------------------------------------------------------------------------
# Forward (Pallas path, lane-dense slabs)
# ----------------------------------------------------------------------------
def _one_conv(slab, pk, B, H, W):
    cin = pk['conv']['w'].shape[0] // 9
    g = pk['conv1']['w'].shape[0] // 9
    # conv + PReLU fused; conv1 with the  s1*x + s2*(.)  residual fused in-kernel.
    t = fused_matmul(im2col_3x3(slab, B, H, W, cin), pk['conv'], act='prelu')
    return fused_matmul(im2col_3x3(t, B, H, W, g), pk['conv1'], act='none',
                        skip=slab, scales=(pk['s1'], pk['s2']))


def one_module_forward(x_nchw, pp):
    B, C, H, W = x_nchw.shape
    x0 = jnp.transpose(x_nchw, (0, 2, 3, 1)).reshape(B * H * W, C)
    x0 = jnp.pad(x0, ((0, 0), (0, CP - C)))            # f32 lane-dense skip slab
    x1 = _one_conv(x0, pp['layer1'], B, H, W)          # bf16 (M, 128)
    x2 = _one_conv(x1, pp['layer2'], B, H, W)
    # alise 1x1 + ReLU: w2/w3 already folded into the weight rows, so the concat
    # of the two lane-dense slabs feeds the MXU directly (no scale/slice passes).
    t = fused_matmul(jnp.concatenate([x2, x1], axis=-1), pp['alise'], act='relu')
    t = ca_layer_slab(t, pp['atten'], B, H * W, C)
    # layer4 3x3 + ReLU with the final  w4*x + w5*x4  residual fused in-kernel.
    out = fused_matmul(im2col_3x3(t, B, H, W, C), pp['layer4'], act='relu',
                       skip=x0, scales=(pp['w4'], pp['w5']),
                       out_dtype=jnp.float32)
    out = out[:, :C].reshape(B, H, W, C)
    return jnp.transpose(out, (0, 3, 1, 2))             # NHWC -> NCHW


# ----------------------------------------------------------------------------
# Pure-JAX f32 reference (lax.conv) for a sanity check of the Pallas path
# ----------------------------------------------------------------------------
def _ref_conv(x, pc, k):
    w = jnp.transpose(pc['w'], (2, 3, 1, 0))             # OIHW -> HWIO
    y = jax.lax.conv_general_dilated(
        x, w, (1, 1), 'SAME' if k == 3 else 'VALID',
        dimension_numbers=('NHWC', 'HWIO', 'NHWC'))
    if pc['b'] is not None:
        y = y + pc['b']
    return y


def ca_layer_f(x, p):
    y = x.mean(axis=(1, 2))                              # (B, C)
    y = jnp.maximum(y @ p['w1'] + p['b1'], 0.0)
    y = jax.nn.sigmoid(y @ p['w2'] + p['b2'])
    return x * y[:, None, None, :]


def reference_forward(x_nchw, p):
    x = jnp.transpose(x_nchw, (0, 2, 3, 1))

    def one_conv_ref(x, pc):
        t = _ref_conv(x, pc['conv'], 3)
        t = jnp.where(t >= 0, t, pc['prelu'] * t)
        t = _ref_conv(t, pc['conv1'], 3)
        return pc['s1'] * x + pc['s2'] * t

    x1 = one_conv_ref(x, p['layer1'])
    x2 = one_conv_ref(x1, p['layer2'])
    cat = jnp.concatenate([p['w2'] * x2, p['w3'] * x1], axis=-1)
    t = jnp.maximum(_ref_conv(cat, p['alise']['conv'], 1), 0.0)
    t = ca_layer_f(t, p['atten'])
    x4 = jnp.maximum(_ref_conv(t, p['layer4']['conv'], 3), 0.0)
    out = p['w4'] * x + p['w5'] * x4
    return jnp.transpose(out, (0, 3, 1, 2))


# ----------------------------------------------------------------------------
if __name__ == "__main__":
    n_feats = 32
    B, H, W = 2, 16, 16
    x = jax.random.normal(jax.random.PRNGKey(0), (B, n_feats, H, W), jnp.float32)

    raw = init_one_module(ParamGen(seed=0), n_feats)
    packed = prepare_params(raw, n_feats)        # weight packing once, outside jit

    fwd = jax.jit(one_module_forward)
    y = jax.block_until_ready(fwd(x, packed))

    assert y.shape == x.shape, y.shape
    assert bool(jnp.all(jnp.isfinite(y)))

    # Sanity check vs the plain-JAX f32 reference (the Pallas path uses bf16 MXU
    # inputs and bf16 intermediate stores, so allow a loose tolerance).
    y_ref = jax.block_until_ready(jax.jit(reference_forward)(x, raw))
    max_err = float(jnp.max(jnp.abs(y - y_ref)))
    assert max_err < 0.35, f"max abs err vs reference: {max_err}"

    print("KERNEL_OK")
</pallas_src>

<mosaic_0001>
module attributes {stable_mosaic.version = 11 : i64} {
  func.func @_mm_kernel(%arg0: i32, %arg1: i32, %arg2: memref<256x288xbf16, #tpu.memory_space<vmem>>, %arg3: memref<288x128xbf16, #tpu.memory_space<vmem>>, %arg4: memref<1x128xf32, #tpu.memory_space<vmem>>, %arg5: memref<1x128xf32, #tpu.memory_space<vmem>>, %arg6: memref<256x128xbf16, #tpu.memory_space<vmem>>) attributes {dimension_semantics = [#tpu.dimension_semantics<parallel>, #tpu.dimension_semantics<parallel>], iteration_bounds = array<i64: 2, 1>, scalar_prefetch = 0 : i64, scratch_operands = 0 : i64, tpu.core_type = #tpu.core_type<tc>, window_params = [{transform_indices = @transform_0, window_bounds = array<i64: 256, 288>}, {transform_indices = @transform_1, window_bounds = array<i64: 288, 128>}, {transform_indices = @transform_2, window_bounds = array<i64: 1, 128>}, {transform_indices = @transform_3, window_bounds = array<i64: 1, 128>}, {transform_indices = @transform_4, window_bounds = array<i64: 256, 128>}]} {
    %c0 = arith.constant 0 : index
    %c0_0 = arith.constant 0 : index
    %0 = vector.load %arg2[%c0, %c0_0] : memref<256x288xbf16, #tpu.memory_space<vmem>>, vector<256x288xbf16>
    %c0_1 = arith.constant 0 : index
    %c0_2 = arith.constant 0 : index
    %1 = vector.load %arg3[%c0_1, %c0_2] : memref<288x128xbf16, #tpu.memory_space<vmem>>, vector<288x128xbf16>
    %cst = arith.constant dense<0.000000e+00> : vector<256x128xf32>
    %2 = tpu.matmul %0, %1, %cst {dimension_numbers = #tpu.dot_dimension_numbers<[1], [0], [0], [1], [0, 0, 1, 1], [], []>} : vector<256x288xbf16>, vector<288x128xbf16>, vector<256x128xf32> -> vector<256x128xf32>
    %c0_3 = arith.constant 0 : index
    %c0_4 = arith.constant 0 : index
    %3 = vector.load %arg4[%c0_3, %c0_4] : memref<1x128xf32, #tpu.memory_space<vmem>>, vector<1x128xf32>
    %4 = vector.broadcast %3 : vector<1x128xf32> to vector<256x128xf32>
    %5 = arith.addf %2, %4 : vector<256x128xf32>
    %cst_5 = arith.constant 0.000000e+00 : f32
    %6 = vector.broadcast %cst_5 : f32 to vector<256x128xf32>
    %7 = arith.cmpf oge, %5, %6 : vector<256x128xf32>
    %c0_6 = arith.constant 0 : index
    %c0_7 = arith.constant 0 : index
    %8 = vector.load %arg5[%c0_6, %c0_7] : memref<1x128xf32, #tpu.memory_space<vmem>>, vector<1x128xf32>
    %9 = vector.broadcast %8 : vector<1x128xf32> to vector<256x128xf32>
    %10 = arith.mulf %9, %5 : vector<256x128xf32>
    %11 = arith.select %7, %5, %10 : vector<256x128xi1>, vector<256x128xf32>
    %12 = arith.truncf %11 : vector<256x128xf32> to vector<256x128xbf16>
    %c0_8 = arith.constant 0 : index
    %c0_9 = arith.constant 0 : index
    %13 = vector.load %arg6[%c0_8, %c0_9] : memref<256x128xbf16, #tpu.memory_space<vmem>>, vector<256x128xbf16>
    tpu.vector_store %arg6[%c0_8, %c0_9], %12 {strides = array<i32>} : memref<256x128xbf16, #tpu.memory_space<vmem>>, vector<256x128xbf16>,
    return
  }
  func.func @transform_0(%arg0: i32, %arg1: i32) -> (i32, i32) {
    %c0_i32 = arith.constant 0 : i32
    %c0_i32_0 = arith.constant 0 : i32
    return %arg0, %c0_i32 : i32, i32
  }
  func.func @transform_1(%arg0: i32, %arg1: i32) -> (i32, i32) {
    %c0_i32 = arith.constant 0 : i32
    %c0_i32_0 = arith.constant 0 : i32
    return %c0_i32, %arg1 : i32, i32
  }
  func.func @transform_2(%arg0: i32, %arg1: i32) -> (i32, i32) {
    %c0_i32 = arith.constant 0 : i32
    %c0_i32_0 = arith.constant 0 : i32
    return %c0_i32, %arg1 : i32, i32
  }
  func.func @transform_3(%arg0: i32, %arg1: i32) -> (i32, i32) {
    %c0_i32 = arith.constant 0 : i32
    %c0_i32_0 = arith.constant 0 : i32
    return %c0_i32, %arg1 : i32, i32
  }
  func.func @transform_4(%arg0: i32, %arg1: i32) -> (i32, i32) {
    %c0_i32 = arith.constant 0 : i32
    return %arg0, %arg1 : i32, i32
  }
}

module attributes {stable_mosaic.version = 11 : i64} {
  func.func @_mm_kernel(%arg0: i32, %arg1: i32, %arg2: memref<256x144xbf16, #tpu.memory_space<vmem>>, %arg3: memref<144x128xbf16, #tpu.memory_space<vmem>>, %arg4: memref<1x128xf32, #tpu.memory_space<vmem>>, %arg5: memref<256x128xf32, #tpu.memory_space<vmem>>, %arg6: memref<2xf32, #tpu.memory_space<smem>>, %arg7: memref<256x128xbf16, #tpu.memory_space<vmem>>) attributes {dimension_semantics = [#tpu.dimension_semantics<parallel>, #tpu.dimension_semantics<parallel>], iteration_bounds = array<i64: 2, 1>, scalar_prefetch = 0 : i64, scratch_operands = 0 : i64, tpu.core_type = #tpu.core_type<tc>, window_params = [{transform_indices = @transform_0, window_bounds = array<i64: 256, 144>}, {transform_indices = @transform_1, window_bounds = array<i64: 144, 128>}, {transform_indices = @transform_2, window_bounds = array<i64: 1, 128>}, {transform_indices = @transform_3, window_bounds = array<i64: 256, 128>}, {transform_indices = @transform_4, window_bounds = array<i64: 2>}, {transform_indices = @transform_5, window_bounds = array<i64: 256, 128>}]} {
    %c0 = arith.constant 0 : index
    %c0_0 = arith.constant 0 : index
    %0 = vector.load %arg2[%c0, %c0_0] : memref<256x144xbf16, #tpu.memory_space<vmem>>, vector<256x144xbf16>
    %c0_1 = arith.constant 0 : index
    %c0_2 = arith.constant 0 : index
    %1 = vector.load %arg3[%c0_1, %c0_2] : memref<144x128xbf16, #tpu.memory_space<vmem>>, vector<144x128xbf16>
    %cst = arith.constant dense<0.000000e+00> : vector<256x128xf32>
    %2 = tpu.matmul %0, %1, %cst {dimension_numbers = #tpu.dot_dimension_numbers<[1], [0], [0], [1], [0, 0, 1, 1], [], []>} : vector<256x144xbf16>, vector<144x128xbf16>, vector<256x128xf32> -> vector<256x128xf32>
    %c0_3 = arith.constant 0 : index
    %c0_4 = arith.constant 0 : index
    %3 = vector.load %arg4[%c0_3, %c0_4] : memref<1x128xf32, #tpu.memory_space<vmem>>, vector<1x128xf32>
    %4 = vector.broadcast %3 : vector<1x128xf32> to vector<256x128xf32>
    %5 = arith.addf %2, %4 : vector<256x128xf32>
    %c0_5 = arith.constant 0 : index
    %6 = memref.load %arg6[%c0_5] : memref<2xf32, #tpu.memory_space<smem>>
    %c0_6 = arith.constant 0 : index
    %c0_7 = arith.constant 0 : index
    %7 = vector.load %arg5[%c0_6, %c0_7] : memref<256x128xf32, #tpu.memory_space<vmem>>, vector<256x128xf32>
    %8 = vector.broadcast %6 : f32 to vector<256x128xf32>
    %9 = arith.mulf %8, %7 : vector<256x128xf32>
    %c1 = arith.constant 1 : index
    %10 = memref.load %arg6[%c1] : memref<2xf32, #tpu.memory_space<smem>>
    %11 = vector.broadcast %10 : f32 to vector<256x128xf32>
    %12 = arith.mulf %11, %5 : vector<256x128xf32>
    %13 = arith.addf %9, %12 : vector<256x128xf32>
    %14 = arith.truncf %13 : vector<256x128xf32> to vector<256x128xbf16>
    %c0_8 = arith.constant 0 : index
    %c0_9 = arith.constant 0 : index
    %15 = vector.load %arg7[%c0_8, %c0_9] : memref<256x128xbf16, #tpu.memory_space<vmem>>, vector<256x128xbf16>
    tpu.vector_store %arg7[%c0_8, %c0_9], %14 {strides = array<i32>} : memref<256x128xbf16, #tpu.memory_space<vmem>>, vector<256x128xbf16>,
    return
  }
  func.func @transform_0(%arg0: i32, %arg1: i32) -> (i32, i32) {
    %c0_i32 = arith.constant 0 : i32
    %c0_i32_0 = arith.constant 0 : i32
    return %arg0, %c0_i32 : i32, i32
  }
  func.func @transform_1(%arg0: i32, %arg1: i32) -> (i32, i32) {
    %c0_i32 = arith.constant 0 : i32
    %c0_i32_0 = arith.constant 0 : i32
    return %c0_i32, %arg1 : i32, i32
  }
  func.func @transform_2(%arg0: i32, %arg1: i32) -> (i32, i32) {
    %c0_i32 = arith.constant 0 : i32
    %c0_i32_0 = arith.constant 0 : i32
    return %c0_i32, %arg1 : i32, i32
  }
  func.func @transform_3(%arg0: i32, %arg1: i32) -> (i32, i32) {
    %c0_i32 = arith.constant 0 : i32
    return %arg0, %arg1 : i32, i32
  }
  func.func @transform_4(%arg0: i32, %arg1: i32) -> i32 {
    %c0_i32 = arith.constant 0 : i32
    %c0_i32_0 = arith.constant 0 : i32
    return %c0_i32 : i32
  }
  func.func @transform_5(%arg0: i32, %arg1: i32) -> (i32, i32) {
    %c0_i32 = arith.constant 0 : i32
    return %arg0, %arg1 : i32, i32
  }
}

module attributes {stable_mosaic.version = 11 : i64} {
  func.func @_mm_kernel(%arg0: i32, %arg1: i32, %arg2: memref<256x144xbf16, #tpu.memory_space<vmem>>, %arg3: memref<144x128xbf16, #tpu.memory_space<vmem>>, %arg4: memref<1x128xf32, #tpu.memory_space<vmem>>, %arg5: memref<256x128xbf16, #tpu.memory_space<vmem>>, %arg6: memref<2xf32, #tpu.memory_space<smem>>, %arg7: memref<256x128xbf16, #tpu.memory_space<vmem>>) attributes {dimension_semantics = [#tpu.dimension_semantics<parallel>, #tpu.dimension_semantics<parallel>], iteration_bounds = array<i64: 2, 1>, scalar_prefetch = 0 : i64, scratch_operands = 0 : i64, tpu.core_type = #tpu.core_type<tc>, window_params = [{transform_indices = @transform_0, window_bounds = array<i64: 256, 144>}, {transform_indices = @transform_1, window_bounds = array<i64: 144, 128>}, {transform_indices = @transform_2, window_bounds = array<i64: 1, 128>}, {transform_indices = @transform_3, window_bounds = array<i64: 256, 128>}, {transform_indices = @transform_4, window_bounds = array<i64: 2>}, {transform_indices = @transform_5, window_bounds = array<i64: 256, 128>}]} {
    %c0 = arith.constant 0 : index
    %c0_0 = arith.constant 0 : index
    %0 = vector.load %arg2[%c0, %c0_0] : memref<256x144xbf16, #tpu.memory_space<vmem>>, vector<256x144xbf16>
    %c0_1 = arith.constant 0 : index
    %c0_2 = arith.constant 0 : index
    %1 = vector.load %arg3[%c0_1, %c0_2] : memref<144x128xbf16, #tpu.memory_space<vmem>>, vector<144x128xbf16>
    %cst = arith.constant dense<0.000000e+00> : vector<256x128xf32>
    %2 = tpu.matmul %0, %1, %cst {dimension_numbers = #tpu.dot_dimension_numbers<[1], [0], [0], [1], [0, 0, 1, 1], [], []>} : vector<256x144xbf16>, vector<144x128xbf16>, vector<256x128xf32> -> vector<256x128xf32>
    %c0_3 = arith.constant 0 : index
    %c0_4 = arith.constant 0 : index
    %3 = vector.load %arg4[%c0_3, %c0_4] : memref<1x128xf32, #tpu.memory_space<vmem>>, vector<1x128xf32>
    %4 = vector.broadcast %3 : vector<1x128xf32> to vector<256x128xf32>
    %5 = arith.addf %2, %4 : vector<256x128xf32>
    %c0_5 = arith.constant 0 : index
    %6 = memref.load %arg6[%c0_5] : memref<2xf32, #tpu.memory_space<smem>>
    %c0_6 = arith.constant 0 : index
    %c0_7 = arith.constant 0 : index
    %7 = vector.load %arg5[%c0_6, %c0_7] : memref<256x128xbf16, #tpu.memory_space<vmem>>, vector<256x128xbf16>
    %8 = arith.extf %7 : vector<256x128xbf16> to vector<256x128xf32>
    %9 = vector.broadcast %6 : f32 to vector<256x128xf32>
    %10 = arith.mulf %9, %8 : vector<256x128xf32>
    %c1 = arith.constant 1 : index
    %11 = memref.load %arg6[%c1] : memref<2xf32, #tpu.memory_space<smem>>
    %12 = vector.broadcast %11 : f32 to vector<256x128xf32>
    %13 = arith.mulf %12, %5 : vector<256x128xf32>
    %14 = arith.addf %10, %13 : vector<256x128xf32>
    %15 = arith.truncf %14 : vector<256x128xf32> to vector<256x128xbf16>
    %c0_8 = arith.constant 0 : index
    %c0_9 = arith.constant 0 : index
    %16 = vector.load %arg7[%c0_8, %c0_9] : memref<256x128xbf16, #tpu.memory_space<vmem>>, vector<256x128xbf16>
    tpu.vector_store %arg7[%c0_8, %c0_9], %15 {strides = array<i32>} : memref<256x128xbf16, #tpu.memory_space<vmem>>, vector<256x128xbf16>,
    return
  }
  func.func @transform_0(%arg0: i32, %arg1: i32) -> (i32, i32) {
    %c0_i32 = arith.constant 0 : i32
    %c0_i32_0 = arith.constant 0 : i32
    return %arg0, %c0_i32 : i32, i32
  }
  func.func @transform_1(%arg0: i32, %arg1: i32) -> (i32, i32) {
    %c0_i32 = arith.constant 0 : i32
    %c0_i32_0 = arith.constant 0 : i32
    return %c0_i32, %arg1 : i32, i32
  }
  func.func @transform_2(%arg0: i32, %arg1: i32) -> (i32, i32) {
    %c0_i32 = arith.constant 0 : i32
    %c0_i32_0 = arith.constant 0 : i32
    return %c0_i32, %arg1 : i32, i32
  }
  func.func @transform_3(%arg0: i32, %arg1: i32) -> (i32, i32) {
    %c0_i32 = arith.constant 0 : i32
    return %arg0, %arg1 : i32, i32
  }
  func.func @transform_4(%arg0: i32, %arg1: i32) -> i32 {
    %c0_i32 = arith.constant 0 : i32
    %c0_i32_0 = arith.constant 0 : i32
    return %c0_i32 : i32
  }
  func.func @transform_5(%arg0: i32, %arg1: i32) -> (i32, i32) {
    %c0_i32 = arith.constant 0 : i32
    return %arg0, %arg1 : i32, i32
  }
}

module attributes {stable_mosaic.version = 11 : i64} {
  func.func @_mm_kernel(%arg0: i32, %arg1: i32, %arg2: memref<256x256xbf16, #tpu.memory_space<vmem>>, %arg3: memref<256x128xbf16, #tpu.memory_space<vmem>>, %arg4: memref<1x128xf32, #tpu.memory_space<vmem>>, %arg5: memref<256x128xbf16, #tpu.memory_space<vmem>>) attributes {dimension_semantics = [#tpu.dimension_semantics<parallel>, #tpu.dimension_semantics<parallel>], iteration_bounds = array<i64: 2, 1>, scalar_prefetch = 0 : i64, scratch_operands = 0 : i64, tpu.core_type = #tpu.core_type<tc>, window_params = [{transform_indices = @transform_0, window_bounds = array<i64: 256, 256>}, {transform_indices = @transform_1, window_bounds = array<i64: 256, 128>}, {transform_indices = @transform_2, window_bounds = array<i64: 1, 128>}, {transform_indices = @transform_3, window_bounds = array<i64: 256, 128>}]} {
    %c0 = arith.constant 0 : index
    %c0_0 = arith.constant 0 : index
    %0 = vector.load %arg2[%c0, %c0_0] : memref<256x256xbf16, #tpu.memory_space<vmem>>, vector<256x256xbf16>
    %c0_1 = arith.constant 0 : index
    %c0_2 = arith.constant 0 : index
    %1 = vector.load %arg3[%c0_1, %c0_2] : memref<256x128xbf16, #tpu.memory_space<vmem>>, vector<256x128xbf16>
    %cst = arith.constant dense<0.000000e+00> : vector<256x128xf32>
    %2 = tpu.matmul %0, %1, %cst {dimension_numbers = #tpu.dot_dimension_numbers<[1], [0], [0], [1], [0, 0, 1, 1], [], []>} : vector<256x256xbf16>, vector<256x128xbf16>, vector<256x128xf32> -> vector<256x128xf32>
    %c0_3 = arith.constant 0 : index
    %c0_4 = arith.constant 0 : index
    %3 = vector.load %arg4[%c0_3, %c0_4] : memref<1x128xf32, #tpu.memory_space<vmem>>, vector<1x128xf32>
    %4 = vector.broadcast %3 : vector<1x128xf32> to vector<256x128xf32>
    %5 = arith.addf %2, %4 : vector<256x128xf32>
    %cst_5 = arith.constant 0.000000e+00 : f32
    %6 = vector.broadcast %cst_5 : f32 to vector<256x128xf32>
    %7 = arith.maximumf %5, %6 : vector<256x128xf32>
    %8 = arith.truncf %7 : vector<256x128xf32> to vector<256x128xbf16>
    %c0_6 = arith.constant 0 : index
    %c0_7 = arith.constant 0 : index
    %9 = vector.load %arg5[%c0_6, %c0_7] : memref<256x128xbf16, #tpu.memory_space<vmem>>, vector<256x128xbf16>
    tpu.vector_store %arg5[%c0_6, %c0_7], %8 {strides = array<i32>} : memref<256x128xbf16, #tpu.memory_space<vmem>>, vector<256x128xbf16>,
    return
  }
  func.func @transform_0(%arg0: i32, %arg1: i32) -> (i32, i32) {
    %c0_i32 = arith.constant 0 : i32
    %c0_i32_0 = arith.constant 0 : i32
    return %arg0, %c0_i32 : i32, i32
  }
  func.func @transform_1(%arg0: i32, %arg1: i32) -> (i32, i32) {
    %c0_i32 = arith.constant 0 : i32
    %c0_i32_0 = arith.constant 0 : i32
    return %c0_i32, %arg1 : i32, i32
  }
  func.func @transform_2(%arg0: i32, %arg1: i32) -> (i32, i32) {
    %c0_i32 = arith.constant 0 : i32
    %c0_i32_0 = arith.constant 0 : i32
    return %c0_i32, %arg1 : i32, i32
  }
  func.func @transform_3(%arg0: i32, %arg1: i32) -> (i32, i32) {
    %c0_i32 = arith.constant 0 : i32
    return %arg0, %arg1 : i32, i32
  }
}

module attributes {stable_mosaic.version = 11 : i64} {
  func.func @_mm_kernel(%arg0: i32, %arg1: i32, %arg2: memref<256x288xbf16, #tpu.memory_space<vmem>>, %arg3: memref<288x128xbf16, #tpu.memory_space<vmem>>, %arg4: memref<1x128xf32, #tpu.memory_space<vmem>>, %arg5: memref<256x128xf32, #tpu.memory_space<vmem>>, %arg6: memref<2xf32, #tpu.memory_space<smem>>, %arg7: memref<256x128xf32, #tpu.memory_space<vmem>>) attributes {dimension_semantics = [#tpu.dimension_semantics<parallel>, #tpu.dimension_semantics<parallel>], iteration_bounds = array<i64: 2, 1>, scalar_prefetch = 0 : i64, scratch_operands = 0 : i64, tpu.core_type = #tpu.core_type<tc>, window_params = [{transform_indices = @transform_0, window_bounds = array<i64: 256, 288>}, {transform_indices = @transform_1, window_bounds = array<i64: 288, 128>}, {transform_indices = @transform_2, window_bounds = array<i64: 1, 128>}, {transform_indices = @transform_3, window_bounds = array<i64: 256, 128>}, {transform_indices = @transform_4, window_bounds = array<i64: 2>}, {transform_indices = @transform_5, window_bounds = array<i64: 256, 128>}]} {
    %c0 = arith.constant 0 : index
    %c0_0 = arith.constant 0 : index
    %0 = vector.load %arg2[%c0, %c0_0] : memref<256x288xbf16, #tpu.memory_space<vmem>>, vector<256x288xbf16>
    %c0_1 = arith.constant 0 : index
    %c0_2 = arith.constant 0 : index
    %1 = vector.load %arg3[%c0_1, %c0_2] : memref<288x128xbf16, #tpu.memory_space<vmem>>, vector<288x128xbf16>
    %cst = arith.constant dense<0.000000e+00> : vector<256x128xf32>
    %2 = tpu.matmul %0, %1, %cst {dimension_numbers = #tpu.dot_dimension_numbers<[1], [0], [0], [1], [0, 0, 1, 1], [], []>} : vector<256x288xbf16>, vector<288x128xbf16>, vector<256x128xf32> -> vector<256x128xf32>
    %c0_3 = arith.constant 0 : index
    %c0_4 = arith.constant 0 : index
    %3 = vector.load %arg4[%c0_3, %c0_4] : memref<1x128xf32, #tpu.memory_space<vmem>>, vector<1x128xf32>
    %4 = vector.broadcast %3 : vector<1x128xf32> to vector<256x128xf32>
    %5 = arith.addf %2, %4 : vector<256x128xf32>
    %cst_5 = arith.constant 0.000000e+00 : f32
    %6 = vector.broadcast %cst_5 : f32 to vector<256x128xf32>
    %7 = arith.maximumf %5, %6 : vector<256x128xf32>
    %c0_6 = arith.constant 0 : index
    %8 = memref.load %arg6[%c0_6] : memref<2xf32, #tpu.memory_space<smem>>
    %c0_7 = arith.constant 0 : index
    %c0_8 = arith.constant 0 : index
    %9 = vector.load %arg5[%c0_7, %c0_8] : memref<256x128xf32, #tpu.memory_space<vmem>>, vector<256x128xf32>
    %10 = vector.broadcast %8 : f32 to vector<256x128xf32>
    %11 = arith.mulf %10, %9 : vector<256x128xf32>
    %c1 = arith.constant 1 : index
    %12 = memref.load %arg6[%c1] : memref<2xf32, #tpu.memory_space<smem>>
    %13 = vector.broadcast %12 : f32 to vector<256x128xf32>
    %14 = arith.mulf %13, %7 : vector<256x128xf32>
    %15 = arith.addf %11, %14 : vector<256x128xf32>
    %c0_9 = arith.constant 0 : index
    %c0_10 = arith.constant 0 : index
    %16 = vector.load %arg7[%c0_9, %c0_10] : memref<256x128xf32, #tpu.memory_space<vmem>>, vector<256x128xf32>
    tpu.vector_store %arg7[%c0_9, %c0_10], %15 {strides = array<i32>} : memref<256x128xf32, #tpu.memory_space<vmem>>, vector<256x128xf32>,
    return
  }
  func.func @transform_0(%arg0: i32, %arg1: i32) -> (i32, i32) {
    %c0_i32 = arith.constant 0 : i32
    %c0_i32_0 = arith.constant 0 : i32
    return %arg0, %c0_i32 : i32, i32
  }
  func.func @transform_1(%arg0: i32, %arg1: i32) -> (i32, i32) {
    %c0_i32 = arith.constant 0 : i32
    %c0_i32_0 = arith.constant 0 : i32
    return %c0_i32, %arg1 : i32, i32
  }
  func.func @transform_2(%arg0: i32, %arg1: i32) -> (i32, i32) {
    %c0_i32 = arith.constant 0 : i32
    %c0_i32_0 = arith.constant 0 : i32
    return %c0_i32, %arg1 : i32, i32
  }
  func.func @transform_3(%arg0: i32, %arg1: i32) -> (i32, i32) {
    %c0_i32 = arith.constant 0 : i32
    return %arg0, %arg1 : i32, i32
  }
  func.func @transform_4(%arg0: i32, %arg1: i32) -> i32 {
    %c0_i32 = arith.constant 0 : i32
    %c0_i32_0 = arith.constant 0 : i32
    return %c0_i32 : i32
  }
  func.func @transform_5(%arg0: i32, %arg1: i32) -> (i32, i32) {
    %c0_i32 = arith.constant 0 : i32
    return %arg0, %arg1 : i32, i32
  }
}

</mosaic_0001>

<bundles_post_ra>
// kernel: one_module_forward.6
= control target key start
LH: loop header
LB: loop body
LE: loop exit
PB: predicated region body
PF: predicated region fallthrough
CT: control target
= control target key end

     0   :  { %s2068_s15 = smov 0   ;;  %s2070_s16 = smov 0   ;;  %s2353_s0 = inlined_call_operand.vmem [shape: bf16[512,288], index: 0, kind: input, shape index: {}]   ;;  %s2354_s1 = inlined_call_operand.vmem [shape: bf16[288,128], index: 1, kind: input, shape index: {}]   ;;  %s2355_s2 = inlined_call_operand.vmem [shape: f32[1,128], index: 2, kind: input, shape index: {}]   ;;  %s2356_s3 = inlined_call_operand.vmem [shape: f32[1,128], index: 3, kind: input, shape index: {}]   ;;  %s2357_s4 = inlined_call_operand.vmem [shape: bf16[512,128], index: 4, kind: output, shape index: {}]  }
   0x1   :  { %s2072_s17 = smov 0  }
   0x2 LB: > { %s26_s18 = sadd.s32 1, %s2037_s16  ;;  %p1480_p0 = scmp.ge.s32.totalorder %s2041_s17, 1  ;;  %s2041_s17 = sphi %s2072_s17, %s14_s17   ;;  %s2037_s16 = sphi %s2070_s16, %s2359_s16   ;;  %s2033_s15 = sphi %s2068_s15, %s2358_s15  }
   0x3   : > { %p28_p1 = scmp.ge.s32.totalorder %s26_s18, 2  ;;  %p203_p2 = scmp.lt.s32.totalorder %s2041_s17, 3 }
   0x5   : > { %s2361_s18 = smov (%p28_p1, %s26_s18), 0  ;;  %p204_p3 = pnand %p1480_p0, %p203_p2 }
   0x6   : > { %v1937_v0 = vld [vmem:[%s2354_s1 + $0x40] sm:$0xff] (!%p204_p3)   ;;  %s1481_s21 = sshll.u32 (!%p204_p3), %s2033_s15, 5  ;;  %v1939_v2 = vld [vmem:[%s2354_s1 + $0x48] sm:$0xff] (!%p204_p3)   ;;  %v1941_v4 = vld [vmem:[%s2354_s1 + $0x50] sm:$0xff] (!%p204_p3)   ;;  %vm725_vm0 = vcmask (!%p204_p3), 261120  }
   0x7   : > { %207 = sbr.rel (%p204_p3) target bundleno = 354 (0x162), region = 36  ;;  %v1938_v1 = vld [vmem:[%s2354_s1] sm:$0xff] (!%p204_p3)   ;;  %1730 = vmatprep.subr.bf16.mxu0 (!%p204_p3), %v1937_v0  ;;  %1896 = vmatprep.subr.bf16.mxu1 (!%p204_p3), %v1937_v0  ;;  %p244_p4 = scmp.lt.s32.totalorder (!%p204_p3), %s1481_s21, 63  ;;  %v1940_v3 = vld [vmem:[%s2354_s1 + $0x8] sm:$0xff] (!%p204_p3)   ;;  %v1942_v5 = vld [vmem:[%s2354_s1 + $0x10] sm:$0xff] (!%p204_p3)  }
   0x8   : > { %1731 = vmatpush3.bf16.msra.mxu0 (!%p204_p3), %v1938_v1  ;;  %1904 = vmatpush3.bf16.msra.mxu1 (!%p204_p3), %v1938_v1  ;;  %v1943_v6 = vld [vmem:[%s2354_s1 + $0x58] sm:$0xff] (!%p204_p3)   ;;  %v1945_v8 = vld [vmem:[%s2354_s1 + $0x60] sm:$0xff] (!%p204_p3)   ;;  %v1947_v10 = vld [vmem:[%s2354_s1 + $0x68] sm:$0xff] (!%p204_p3)  }
   0x9   : > { %1732 = vmatprep.subr.bf16.mxu0 (!%p204_p3), %v1939_v2  ;;  %1897 = vmatprep.subr.bf16.mxu1 (!%p204_p3), %v1939_v2  ;;  %v1944_v7 = vld [vmem:[%s2354_s1 + $0x18] sm:$0xff] (!%p204_p3)   ;;  %v1946_v9 = vld [vmem:[%s2354_s1 + $0x20] sm:$0xff] (!%p204_p3)   ;;  %v1948_v13 = vld [vmem:[%s2354_s1 + $0x28] sm:$0xff] (!%p204_p3)  }
   0xa   : > { %v1949_v14 = vld [vmem:[%s2354_s1 + $0x70] sm:$0xff] (!%p204_p3)   ;;  %v1951_v16 = vld [vmem:[%s2354_s1 + $0x78] sm:$0xff] (!%p204_p3)   ;;  %v1959_v18 = vld [vmem:[%s2354_s1 + $0x80] sm:$0xff] (!%p204_p3)  }
   0xb   : > { %v1950_v15 = vld [vmem:[%s2354_s1 + $0x30] sm:$0xff] (!%p204_p3)   ;;  %v1952_v17 = vld [vmem:[%s2354_s1 + $0x38] sm:$0xff] (!%p204_p3)   ;;  %v1972_v23 = vld [vmem:[%s2354_s1 + $0x88] sm:$0xff] (!%p204_p3)  }
   0xc   : > { %1733 = vmatpush3.bf16.msra.mxu0 (!%p204_p3), %v1940_v3  ;;  %1905 = vmatpush3.bf16.msra.mxu1 (!%p204_p3), %v1940_v3 }
   0xd   : > { %1734 = vmatprep.subr.bf16.mxu0 (!%p204_p3), %v1941_v4  ;;  %1898 = vmatprep.subr.bf16.mxu1 (!%p204_p3), %v1941_v4 }
   0xe   : > { %s2363_s21 = smov (!%p244_p4, %s1481_s21), 63 }
   0xf   : > { %s1912_s8 = smul.u32 12, %s2363_s21  ;;  %s1484_s19 = sshll.u32 %s2363_s21, 2 }
  0x10   : > { %1735 = vmatpush3.bf16.msra.mxu0 %v1942_v5  ;;  %1906 = vmatpush3.bf16.msra.mxu1 %v1942_v5  ;;  %s2252_s23 = scalar_lea.vmem %s2357_s4, %s1484_s19 }
  0x11   : > { %1736 = vmatprep.subr.bf16.mxu0 %v1943_v6  ;;  %1899 = vmatprep.subr.bf16.mxu1 %v1943_v6  ;;  %s2119_s15 = scalar_lea.vmem %s2353_s0, %s1912_s8 }
  0x12   : > { %v1955_v11 = vld [vmem:[%s2119_s15 + $0x4] ss:$12 sps:$4 sm:$0xff]   ;;  %v1953_v19 = vld [vmem:[%s2119_s15] ss:$12 sps:$4 sm:$0xff]   ;;  %v1960_v21 = vld [vmem:[%s2119_s15 + $0x1c] ss:$12 sps:$4 sm:$0xff]  }
  0x13   : > { %v1958_v12 = vld [vmem:[%s2119_s15 + $0x124] ss:$12 sps:$4 sm:$0xff]   ;;  %806 = vmatprep.mubr.bf16.mxu0 %v1955_v11  ;;  %v1956_v20 = vld [vmem:[%s2119_s15 + $0x120] ss:$12 sps:$4 sm:$0xff]   ;;  %v1962_v22 = vld [vmem:[%s2119_s15 + $0x13c] ss:$12 sps:$4 sm:$0xff]  }
  0x14   : > { %1737 = vmatpush3.bf16.msra.mxu0 %v1944_v7  ;;  %1907 = vmatpush3.bf16.msra.mxu1 %v1944_v7  ;;  %v1964_v24 = vld [vmem:[%s2119_s15 + $0x18] ss:$12 sps:$4 sm:$0xff]   ;;  %v1966_v26 = vld [vmem:[%s2119_s15 + $0x34] ss:$12 sps:$4 sm:$0xff]   ;;  %v1970_v28 = vld [vmem:[%s2119_s15 + $0x30] ss:$12 sps:$4 sm:$0xff]  }
  0x15   : > { %1738 = vmatprep.subr.bf16.mxu0 %v1945_v8  ;;  %1900 = vmatprep.subr.bf16.mxu1 %v1945_v8  ;;  %v1965_v25 = vld [vmem:[%s2119_s15 + $0x138] ss:$12 sps:$4 sm:$0xff]   ;;  %v1968_v27 = vld [vmem:[%s2119_s15 + $0x154] ss:$12 sps:$4 sm:$0xff]   ;;  %v1971_v29 = vld [vmem:[%s2119_s15 + $0x150] ss:$12 sps:$4 sm:$0xff]  }
  0x16   : > { %902 = vmatprep.mubr.bf16.mxu1 %v1958_v12  ;;  %v1973_v30 = vld [vmem:[%s2119_s15 + $0x4c] ss:$12 sps:$4 sm:$0xff]   ;;  %v1977_v32 = vld [vmem:[%s2119_s15 + $0x48] ss:$12 sps:$4 sm:$0xff]   ;;  %v1979_v34 = vld [vmem:[%s2119_s15 + $0x64] ss:$12 sps:$4 sm:$0xff]  }
  0x17   : > { %v1975_v31 = vld [vmem:[%s2119_s15 + $0x16c] ss:$12 sps:$4 sm:$0xff]   ;;  %v1978_v33 = vld [vmem:[%s2119_s15 + $0x168] ss:$12 sps:$4 sm:$0xff]   ;;  %v1988_v41 = vld [vmem:[%s2119_s15 + $0x50] ss:$12 sps:$4 sm:$0xff]  }
  0x18   : > { %1739 = vmatpush3.bf16.msra.mxu0 %v1946_v9  ;;  %1908 = vmatpush3.bf16.msra.mxu1 %v1946_v9  ;;  %v1981_v35 = vld [vmem:[%s2119_s15 + $0x8] ss:$12 sps:$4 sm:$0xff]   ;;  %v1982_v36 = vld [vmem:[%s2119_s15 + $0x60] ss:$12 sps:$4 sm:$0xff]   ;;  %v1986_v39 = vld [vmem:[%s2119_s15 + $0x38] ss:$12 sps:$4 sm:$0xff]  }
  0x19   : > { %1740 = vmatprep.subr.bf16.mxu0 %v1947_v10  ;;  %1901 = vmatprep.subr.bf16.mxu1 %v1947_v10  ;;  %v1983_v37 = vld [vmem:[%s2119_s15 + $0x20] ss:$12 sps:$4 sm:$0xff]   ;;  %v1984_v38 = vld [vmem:[%s2119_s15 + $0x7c] ss:$12 sps:$4 sm:$0xff]   ;;  %v1987_v40 = vld [vmem:[%s2119_s15 + $0x78] ss:$12 sps:$4 sm:$0xff]  }
  0x1a   : > { %v1989_v42 = vld [vmem:[%s2119_s15 + $0x94] ss:$12 sps:$4 sm:$0xff]   ;;  %v1992_v44 = vld [vmem:[%s2119_s15 + $0x90] ss:$12 sps:$4 sm:$0xff]   ;;  %v1994_v46 = vld [vmem:[%s2119_s15 + $0xac] ss:$12 sps:$4 sm:$0xff]  }
  0x1b   : > { %v1991_v43 = vld [vmem:[%s2119_s15 + $0x68] ss:$12 sps:$4 sm:$0xff]   ;;  %v1993_v45 = vld [vmem:[%s2119_s15 + $0x80] ss:$12 sps:$4 sm:$0xff]   ;;  %v1996_v47 = vld [vmem:[%s2119_s15 + $0x98] ss:$12 sps:$4 sm:$0xff]  }
  0x1c   : > { %1741 = vmatpush3.bf16.msra.mxu0 %v1948_v13  ;;  %1909 = vmatpush3.bf16.msra.mxu1 %v1948_v13  ;;  %v1997_v48 = vld [vmem:[%s2119_s15 + $0xa8] ss:$12 sps:$4 sm:$0xff]   ;;  %v1998_v49 = vld [vmem:[%s2119_s15 + $0xb0] ss:$12 sps:$4 sm:$0xff]   ;;  %v2002_v52 = vld [vmem:[%s2119_s15 + $0xc0] ss:$12 sps:$4 sm:$0xff]  }
  0x1d   : > { %1742 = vmatprep.subr.bf16.mxu0 %v1949_v14  ;;  %1902 = vmatprep.subr.bf16.mxu1 %v1949_v14  ;;  %v1999_v50 = vld [vmem:[%s2119_s15 + $0xc4] ss:$12 sps:$4 sm:$0xff]   ;;  %v2001_v51 = vld [vmem:[%s2119_s15 + $0xc8] ss:$12 sps:$4 sm:$0xff]   ;;  %v2003_v53 = vld [vmem:[%s2119_s15 + $0xe0] ss:$12 sps:$4 sm:$0xff]  }
  0x1e   : > { %v2004_v54 = vld [vmem:[%s2119_s15 + $0xdc] ss:$12 sps:$4 sm:$0xff]   ;;  %v2006_v55 = vld [vmem:[%s2119_s15 + $0xf8] ss:$12 sps:$4 sm:$0xff]   ;;  %v2009_v58 = vld [vmem:[%s2119_s15 + $0xf4] ss:$12 sps:$4 sm:$0xff]  }
  0x1f   : > { %v2007_v56 = vld [vmem:[%s2119_s15 + $0xd8] ss:$12 sps:$4 sm:$0xff]   ;;  %v2008_v57 = vld [vmem:[%s2119_s15 + $0x110] ss:$12 sps:$4 sm:$0xff]   ;;  %v2011_v59 = vld [vmem:[%s2119_s15 + $0x128] ss:$12 sps:$4 sm:$0xff]  }
  0x20   : > { %1743 = vmatpush3.bf16.msra.mxu0 %v1950_v15  ;;  %1910 = vmatpush3.bf16.msra.mxu1 %v1950_v15  ;;  %v2012_v60 = vld [vmem:[%s2119_s15 + $0xf0] ss:$12 sps:$4 sm:$0xff]   ;;  %v2013_v61 = vld [vmem:[%s2119_s15 + $0x140] ss:$12 sps:$4 sm:$0xff]   ;;  %v2016_v63 = vld [vmem:[%s2119_s15 + $0x158] ss:$12 sps:$4 sm:$0xff]  }
  0x21   : > { %1744 = vmatprep.subr.bf16.mxu0 %v1951_v16  ;;  %1903 = vmatprep.subr.bf16.mxu1 %v1951_v16  ;;  %v2014_v62 = vld [vmem:[%s2119_s15 + $0x10c] ss:$12 sps:$4 sm:$0xff]   ;;  %v2017_v0 = vld [vmem:[%s2119_s15 + $0x108] ss:$12 sps:$4 sm:$0xff]   ;;  %v2018_v1 = vld [vmem:[%s2119_s15 + $0x170] ss:$12 sps:$4 sm:$0xff]  }
  0x24   : > { %1745 = vmatpush3.bf16.msra.mxu0 %v1952_v17  ;;  %1911 = vmatpush3.bf16.msra.mxu1 %v1952_v17 }
  0x25   : > { %1860 = vmatprep.subr.bf16.mxu1 %v1959_v18 }
  0x27   : > { %807 = vmatmul.mubr.bf16.vlgmr.msra.gmra.mrb[0].mxu0 %v1953_v19  ;;  %903 = vmatmul.mubr.bf16.vlgmr.msra.gmra.mrb[0].mxu1 %v1956_v20 }
  0x28   : > { %1861 = vmatpush3.bf16.msra.mxu1 %v1959_v18  ;;  %814 = vmatprep.mubr.bf16.mxu0 %v1960_v21 }
  0x29   : > { %910 = vmatprep.mubr.bf16.mxu1 %v1962_v22  ;;  %1862 = vmatprep.subr.bf16.mxu1 %v1972_v23 }
  0x2c   : > { %1863 = vmatpush3.bf16.msra.mxu1 %v1972_v23 }
  0x2f   : > { %815 = vmatmul.mubr.bf16.gmra.mrb[4].mxu0 %v1964_v24  ;;  %911 = vmatmul.mubr.bf16.gmra.mrb[4].mxu1 %v1965_v25 }
  0x30   : > { %822 = vmatprep.mubr.bf16.mxu0 %v1966_v26  ;;  %918 = vmatprep.mubr.bf16.mxu1 %v1968_v27 }
  0x37   : > { %823 = vmatmul.mubr.bf16.gmra.mrb[8].mxu0 %v1970_v28  ;;  %919 = vmatmul.mubr.bf16.gmra.mrb[8].mxu1 %v1971_v29 }
  0x38   : > { %830 = vmatprep.mubr.bf16.mxu0 %v1973_v30  ;;  %926 = vmatprep.mubr.bf16.mxu1 %v1975_v31 }
  0x3f   : > { %831 = vmatmul.mubr.bf16.gmra.mrb[12].mxu0 %v1977_v32  ;;  %927 = vmatmul.mubr.bf16.gmra.mrb[12].mxu1 %v1978_v33 }
  0x40   : > { %838 = vmatprep.mubr.bf16.mxu0 %v1979_v34  ;;  %1864 = vmatprep.mubr.msk.bf16.mxu1 %vm725_vm0, %v1981_v35 }
  0x47   : > { %839 = vmatmul.mubr.bf16.gmra.mrb[16].mxu0 %v1982_v36  ;;  %1865 = vmatmul.mubr.msk.bf16.vlgmr.msra.gmra.mrb[16].mxu1 %vm725_vm0, %v1983_v37 }
  0x48   : > { %846 = vmatprep.mubr.bf16.mxu0 %v1984_v38  ;;  %1868 = vmatprep.mubr.msk.bf16.mxu1 %vm725_vm0, %v1986_v39 }
  0x4f   : > { %847 = vmatmul.mubr.bf16.gmra.mrb[20].mxu0 %v1987_v40  ;;  %1869 = vmatmul.mubr.msk.bf16.gmra.mrb[20].mxu1 %vm725_vm0, %v1988_v41 }
  0x50   : > { %854 = vmatprep.mubr.bf16.mxu0 %v1989_v42  ;;  %1872 = vmatprep.mubr.msk.bf16.mxu1 %vm725_vm0, %v1991_v43 }
  0x57   : > { %855 = vmatmul.mubr.bf16.gmra.mrb[24].mxu0 %v1992_v44  ;;  %1873 = vmatmul.mubr.msk.bf16.gmra.mrb[24].mxu1 %vm725_vm0, %v1993_v45 }
  0x58   : > { %862 = vmatprep.mubr.bf16.mxu0 %v1994_v46  ;;  %1876 = vmatprep.mubr.msk.bf16.mxu1 %vm725_vm0, %v1996_v47 }
  0x5f   : > { %863 = vmatmul.mubr.bf16.gmra.mrb[28].mxu0 %v1997_v48  ;;  %1877 = vmatmul.mubr.msk.bf16.gmra.mrb[28].mxu1 %vm725_vm0, %v1998_v49 }
  0x60   : > { %870 = vmatprep.mubr.bf16.mxu0 %v1999_v50  ;;  %1880 = vmatprep.mubr.msk.bf16.mxu1 %vm725_vm0, %v2001_v51  ;;  %v2233_v50 = vld [vmem:[%s2355_s2] ss:$0 sm:$0xff] }
  0x67   : > { %871 = vmatmul.mubr.bf16.gmra.mrb[32].mxu0 %v2002_v52  ;;  %1881 = vmatmul.mubr.msk.bf16.gmra.mrb[32].mxu1 %vm725_vm0, %v2003_v53 }
  0x68   : > { %878 = vmatprep.mubr.bf16.mxu0 %v2004_v54  ;;  %1884 = vmatprep.mubr.msk.bf16.mxu1 %vm725_vm0, %v2006_v55  ;;  %v2239_v54 = vld [vmem:[%s2356_s3] ss:$0 sm:$0xff] }
  0x6f   : > { %879 = vmatmul.mubr.bf16.gmra.mrb[36].mxu0 %v2007_v56  ;;  %1885 = vmatmul.mubr.msk.bf16.gmra.mrb[36].mxu1 %vm725_vm0, %v2008_v57 }
  0x70   : > { %886 = vmatprep.mubr.bf16.mxu0 %v2009_v58  ;;  %1888 = vmatprep.mubr.msk.bf16.mxu1 %vm725_vm0, %v2011_v59 }
  0x77   : > { %887 = vmatmul.mubr.bf16.gmra.mrb[40].mxu0 %v2012_v60  ;;  %1889 = vmatmul.mubr.msk.bf16.gmra.mrb[40].mxu1 %vm725_vm0, %v2013_v61 }
  0x78   : > { %894 = vmatprep.mubr.bf16.mxu0 %v2014_v62  ;;  %1892 = vmatprep.mubr.msk.bf16.mxu1 %vm725_vm0, %v2016_v63 }
  0x7f   : > { %895 = vmatmul.mubr.bf16.gmra.mrb[44].mxu0 %v2017_v0  ;;  %1893 = vmatmul.mubr.msk.bf16.gmra.mrb[44].mxu1 %vm725_vm0, %v2018_v1 }
  0xfa   : > { %v1746_v2 = vpop.f32.mrb[0].mxu0  ;;  %v1818_v3 = vpop.f32.mrb[0].mxu1 }
  0xfb   : > { %v1747_v4 = vpop.f32.mrb[1].mxu0  ;;  %v1819_v5 = vpop.f32.mrb[1].mxu1 }
  0xfc   : > { %v1748_v6 = vadd.f32 %v1747_v4, %v1746_v2  ;;  %v1749_v7 = vpop.f32.mrb[2].mxu0  ;;  %v2212_v8 = vadd.f32 %v1819_v5, %v1818_v3  ;;  %v1821_v9 = vpop.f32.mrb[2].mxu1 }
  0xfd   : > { %v1750_v10 = vpop.f32.mrb[3].mxu0  ;;  %v1822_v11 = vpop.f32.mrb[3].mxu1 }
  0xfe   : > { %v1751_v12 = vadd.f32 %v1750_v10, %v1749_v7  ;;  %v2214_v13 = vadd.f32 %v1822_v11, %v1821_v9  ;;  %v809_v55 = vadd.f32 %v1748_v6, %v2233_v50 }
 0x100   : > { %v812_v0 = vadd.f32 %v1751_v12, %v2233_v50 }
 0x102   : > { %v1752_v14 = vpop.f32.mrb[4].mxu0  ;;  %v1824_v15 = vpop.f32.mrb[4].mxu1 }
 0x103   : > { %v1753_v16 = vpop.f32.mrb[5].mxu0  ;;  %v1825_v17 = vpop.f32.mrb[5].mxu1 }
 0x104   : > { %v1754_v18 = vadd.f32 %v1753_v16, %v1752_v14  ;;  %v1755_v19 = vpop.f32.mrb[6].mxu0  ;;  %v2216_v20 = vadd.f32 %v1825_v17, %v1824_v15  ;;  %v1827_v21 = vpop.f32.mrb[6].mxu1 }
 0x105   : > { %v1756_v22 = vpop.f32.mrb[7].mxu0  ;;  %v1828_v23 = vpop.f32.mrb[7].mxu1 }
 0x106   : > { %v1757_v24 = vadd.f32 %v1756_v22, %v1755_v19  ;;  %v2218_v25 = vadd.f32 %v1828_v23, %v1827_v21  ;;  %v817_v51 = vadd.f32 %v1754_v18, %v2233_v50 }
 0x108   : > { %v820_v59 = vadd.f32 %v1757_v24, %v2233_v50 }
 0x10a   : > { %v1758_v26 = vpop.f32.mrb[8].mxu0  ;;  %v1830_v27 = vpop.f32.mrb[8].mxu1 }
 0x10b   : > { %v1759_v28 = vpop.f32.mrb[9].mxu0  ;;  %v1831_v29 = vpop.f32.mrb[9].mxu1 }
 0x10c   : > { %v1760_v30 = vadd.f32 %v1759_v28, %v1758_v26  ;;  %v1761_v31 = vpop.f32.mrb[10].mxu0  ;;  %v2220_v32 = vadd.f32 %v1831_v29, %v1830_v27  ;;  %v1833_v33 = vpop.f32.mrb[10].mxu1 }
 0x10d   : > { %v1762_v34 = vpop.f32.mrb[11].mxu0  ;;  %v1834_v35 = vpop.f32.mrb[11].mxu1 }
 0x10e   : > { %v2222_v36 = vadd.f32 %v1762_v34, %v1761_v31  ;;  %v2224_v37 = vadd.f32 %v1834_v35, %v1833_v33  ;;  %v825_v21 = vadd.f32 %v1760_v30, %v2233_v50 }
 0x110   : > { %v828_v34 = vadd.f32 %v2222_v36, %v2233_v50 }
 0x112   : > { %v1764_v38 = vpop.f32.mrb[12].mxu0  ;;  %v1836_v39 = vpop.f32.mrb[12].mxu1 }
 0x113   : > { %v1765_v40 = vpop.f32.mrb[13].mxu0  ;;  %v1837_v41 = vpop.f32.mrb[13].mxu1 }
 0x114   : > { %v1766_v42 = vadd.f32 %v1765_v40, %v1764_v38  ;;  %v1767_v43 = vpop.f32.mrb[14].mxu0  ;;  %v2226_v44 = vadd.f32 %v1837_v41, %v1836_v39  ;;  %v1839_v45 = vpop.f32.mrb[14].mxu1 }
 0x115   : > { %v1768_v46 = vpop.f32.mrb[15].mxu0  ;;  %v1840_v47 = vpop.f32.mrb[15].mxu1 }
 0x116   : > { %v1769_v48 = vadd.f32 %v1768_v46, %v1767_v43  ;;  %v2228_v49 = vadd.f32 %v1840_v47, %v1839_v45  ;;  %v833_v14 = vadd.f32 %v1766_v42, %v2233_v50 }
 0x118   : > { %v836_v27 = vadd.f32 %v1769_v48, %v2233_v50 }
 0x11a   : > { %v1770_v52 = vpop.f32.mrb[16].mxu0  ;;  %v1866_v53 = vpop.f32.mrb[16].mxu1 }
 0x11b   : > { %v978_v56 = vadd.f32 %v1866_v53, %v817_v51  ;;  %v1771_v57 = vpop.f32.mrb[17].mxu0  ;;  %v969_v58 = vpop.f32.mrb[17].mxu1 }
 0x11c   : > { %v1772_v60 = vadd.f32 %v1771_v57, %v1770_v52  ;;  %v970_v61 = vadd.f32 %v969_v58, %v809_v55  ;;  %v1773_v62 = vpop.f32.mrb[18].mxu0  ;;  %v1867_v63 = vpop.f32.mrb[18].mxu1 }
 0x11d   : > { %v1137_v1 = vmul.f32 %v2239_v54, %v978_v56  ;;  %v981_v2 = vadd.f32 %v1867_v63, %v820_v59  ;;  %v1774_v3 = vpop.f32.mrb[19].mxu0  ;;  %v972_v4 = vpop.f32.mrb[19].mxu1  ;;  %vm1098_vm1 = vcmp.ge.f32.partialorder %v978_v56, 0.0 }
 0x11e   : > { %v1135_v5 = vmul.f32 %v2239_v54, %v970_v61  ;;  %v1775_v6 = vadd.f32 %v1774_v3, %v1773_v62  ;;  %v973_v7 = vadd.f32 %v972_v4, %v812_v0  ;;  %vm1096_vm2 = vcmp.ge.f32.partialorder %v970_v61, 0.0 }
 0x11f   : > { %vm1099_vm3 = vcmp.ge.f32.partialorder %v981_v2, 0.0  ;;  %v1138_v9 = vmul.f32 %v2239_v54, %v981_v2  ;;  %v1169_v11 = vsel %vm1098_vm1, %v978_v56, %v1137_v1  ;;  %v841_v56 = vadd.f32 %v1772_v60, %v2233_v50 }
 0x120   : > { %vm1097_vm4 = vcmp.ge.f32.partialorder %v973_v7, 0.0  ;;  %v1136_v10 = vmul.f32 %v2239_v54, %v973_v7  ;;  %v1167_v15 = vsel %vm1096_vm2, %v970_v61, %v1135_v5  ;;  %v844_v3 = vadd.f32 %v1775_v6, %v2233_v50 }
 0x121   : > { %v1170_v12 = vsel %vm1099_vm3, %v981_v2, %v1138_v9 }
 0x122   : > { %v1643_v16 = vpack.c.bf16 %v1170_v12, %v1169_v11  ;;  %v1168_v17 = vsel %vm1097_vm4, %v973_v7, %v1136_v10  ;;  %v1776_v18 = vpop.f32.mrb[20].mxu0  ;;  %v1870_v19 = vpop.f32.mrb[20].mxu1 }
 0x123   : > { %v1638_v22 = vpack.c.bf16 %v1168_v17, %v1167_v15  ;;  %v994_v23 = vadd.f32 %v1870_v19, %v833_v14  ;;  %v1777_v24 = vpop.f32.mrb[21].mxu0  ;;  %v985_v26 = vpop.f32.mrb[21].mxu1 }
 0x124   : > { %1715 = vst [vmem:[%s2252_s23 + $0x8] sm:$0xff] %v1643_v16   ;;  %v1778_v28 = vadd.f32 %v1777_v24, %v1776_v18  ;;  %v986_v29 = vadd.f32 %v985_v26, %v825_v21  ;;  %v1779_v31 = vpop.f32.mrb[22].mxu0  ;;  %v1871_v33 = vpop.f32.mrb[22].mxu1 }
 0x125   : > { %1639 = vst [vmem:[%s2252_s23] sm:$0xff] %v1638_v22   ;;  %v1141_v35 = vmul.f32 %v2239_v54, %v994_v23  ;;  %v997_v38 = vadd.f32 %v1871_v33, %v836_v27  ;;  %v1780_v39 = vpop.f32.mrb[23].mxu0  ;;  %v988_v30 = vpop.f32.mrb[23].mxu1  ;;  %vm1102_vm5 = vcmp.ge.f32.partialorder %v994_v23, 0.0 }
 0x126   : > { %v1139_v40 = vmul.f32 %v2239_v54, %v986_v29  ;;  %v1781_v41 = vadd.f32 %v1780_v39, %v1779_v31  ;;  %v989_v42 = vadd.f32 %v988_v30, %v828_v34  ;;  %vm1100_vm6 = vcmp.ge.f32.partialorder %v986_v29, 0.0 }
 0x127   : > { %vm1103_vm7 = vcmp.ge.f32.partialorder %v997_v38, 0.0  ;;  %v1142_v43 = vmul.f32 %v2239_v54, %v997_v38  ;;  %v1173_v36 = vsel %vm1102_vm5, %v994_v23, %v1141_v35  ;;  %v849_v47 = vadd.f32 %v1778_v28, %v2233_v50 }
 0x128   : > { %vm1101_vm8 = vcmp.ge.f32.partialorder %v989_v42, 0.0  ;;  %v1140_v45 = vmul.f32 %v2239_v54, %v989_v42  ;;  %v1171_v48 = vsel %vm1100_vm6, %v986_v29, %v1139_v40  ;;  %v852_v62 = vadd.f32 %v1781_v41, %v2233_v50 }
 0x129   : > { %v1174_v46 = vsel %vm1103_vm7, %v997_v38, %v1142_v43 }
 0x12a   : > { %v1653_v51 = vpack.c.bf16 %v1174_v46, %v1173_v36  ;;  %v1172_v52 = vsel %vm1101_vm8, %v989_v42, %v1140_v45  ;;  %v1782_v53 = vpop.f32.mrb[24].mxu0  ;;  %v1874_v55 = vpop.f32.mrb[24].mxu1 }
 0x12b   : > { %v1648_v57 = vpack.c.bf16 %v1172_v52, %v1171_v48  ;;  %v1010_v58 = vadd.f32 %v1874_v55, %v849_v47  ;;  %v1783_v59 = vpop.f32.mrb[25].mxu0  ;;  %v1001_v61 = vpop.f32.mrb[25].mxu1 }
 0x12c   : > { %1717 = vst [vmem:[%s2252_s23 + $0x18] sm:$0xff] %v1653_v51   ;;  %v1784_v63 = vadd.f32 %v1783_v59, %v1782_v53  ;;  %v1002_v0 = vadd.f32 %v1001_v61, %v841_v56  ;;  %v1785_v1 = vpop.f32.mrb[26].mxu0  ;;  %v1875_v2 = vpop.f32.mrb[26].mxu1 }
 0x12d   : > { %1716 = vst [vmem:[%s2252_s23 + $0x10] sm:$0xff] %v1648_v57   ;;  %v1145_v4 = vmul.f32 %v2239_v54, %v1010_v58  ;;  %v1013_v5 = vadd.f32 %v1875_v2, %v852_v62  ;;  %v1786_v7 = vpop.f32.mrb[27].mxu0  ;;  %v1004_v9 = vpop.f32.mrb[27].mxu1  ;;  %vm1106_vm9 = vcmp.ge.f32.partialorder %v1010_v58, 0.0 }
 0x12e   : > { %v1143_v60 = vmul.f32 %v2239_v54, %v1002_v0  ;;  %v1787_v10 = vadd.f32 %v1786_v7, %v1785_v1  ;;  %v1005_v11 = vadd.f32 %v1004_v9, %v844_v3  ;;  %vm1104_vm10 = vcmp.ge.f32.partialorder %v1002_v0, 0.0 }
 0x12f   : > { %vm1107_vm11 = vcmp.ge.f32.partialorder %v1013_v5, 0.0  ;;  %v1146_v12 = vmul.f32 %v2239_v54, %v1013_v5  ;;  %v1177_v6 = vsel %vm1106_vm9, %v1010_v58, %v1145_v4  ;;  %v857_v22 = vadd.f32 %v1784_v63, %v2233_v50 }
 0x130   : > { %vm1105_vm12 = vcmp.ge.f32.partialorder %v1005_v11, 0.0  ;;  %v1144_v14 = vmul.f32 %v2239_v54, %v1005_v11  ;;  %v1175_v16 = vsel %vm1104_vm10, %v1002_v0, %v1143_v60  ;;  %v860_v34 = vadd.f32 %v1787_v10, %v2233_v50 }
 0x131   : > { %v1178_v15 = vsel %vm1107_vm11, %v1013_v5, %v1146_v12 }
 0x132   : > { %v1663_v17 = vpack.c.bf16 %v1178_v15, %v1177_v6  ;;  %v1176_v18 = vsel %vm1105_vm12, %v1005_v11, %v1144_v14  ;;  %v1788_v19 = vpop.f32.mrb[28].mxu0  ;;  %v1878_v21 = vpop.f32.mrb[28].mxu1 }
 0x133   : > { %v1658_v23 = vpack.c.bf16 %v1176_v18, %v1175_v16  ;;  %v1789_v24 = vpop.f32.mrb[29].mxu0  ;;  %v1017_v26 = vpop.f32.mrb[29].mxu1 }
 0x134   : > { %1719 = vst [vmem:[%s2252_s23 + $0x28] sm:$0xff] %v1663_v17   ;;  %v1790_v27 = vadd.f32 %v1789_v24, %v1788_v19  ;;  %v1018_v28 = vadd.f32 %v1017_v26, %v857_v22  ;;  %v1791_v29 = vpop.f32.mrb[30].mxu0  ;;  %v1879_v31 = vpop.f32.mrb[30].mxu1 }
 0x135   : > { %1718 = vst [vmem:[%s2252_s23 + $0x20] sm:$0xff] %v1658_v23   ;;  %v1792_v33 = vpop.f32.mrb[31].mxu0  ;;  %v1020_v35 = vpop.f32.mrb[31].mxu1 }
 0x136   : > { %v865_v38 = vadd.f32 %v1790_v27, %v2233_v50  ;;  %v1793_v39 = vadd.f32 %v1792_v33, %v1791_v29  ;;  %v1147_v30 = vmul.f32 %v2239_v54, %v1018_v28  ;;  %v1021_v40 = vadd.f32 %v1020_v35, %v860_v34 }
 0x137   : > { %vm1108_vm13 = vcmp.ge.f32.partialorder %v1018_v28, 0.0  ;;  %v905_v35 = vadd.f32 %v2212_v8, %v2233_v50 }
 0x138   : > { %v1026_v41 = vadd.f32 %v1878_v21, %v865_v38  ;;  %v868_v42 = vadd.f32 %v1793_v39, %v2233_v50  ;;  %vm1109_vm14 = vcmp.ge.f32.partialorder %v1021_v40, 0.0  ;;  %v1148_v43 = vmul.f32 %v2239_v54, %v1021_v40 }
 0x139   : > { %v1179_v48 = vsel %vm1108_vm13, %v1018_v28, %v1147_v30  ;;  %v913_v28 = vadd.f32 %v2216_v20, %v2233_v50  ;;  %v921_v20 = vadd.f32 %v2220_v32, %v2233_v50 }
 0x13a   : > { %v1149_v45 = vmul.f32 %v2239_v54, %v1026_v41  ;;  %v1029_v36 = vadd.f32 %v1879_v31, %v868_v42  ;;  %v1794_v46 = vpop.f32.mrb[32].mxu0  ;;  %v1882_v47 = vpop.f32.mrb[32].mxu1  ;;  %vm1110_vm15 = vcmp.ge.f32.partialorder %v1026_v41, 0.0  ;;  %v1180_v51 = vsel %vm1109_vm14, %v1021_v40, %v1148_v43 }
 0x13b   : > { %v1795_v52 = vpop.f32.mrb[33].mxu0  ;;  %v1033_v53 = vpop.f32.mrb[33].mxu1  ;;  %v1668_v56 = vpack.c.bf16 %v1180_v51, %v1179_v48  ;;  %v916_v40 = vadd.f32 %v2218_v25, %v2233_v50 }
 0x13c   : > { %vm1111_vm0 = vcmp.ge.f32.partialorder %v1029_v36, 0.0  ;;  %v1150_v55 = vmul.f32 %v2239_v54, %v1029_v36  ;;  %v1797_v57 = vpop.f32.mrb[34].mxu0  ;;  %v1883_v58 = vpop.f32.mrb[34].mxu1  ;;  %v1796_v59 = vadd.f32 %v1795_v52, %v1794_v46  ;;  %v1181_v63 = vsel %vm1110_vm15, %v1026_v41, %v1149_v45 }
 0x13d   : > { %v1798_v61 = vpop.f32.mrb[35].mxu0  ;;  %v1036_v62 = vpop.f32.mrb[35].mxu1  ;;  %1720 = vst [vmem:[%s2252_s23 + $0x30] sm:$0xff] %v1668_v56   ;;  %v908_v41 = vadd.f32 %v2214_v13, %v2233_v50 }
 0x13e   : > { %v1182_v0 = vsel %vm1111_vm0, %v1029_v36, %v1150_v55  ;;  %v1799_v1 = vadd.f32 %v1798_v61, %v1797_v57  ;;  %v873_v3 = vadd.f32 %v1796_v59, %v2233_v50  ;;  %v924_v57 = vadd.f32 %v2224_v37, %v2233_v50 }
 0x13f   : > { %v1673_v2 = vpack.c.bf16 %v1182_v0, %v1181_v63  ;;  %v929_v0 = vadd.f32 %v2226_v44, %v2233_v50 }
 0x140   : > { %v876_v4 = vadd.f32 %v1799_v1, %v2233_v50  ;;  %v1034_v5 = vadd.f32 %v1033_v53, %v873_v3 }
 0x141   : > { %1721 = vst [vmem:[%s2252_s23 + $0x38] sm:$0xff] %v1673_v2  }
 0x142   : > { %v1037_v7 = vadd.f32 %v1036_v62, %v876_v4  ;;  %v1800_v9 = vpop.f32.mrb[36].mxu0  ;;  %v2289_v60 = vpop.f32.mrb[36].mxu1  ;;  %vm1112_vm1 = vcmp.ge.f32.partialorder %v1034_v5, 0.0  ;;  %v1151_v10 = vmul.f32 %v2239_v54, %v1034_v5 }
 0x143   : > { %v1801_v11 = vpop.f32.mrb[37].mxu0  ;;  %v1049_v12 = vpop.f32.mrb[37].mxu1 }
 0x144   : > { %vm1113_vm2 = vcmp.ge.f32.partialorder %v1037_v7, 0.0  ;;  %v1152_v14 = vmul.f32 %v2239_v54, %v1037_v7  ;;  %v1802_v6 = vadd.f32 %v1801_v11, %v1800_v9  ;;  %v1803_v15 = vpop.f32.mrb[38].mxu0  ;;  %v2293_v16 = vpop.f32.mrb[38].mxu1  ;;  %v1183_v19 = vsel %vm1112_vm1, %v1034_v5, %v1151_v10 }
 0x145   : > { %v1804_v17 = vpop.f32.mrb[39].mxu0  ;;  %v1052_v18 = vpop.f32.mrb[39].mxu1 }
 0x146   : > { %v1184_v21 = vsel %vm1113_vm2, %v1037_v7, %v1152_v14  ;;  %v881_v22 = vadd.f32 %v1802_v6, %v2233_v50  ;;  %v1805_v23 = vadd.f32 %v1804_v17, %v1803_v15  ;;  %v932_v15 = vadd.f32 %v2228_v49, %v2233_v50 }
 0x147   : > { %v1678_v24 = vpack.c.bf16 %v1184_v21, %v1183_v19 }
 0x148   : > { %v1042_v26 = vadd.f32 %v1882_v47, %v881_v22  ;;  %v884_v27 = vadd.f32 %v1805_v23, %v2233_v50 }
 0x149   : > { %1722 = vst [vmem:[%s2252_s23 + $0x40] sm:$0xff] %v1678_v24  }
 0x14a   : > { %vm1114_vm3 = vcmp.ge.f32.partialorder %v1042_v26, 0.0  ;;  %v1153_v29 = vmul.f32 %v2239_v54, %v1042_v26  ;;  %v1045_v31 = vadd.f32 %v1883_v58, %v884_v27  ;;  %v1806_v33 = vpop.f32.mrb[40].mxu0  ;;  %v1890_v34 = vpop.f32.mrb[40].mxu1 }
 0x14b   : > { %v1074_v38 = vadd.f32 %v1890_v34, %v913_v28  ;;  %v1807_v39 = vpop.f32.mrb[41].mxu0  ;;  %v1065_v30 = vpop.f32.mrb[41].mxu1 }
 0x14c   : > { %v1185_v42 = vsel %vm1114_vm3, %v1042_v26, %v1153_v29  ;;  %vm1115_vm4 = vcmp.ge.f32.partialorder %v1045_v31, 0.0  ;;  %v1154_v43 = vmul.f32 %v2239_v54, %v1045_v31  ;;  %v1808_v45 = vadd.f32 %v1807_v39, %v1806_v33  ;;  %v1809_v36 = vpop.f32.mrb[42].mxu0  ;;  %v1891_v46 = vpop.f32.mrb[42].mxu1 }
 0x14d   : > { %vm1122_vm5 = vcmp.ge.f32.partialorder %v1074_v38, 0.0  ;;  %v1161_v8 = vmul.f32 %v2239_v54, %v1074_v38  ;;  %v1066_v47 = vadd.f32 %v1065_v30, %v905_v35  ;;  %v1077_v48 = vadd.f32 %v1891_v46, %v916_v40  ;;  %v1810_v25 = vpop.f32.mrb[43].mxu0  ;;  %v1068_v51 = vpop.f32.mrb[43].mxu1 }
 0x14e   : > { %v1186_v52 = vsel %vm1115_vm4, %v1045_v31, %v1154_v43  ;;  %v889_v13 = vadd.f32 %v1808_v45, %v2233_v50  ;;  %v1811_v53 = vadd.f32 %v1810_v25, %v1809_v36  ;;  %v1069_v32 = vadd.f32 %v1068_v51, %v908_v41 }
 0x14f   : > { %v1683_v55 = vpack.c.bf16 %v1186_v52, %v1185_v42  ;;  %vm1120_vm6 = vcmp.ge.f32.partialorder %v1066_v47, 0.0  ;;  %v1159_v56 = vmul.f32 %v2239_v54, %v1066_v47  ;;  %vm1123_vm7 = vcmp.ge.f32.partialorder %v1077_v48, 0.0 }
 0x150   : > { %v1050_v58 = vadd.f32 %v1049_v12, %v889_v13  ;;  %v1162_v59 = vmul.f32 %v2239_v54, %v1077_v48  ;;  %v892_v61 = vadd.f32 %v1811_v53, %v2233_v50  ;;  %v1193_v62 = vsel %vm1122_vm5, %v1074_v38, %v1161_v8 }
 0x151   : > { %1723 = vst [vmem:[%s2252_s23 + $0x48] sm:$0xff] %v1683_v55   ;;  %vm1121_vm8 = vcmp.ge.f32.partialorder %v1069_v32, 0.0  ;;  %v1160_v63 = vmul.f32 %v2239_v54, %v1069_v32  ;;  %v1191_v5 = vsel %vm1120_vm6, %v1066_v47, %v1159_v56 }
 0x152   : > { %vm1116_vm9 = vcmp.ge.f32.partialorder %v1050_v58, 0.0  ;;  %v1155_v1 = vmul.f32 %v2239_v54, %v1050_v58  ;;  %v1194_v2 = vsel %vm1123_vm7, %v1077_v48, %v1162_v59  ;;  %v1053_v37 = vadd.f32 %v1052_v18, %v892_v61  ;;  %v1812_v3 = vpop.f32.mrb[44].mxu0  ;;  %v1894_v4 = vpop.f32.mrb[44].mxu1 }
 0x153   : > { %v1703_v7 = vpack.c.bf16 %v1194_v2, %v1193_v62  ;;  %v1192_v9 = vsel %vm1121_vm8, %v1069_v32, %v1160_v63  ;;  %v1090_v10 = vadd.f32 %v1894_v4, %v929_v0  ;;  %v1813_v11 = vpop.f32.mrb[45].mxu0  ;;  %v1081_v12 = vpop.f32.mrb[45].mxu1 }
 0x154   : > { %vm1117_vm10 = vcmp.ge.f32.partialorder %v1053_v37, 0.0  ;;  %v1156_v14 = vmul.f32 %v2239_v54, %v1053_v37  ;;  %v1698_v44 = vpack.c.bf16 %v1192_v9, %v1191_v5  ;;  %v1815_v6 = vpop.f32.mrb[46].mxu0  ;;  %v1895_v17 = vpop.f32.mrb[46].mxu1  ;;  %v1187_v18 = vsel %vm1116_vm9, %v1050_v58, %v1155_v1 }
 0x155   : > { %1727 = vst [vmem:[%s2252_s23 + $0x68] sm:$0xff] %v1703_v7   ;;  %v1165_v19 = vmul.f32 %v2239_v54, %v1090_v10  ;;  %v1814_v21 = vadd.f32 %v1813_v11, %v1812_v3  ;;  %v1082_v22 = vadd.f32 %v1081_v12, %v921_v20  ;;  %v1816_v23 = vpop.f32.mrb[47].mxu0  ;;  %v1084_v24 = vpop.f32.mrb[47].mxu1  ;;  %v1093_v27 = vadd.f32 %v1895_v17, %v932_v15 }
 0x156   : > { %v1188_v26 = vsel %vm1117_vm10, %v1053_v37, %v1156_v14  ;;  %1726 = vst [vmem:[%s2252_s23 + $0x60] sm:$0xff] %v1698_v44   ;;  %v1817_v28 = vadd.f32 %v1816_v23, %v1815_v6  ;;  %v1085_v29 = vadd.f32 %v1084_v24, %v924_v57  ;;  %vm1126_vm11 = vcmp.ge.f32.partialorder %v1090_v10, 0.0 }
 0x157   : > { %v1688_v31 = vpack.c.bf16 %v1188_v26, %v1187_v18  ;;  %v897_v49 = vadd.f32 %v1814_v21, %v2233_v50  ;;  %vm1124_vm12 = vcmp.ge.f32.partialorder %v1082_v22, 0.0  ;;  %v1163_v33 = vmul.f32 %v2239_v54, %v1082_v22 }
 0x158   : > { %vm1127_vm13 = vcmp.ge.f32.partialorder %v1093_v27, 0.0  ;;  %v1166_v34 = vmul.f32 %v2239_v54, %v1093_v27  ;;  %v900_v35 = vadd.f32 %v1817_v28, %v2233_v50  ;;  %vm1125_vm14 = vcmp.ge.f32.partialorder %v1085_v29, 0.0 }
 0x159   : > { %1724 = vst [vmem:[%s2252_s23 + $0x50] sm:$0xff] %v1688_v31   ;;  %v1058_v38 = vadd.f32 %v2289_v60, %v897_v49  ;;  %v1164_v39 = vmul.f32 %v2239_v54, %v1085_v29  ;;  %v1197_v30 = vsel %vm1126_vm11, %v1090_v10, %v1165_v19  ;;  %v1195_v40 = vsel %vm1124_vm12, %v1082_v22, %v1163_v33 }
 0x15a   : > { %v1198_v41 = vsel %vm1127_vm13, %v1093_v27, %v1166_v34  ;;  %v1061_v20 = vadd.f32 %v2293_v16, %v900_v35 }
 0x15b   : > { %vm1118_vm15 = vcmp.ge.f32.partialorder %v1058_v38, 0.0  ;;  %v1157_v42 = vmul.f32 %v2239_v54, %v1058_v38  ;;  %v1713_v43 = vpack.c.bf16 %v1198_v41, %v1197_v30  ;;  %v1196_v45 = vsel %vm1125_vm14, %v1085_v29, %v1164_v39 }
 0x15c   : > { %vm1119_vm0 = vcmp.ge.f32.partialorder %v1061_v20, 0.0  ;;  %v1158_v50 = vmul.f32 %v2239_v54, %v1061_v20  ;;  %v1708_v36 = vpack.c.bf16 %v1196_v45, %v1195_v40 }
 0x15d   : > { %1729 = vst [vmem:[%s2252_s23 + $0x78] sm:$0xff] %v1713_v43   ;;  %v1189_v60 = vsel %vm1118_vm15, %v1058_v38, %v1157_v42 }
 0x15e   : > { %v1190_v46 = vsel %vm1119_vm0, %v1061_v20, %v1158_v50  ;;  %1728 = vst [vmem:[%s2252_s23 + $0x70] sm:$0xff] %v1708_v36  }
 0x15f   : > { %v1693_v8 = vpack.c.bf16 %v1190_v46, %v1189_v60 }
 0x161   : > { %1725 = vst [vmem:[%s2252_s23 + $0x58] sm:$0xff] %v1693_v8  }
 0x162 PF: > { %s14_s17 = sadd.s32 1, %s2041_s17   ;;  %s2358_s15 = smov %s2037_s16 }
 0x163   : > { %p11_p5 = scmp.ge.s32.totalorder %s14_s17, 4   ;;  %s2359_s16 = smov %s2361_s18 }
 0x165   :  { %13 = sbr.rel (!%p11_p5) target bundleno = 2 (0x2), region = 75 }

// kernel: one_module_forward.7
= control target key start
LH: loop header
LB: loop body
LE: loop exit
PB: predicated region body
PF: predicated region fallthrough
CT: control target
= control target key end

     0   :  { %10 = vsyncpa [#allocation3], 0  ;;  %s1639_s18 = smov 0   ;;  %s1641_s19 = smov 0   ;;  %s1942_s0 = inlined_call_operand.vmem [shape: bf16[512,144], index: 0, kind: input, shape index: {}]   ;;  %s1943_s1 = inlined_call_operand.vmem [shape: bf16[144,128], index: 1, kind: input, shape index: {}]   ;;  %s1944_s2 = inlined_call_operand.vmem [shape: f32[1,128], index: 2, kind: input, shape index: {}]   ;;  %s1945_s3 = inlined_call_operand.vmem [shape: f32[512,128], index: 3, kind: input, shape index: {}]   ;;  %s1946_s4 = inlined_call_operand.vmem [shape: f32[2], index: 4, kind: input, shape index: {}]   ;;  %s1947_s5 = inlined_call_operand.vmem [shape: bf16[512,128], index: 5, kind: output, shape index: {}]  }
   0x1   :  { %s1643_s20 = smov 0  }
   0x2 LB: > { %s1216_s21 = sadd.s32 4294967295, %s1605_s20   ;;  %s28_s22 = sadd.s32 1, %s1601_s19  ;;  %s1605_s20 = sphi %s1643_s20, %s16_s20   ;;  %s1601_s19 = sphi %s1641_s19, %s1951_s19   ;;  %s1597_s18 = sphi %s1639_s18, %s1950_s18  }
   0x3   : > { %p30_p0 = scmp.ge.s32.totalorder %s28_s22, 2  ;;  %p1218_p1 = scmp.ge.s32.totalorder %s1605_s20, 1 }
   0x4   : > { %p188_p2 = scmp.lt.s32.totalorder %s1605_s20, 3  ;;  %p1664_p4 = scmp.eq.s32.totalorder %s1216_s21, 0 }
   0x5   : > { %s1953_s22 = smov (%p30_p0, %s28_s22), 0  ;;  %s214_s27 = sshll.u32 %s1946_s4, 4  ;;  %s215_s27 = int_to_ptr.vmem [resolvable:$true] %s214_s27 }
   0x6   : > { %p1660_p3 = pnand %p1218_p1, %p188_p2  ;;  %s1564_s28 = scalar_lea.vmem %s215_s27, 16 }
   0x7   : > { %p1565_p7 = scmp.ne.s32.totalorder %s215_s27, %s1564_s28  ;;  %p1572_p11 = scmp.lt.s32.totalorder %s215_s27, %s215_s27 }
   0x8   : > { %p1475_p5 = pneg %p1660_p3  ;;  %p1573_p12 = scmp.lt.s32.totalorder %s1564_s28, %s1564_s28 }
   0xa   : > { %p1476_p6 = pnand %p1664_p4, %p1475_p5  ;;  %p1574_p13 = por %p1573_p12, %p1572_p11 }
   0xc   : > { %p1566_p8 = pneg %p1476_p6 }
   0xe   : > { %p1567_p9 = pnand %p1566_p8, %p1565_p7 }
  0x10   : > { %p1568_p10 = pneg %p1567_p9 }
  0x12   : > { %p1575_p0 = pnand %p1574_p13, %p1568_p10 }
  0x14   : > { %1578 = shalt.err (!%p1575_p0)
}
  0x15   : > { %s1607_s29 = smov [#allocation2]   ;;  %249 = sbr.rel (%p1660_p3) target bundleno = 348 (0x15c), region = 40 }
  0x16   : > { %1478 = dma.vmem_to_smem (!%p1476_p6), %s215_s27, 16, %s1607_s29, [#allocation3]  }
  0x1c   : > { %1592 = dma.done.wait (%p1664_p4), [#allocation3], 16  }
  0x1d   : > { %1594 = vsyncadd (%p1664_p4), [#allocation3], 4294967280 }
  0x1e   : > { %255 = sfence }
  0x1f   : > { %v1507_v0 = vld [vmem:[%s1943_s1] sm:$0xff]   ;;  %v1608_v1 = vmov 0   ;;  %s1225_s7 = sshll.u32 %s1597_s18, 5  ;;  %v1508_v2 = vld [vmem:[%s1943_s1 + $0x8] sm:$0xff]   ;;  %v1509_v3 = vld [vmem:[%s1943_s1 + $0x10] sm:$0xff]   ;;  %vm585_vm0 = vcmask 130048  }
  0x20   : > { %634 = vmatprep.subr.bf16.mxu0 %v1608_v1  ;;  %1453 = vmatprep.subr.bf16.mxu1 %v1608_v1  ;;  %p298_p1 = scmp.lt.s32.totalorder %s1225_s7, 63  ;;  %v1510_v4 = vld [vmem:[%s1943_s1 + $0x18] sm:$0xff]   ;;  %v1511_v7 = vld [vmem:[%s1943_s1 + $0x20] sm:$0xff]   ;;  %v1512_v8 = vld [vmem:[%s1943_s1 + $0x28] sm:$0xff]   ;;  %s795_s6 = sld [smem:[#allocation2]] }
  0x21   : > { %635 = vmatpush1.bf16.msra.mxu0 %v1507_v0  ;;  %1462 = vmatpush1.bf16.msra.mxu1 %v1507_v0  ;;  %v1513_v9 = vld [vmem:[%s1943_s1 + $0x30] sm:$0xff]   ;;  %v1514_v10 = vld [vmem:[%s1943_s1 + $0x38] sm:$0xff]   ;;  %v1515_v11 = vld [vmem:[%s1943_s1 + $0x40] sm:$0xff]   ;;  %s1290_s8 = sld [smem:[#allocation2 + $0x1]] }
  0x22   : > { %636 = vmatprep.subr.bf16.mxu0 %v1608_v1  ;;  %1454 = vmatprep.subr.bf16.mxu1 %v1608_v1  ;;  %s1955_s7 = smov (!%p298_p1, %s1225_s7), 63  ;;  %v1777_v42 = vld [vmem:[%s1944_s2] ss:$0 sm:$0xff] }
  0x23   : > { %s1325_s12 = sshll.u32 %s1955_s7, 3 }
  0x24   : > { %s1699_s15 = scalar_lea.vmem %s1942_s0, %s1325_s12  ;;  %s1772_s11 = scalar_lea.vmem %s1945_s3, %s1325_s12 }
  0x25   : > { %637 = vmatpush1.bf16.msra.mxu0 %v1508_v2  ;;  %1463 = vmatpush1.bf16.msra.mxu1 %v1508_v2  ;;  %v1518_v5 = vld [vmem:[%s1699_s15 + $0x4] ss:$8 sps:$4 sm:$0xff]   ;;  %v1516_v12 = vld [vmem:[%s1699_s15] ss:$8 sps:$4 sm:$0xff]   ;;  %v1522_v14 = vld [vmem:[%s1699_s15 + $0x14] ss:$8 sps:$4 sm:$0xff]  }
  0x26   : > { %638 = vmatprep.subr.bf16.mxu0 %v1608_v1  ;;  %1455 = vmatprep.subr.bf16.mxu1 %v1608_v1  ;;  %v1521_v6 = vld [vmem:[%s1699_s15 + $0x84] ss:$8 sps:$4 sm:$0xff]   ;;  %v1519_v13 = vld [vmem:[%s1699_s15 + $0x80] ss:$8 sps:$4 sm:$0xff]   ;;  %v1524_v15 = vld [vmem:[%s1699_s15 + $0x94] ss:$8 sps:$4 sm:$0xff]   ;;  %v1780_v44 = vstv %s795_s6 }
  0x27   : > { %1274 = vmatprep.mubr.msk.bf16.mxu0 %vm585_vm0, %v1518_v5  ;;  %1282 = vmatprep.mubr.msk.bf16.mxu1 %vm585_vm0, %v1521_v6  ;;  %v1526_v16 = vld [vmem:[%s1699_s15 + $0x10] ss:$8 sps:$4 sm:$0xff]   ;;  %v1528_v18 = vld [vmem:[%s1699_s15 + $0x24] ss:$8 sps:$4 sm:$0xff]   ;;  %v1532_v20 = vld [vmem:[%s1699_s15 + $0x20] ss:$8 sps:$4 sm:$0xff]   ;;  %v1785_v49 = vstv %s1290_s8 }
  0x28   : > { %v1527_v17 = vld [vmem:[%s1699_s15 + $0x90] ss:$8 sps:$4 sm:$0xff]   ;;  %v1530_v19 = vld [vmem:[%s1699_s15 + $0xa4] ss:$8 sps:$4 sm:$0xff]   ;;  %v1533_v21 = vld [vmem:[%s1699_s15 + $0xa0] ss:$8 sps:$4 sm:$0xff]  }
  0x29   : > { %639 = vmatpush1.bf16.msra.mxu0 %v1509_v3  ;;  %1464 = vmatpush1.bf16.msra.mxu1 %v1509_v3  ;;  %v1534_v22 = vld [vmem:[%s1699_s15 + $0x34] ss:$8 sps:$4 sm:$0xff]   ;;  %v1538_v24 = vld [vmem:[%s1699_s15 + $0x30] ss:$8 sps:$4 sm:$0xff]   ;;  %v1540_v26 = vld [vmem:[%s1699_s15 + $0x44] ss:$8 sps:$4 sm:$0xff]  }
  0x2a   : > { %640 = vmatprep.subr.bf16.mxu0 %v1608_v1  ;;  %1456 = vmatprep.subr.bf16.mxu1 %v1608_v1  ;;  %v1536_v23 = vld [vmem:[%s1699_s15 + $0xb4] ss:$8 sps:$4 sm:$0xff]   ;;  %v1539_v25 = vld [vmem:[%s1699_s15 + $0xb0] ss:$8 sps:$4 sm:$0xff]   ;;  %v1542_v27 = vld [vmem:[%s1699_s15 + $0xc4] ss:$8 sps:$4 sm:$0xff]  }
  0x2b   : > { %v1544_v28 = vld [vmem:[%s1699_s15 + $0x40] ss:$8 sps:$4 sm:$0xff]   ;;  %v1546_v30 = vld [vmem:[%s1699_s15 + $0x54] ss:$8 sps:$4 sm:$0xff]   ;;  %v1550_v32 = vld [vmem:[%s1699_s15 + $0x50] ss:$8 sps:$4 sm:$0xff]  }
  0x2c   : > { %v1545_v29 = vld [vmem:[%s1699_s15 + $0xc0] ss:$8 sps:$4 sm:$0xff]   ;;  %v1548_v31 = vld [vmem:[%s1699_s15 + $0xd4] ss:$8 sps:$4 sm:$0xff]   ;;  %v1551_v33 = vld [vmem:[%s1699_s15 + $0xd0] ss:$8 sps:$4 sm:$0xff]  }
  0x2d   : > { %641 = vmatpush1.bf16.msra.mxu0 %v1510_v4  ;;  %1465 = vmatpush1.bf16.msra.mxu1 %v1510_v4  ;;  %v1552_v34 = vld [vmem:[%s1699_s15 + $0x64] ss:$8 sps:$4 sm:$0xff]   ;;  %v1556_v36 = vld [vmem:[%s1699_s15 + $0x60] ss:$8 sps:$4 sm:$0xff]   ;;  %v1558_v38 = vld [vmem:[%s1699_s15 + $0x74] ss:$8 sps:$4 sm:$0xff]  }
  0x2e   : > { %642 = vmatprep.subr.bf16.mxu0 %v1608_v1  ;;  %1457 = vmatprep.subr.bf16.mxu1 %v1608_v1  ;;  %v1554_v35 = vld [vmem:[%s1699_s15 + $0xe4] ss:$8 sps:$4 sm:$0xff]   ;;  %v1557_v37 = vld [vmem:[%s1699_s15 + $0xe0] ss:$8 sps:$4 sm:$0xff]   ;;  %v1560_v39 = vld [vmem:[%s1699_s15 + $0xf4] ss:$8 sps:$4 sm:$0xff]  }
  0x2f   : > { %v1562_v40 = vld [vmem:[%s1699_s15 + $0x70] ss:$8 sps:$4 sm:$0xff]   ;;  %v796_v43 = vld [vmem:[%s1772_s11] sm:$0xff]  ;;  %v797_v46 = vld [vmem:[%s1772_s11 + $0x8] sm:$0xff]  ;;  %s1231_s12 = sshll.u32 %s1955_s7, 2 }
  0x30   : > { %v1563_v41 = vld [vmem:[%s1699_s15 + $0xf0] ss:$8 sps:$4 sm:$0xff]   ;;  %v812_v45 = vld [vmem:[%s1772_s11 + $0x80] sm:$0xff]  ;;  %v813_v47 = vld [vmem:[%s1772_s11 + $0x88] sm:$0xff]  ;;  %v829_v52 = vmul.f32 %v1780_v44, %v796_v43  ;;  %v830_v58 = vmul.f32 %v1780_v44, %v797_v46  ;;  %s1807_s17 = scalar_lea.vmem %s1947_s5, %s1231_s12 }
  0x31   : > { %643 = vmatpush1.bf16.msra.mxu0 %v1511_v7  ;;  %1466 = vmatpush1.bf16.msra.mxu1 %v1511_v7  ;;  %v845_v54 = vmul.f32 %v1780_v44, %v812_v45  ;;  %v846_v60 = vmul.f32 %v1780_v44, %v813_v47  ;;  %v798_v7 = vld [vmem:[%s1772_s11 + $0x10] sm:$0xff]  ;;  %v817_v43 = vld [vmem:[%s1772_s11 + $0xa8] sm:$0xff] }
  0x32   : > { %644 = vmatprep.subr.bf16.mxu0 %v1608_v1  ;;  %1458 = vmatprep.subr.bf16.mxu1 %v1608_v1 }
  0x35   : > { %645 = vmatpush1.bf16.msra.mxu0 %v1512_v8  ;;  %1467 = vmatpush1.bf16.msra.mxu1 %v1512_v8  ;;  %v814_v8 = vld [vmem:[%s1772_s11 + $0x90] sm:$0xff] }
  0x36   : > { %646 = vmatprep.subr.bf16.mxu0 %v1608_v1  ;;  %1459 = vmatprep.subr.bf16.mxu1 %v1608_v1 }
  0x39   : > { %647 = vmatpush1.bf16.msra.mxu0 %v1513_v9  ;;  %1468 = vmatpush1.bf16.msra.mxu1 %v1513_v9 }
  0x3a   : > { %648 = vmatprep.subr.bf16.mxu0 %v1608_v1  ;;  %1460 = vmatprep.subr.bf16.mxu1 %v1608_v1 }
  0x3d   : > { %649 = vmatpush1.bf16.msra.mxu0 %v1514_v10  ;;  %1469 = vmatpush1.bf16.msra.mxu1 %v1514_v10 }
  0x3e   : > { %650 = vmatprep.subr.bf16.mxu0 %v1608_v1  ;;  %1461 = vmatprep.subr.bf16.mxu1 %v1608_v1 }
  0x41   : > { %651 = vmatpush1.bf16.msra.mxu0 %v1515_v11  ;;  %1470 = vmatpush1.bf16.msra.mxu1 %v1515_v11  ;;  %v799_v11 = vld [vmem:[%s1772_s11 + $0x18] sm:$0xff] }
  0x44   : > { %667 = vmatmul.mubr.bf16.vlgmr.msra.gmra.mrb[0].mxu0 %v1516_v12  ;;  %731 = vmatmul.mubr.bf16.vlgmr.msra.gmra.mrb[0].mxu1 %v1519_v13  ;;  %v815_v12 = vld [vmem:[%s1772_s11 + $0x98] sm:$0xff] }
  0x45   : > { %1275 = vmatprep.mubr.msk.bf16.mxu0 %vm585_vm0, %v1522_v14  ;;  %1283 = vmatprep.mubr.msk.bf16.mxu1 %vm585_vm0, %v1524_v15  ;;  %v831_v14 = vmul.f32 %v1780_v44, %v798_v7  ;;  %v818_v7 = vld [vmem:[%s1772_s11 + $0xb0] sm:$0xff] }
  0x4c   : > { %675 = vmatmul.mubr.bf16.gmra.mrb[4].mxu0 %v1526_v16  ;;  %739 = vmatmul.mubr.bf16.gmra.mrb[4].mxu1 %v1527_v17  ;;  %v847_v16 = vmul.f32 %v1780_v44, %v814_v8 }
  0x4d   : > { %1276 = vmatprep.mubr.msk.bf16.mxu0 %vm585_vm0, %v1528_v18  ;;  %1284 = vmatprep.mubr.msk.bf16.mxu1 %vm585_vm0, %v1530_v19 }
  0x54   : > { %683 = vmatmul.mubr.bf16.gmra.mrb[8].mxu0 %v1532_v20  ;;  %747 = vmatmul.mubr.bf16.gmra.mrb[8].mxu1 %v1533_v21 }
  0x55   : > { %1277 = vmatprep.mubr.msk.bf16.mxu0 %vm585_vm0, %v1534_v22  ;;  %1285 = vmatprep.mubr.msk.bf16.mxu1 %vm585_vm0, %v1536_v23 }
  0x5c   : > { %691 = vmatmul.mubr.bf16.gmra.mrb[12].mxu0 %v1538_v24  ;;  %755 = vmatmul.mubr.bf16.gmra.mrb[12].mxu1 %v1539_v25  ;;  %v832_v24 = vmul.f32 %v1780_v44, %v799_v11  ;;  %v819_v11 = vld [vmem:[%s1772_s11 + $0xb8] sm:$0xff] }
  0x5d   : > { %1278 = vmatprep.mubr.msk.bf16.mxu0 %vm585_vm0, %v1540_v26  ;;  %1286 = vmatprep.mubr.msk.bf16.mxu1 %vm585_vm0, %v1542_v27  ;;  %v848_v26 = vmul.f32 %v1780_v44, %v815_v12 }
  0x64   : > { %699 = vmatmul.mubr.bf16.gmra.mrb[16].mxu0 %v1544_v28  ;;  %763 = vmatmul.mubr.bf16.gmra.mrb[16].mxu1 %v1545_v29 }
  0x65   : > { %1279 = vmatprep.mubr.msk.bf16.mxu0 %vm585_vm0, %v1546_v30  ;;  %1287 = vmatprep.mubr.msk.bf16.mxu1 %vm585_vm0, %v1548_v31 }
  0x6c   : > { %707 = vmatmul.mubr.bf16.gmra.mrb[20].mxu0 %v1550_v32  ;;  %771 = vmatmul.mubr.bf16.gmra.mrb[20].mxu1 %v1551_v33 }
  0x6d   : > { %1280 = vmatprep.mubr.msk.bf16.mxu0 %vm585_vm0, %v1552_v34  ;;  %1288 = vmatprep.mubr.msk.bf16.mxu1 %vm585_vm0, %v1554_v35 }
  0x74   : > { %715 = vmatmul.mubr.bf16.gmra.mrb[24].mxu0 %v1556_v36  ;;  %779 = vmatmul.mubr.bf16.gmra.mrb[24].mxu1 %v1557_v37  ;;  %v800_v37 = vld [vmem:[%s1772_s11 + $0x20] sm:$0xff] }
  0x75   : > { %1281 = vmatprep.mubr.msk.bf16.mxu0 %vm585_vm0, %v1558_v38  ;;  %1289 = vmatprep.mubr.msk.bf16.mxu1 %vm585_vm0, %v1560_v39  ;;  %v816_v38 = vld [vmem:[%s1772_s11 + $0xa0] sm:$0xff]  ;;  %v833_v46 = vmul.f32 %v1780_v44, %v800_v37 }
  0x76   : > { %v820_v37 = vld [vmem:[%s1772_s11 + $0xc0] sm:$0xff] }
  0x7c   : > { %723 = vmatmul.mubr.bf16.gmra.mrb[28].mxu0 %v1562_v40  ;;  %787 = vmatmul.mubr.bf16.gmra.mrb[28].mxu1 %v1563_v41  ;;  %v801_v41 = vld [vmem:[%s1772_s11 + $0x28] sm:$0xff] }
 0x117   : > { %v668_v48 = vpop.f32.mrb[0].mxu0  ;;  %v732_v50 = vpop.f32.mrb[0].mxu1 }
 0x118   : > { %v669_v51 = vadd.f32 %v1777_v42, %v668_v48  ;;  %v733_v53 = vadd.f32 %v1777_v42, %v732_v50  ;;  %v670_v55 = vpop.f32.mrb[1].mxu0  ;;  %v734_v56 = vpop.f32.mrb[1].mxu1  ;;  %v849_v48 = vmul.f32 %v1780_v44, %v816_v38 }
 0x119   : > { %v671_v57 = vpop.f32.mrb[2].mxu0  ;;  %v735_v59 = vpop.f32.mrb[2].mxu1 }
 0x11a   : > { %v863_v61 = vmul.f32 %v1785_v49, %v669_v51  ;;  %v879_v62 = vmul.f32 %v1785_v49, %v733_v53  ;;  %v672_v63 = vadd.f32 %v1777_v42, %v671_v57  ;;  %v736_v0 = vadd.f32 %v1777_v42, %v735_v59  ;;  %v673_v1 = vpop.f32.mrb[3].mxu0  ;;  %v737_v2 = vpop.f32.mrb[3].mxu1 }
 0x11b   : > { %v834_v57 = vmul.f32 %v1780_v44, %v801_v41  ;;  %v850_v59 = vmul.f32 %v1780_v44, %v817_v43  ;;  %v821_v41 = vld [vmem:[%s1772_s11 + $0xc8] sm:$0xff] }
 0x11c   : > { %v895_v3 = vadd.f32 %v863_v61, %v829_v52  ;;  %v911_v4 = vadd.f32 %v879_v62, %v845_v54  ;;  %v864_v5 = vmul.f32 %v1785_v49, %v672_v63  ;;  %v880_v6 = vmul.f32 %v1785_v49, %v736_v0 }
 0x11e   : > { %v896_v9 = vadd.f32 %v864_v5, %v830_v58  ;;  %v912_v10 = vadd.f32 %v880_v6, %v846_v60  ;;  %v802_v6 = vld [vmem:[%s1772_s11 + $0x30] sm:$0xff] }
 0x11f   : > { %v676_v13 = vpop.f32.mrb[4].mxu0  ;;  %v740_v15 = vpop.f32.mrb[4].mxu1 }
 0x120   : > { %v1361_v17 = vpack.c.bf16 %v896_v9, %v895_v3  ;;  %v1401_v18 = vpack.c.bf16 %v912_v10, %v911_v4  ;;  %v677_v19 = vadd.f32 %v1777_v42, %v676_v13  ;;  %v741_v20 = vadd.f32 %v1777_v42, %v740_v15  ;;  %v678_v21 = vpop.f32.mrb[5].mxu0  ;;  %v742_v22 = vpop.f32.mrb[5].mxu1  ;;  %v803_v10 = vld [vmem:[%s1772_s11 + $0x38] sm:$0xff] }
 0x121   : > { %v679_v23 = vpop.f32.mrb[6].mxu0  ;;  %v743_v25 = vpop.f32.mrb[6].mxu1  ;;  %v835_v13 = vmul.f32 %v1780_v44, %v802_v6  ;;  %v851_v15 = vmul.f32 %v1780_v44, %v818_v7  ;;  %v822_v6 = vld [vmem:[%s1772_s11 + $0xd0] sm:$0xff] }
 0x122   : > { %1362 = vst [vmem:[%s1807_s17] sm:$0xff] %v1361_v17   ;;  %1445 = vst [vmem:[%s1807_s17 + $0x40] sm:$0xff] %v1401_v18   ;;  %v865_v27 = vmul.f32 %v1785_v49, %v677_v19  ;;  %v881_v28 = vmul.f32 %v1785_v49, %v741_v20  ;;  %v680_v29 = vadd.f32 %v1777_v42, %v679_v23  ;;  %v681_v31 = vpop.f32.mrb[7].mxu0  ;;  %v745_v32 = vpop.f32.mrb[7].mxu1 }
 0x123   : > { %v744_v30 = vadd.f32 %v1777_v42, %v743_v25  ;;  %v836_v23 = vmul.f32 %v1780_v44, %v803_v10  ;;  %v852_v25 = vmul.f32 %v1780_v44, %v819_v11  ;;  %v823_v10 = vld [vmem:[%s1772_s11 + $0xd8] sm:$0xff] }
 0x124   : > { %v897_v33 = vadd.f32 %v865_v27, %v831_v14  ;;  %v913_v34 = vadd.f32 %v881_v28, %v847_v16  ;;  %v866_v35 = vmul.f32 %v1785_v49, %v680_v29 }
 0x125   : > { %v882_v36 = vmul.f32 %v1785_v49, %v744_v30 }
 0x126   : > { %v898_v39 = vadd.f32 %v866_v35, %v832_v24 }
 0x127   : > { %v914_v40 = vadd.f32 %v882_v36, %v848_v26  ;;  %v684_v45 = vpop.f32.mrb[8].mxu0  ;;  %v748_v47 = vpop.f32.mrb[8].mxu1  ;;  %v804_v36 = vld [vmem:[%s1772_s11 + $0x40] sm:$0xff] }
 0x128   : > { %v1366_v50 = vpack.c.bf16 %v898_v39, %v897_v33  ;;  %v685_v52 = vadd.f32 %v1777_v42, %v684_v45  ;;  %v749_v53 = vadd.f32 %v1777_v42, %v748_v47  ;;  %v686_v54 = vpop.f32.mrb[9].mxu0  ;;  %v750_v55 = vpop.f32.mrb[9].mxu1  ;;  %v837_v45 = vmul.f32 %v1780_v44, %v804_v36  ;;  %v824_v36 = vld [vmem:[%s1772_s11 + $0xe0] sm:$0xff] }
 0x129   : > { %v1406_v51 = vpack.c.bf16 %v914_v40, %v913_v34  ;;  %v687_v56 = vpop.f32.mrb[10].mxu0  ;;  %v751_v58 = vpop.f32.mrb[10].mxu1  ;;  %v805_v40 = vld [vmem:[%s1772_s11 + $0x48] sm:$0xff]  ;;  %v853_v47 = vmul.f32 %v1780_v44, %v820_v37 }
 0x12a   : > { %1438 = vst [vmem:[%s1807_s17 + $0x8] sm:$0xff] %v1366_v50   ;;  %v867_v60 = vmul.f32 %v1785_v49, %v685_v52  ;;  %v883_v61 = vmul.f32 %v1785_v49, %v749_v53  ;;  %v688_v62 = vadd.f32 %v1777_v42, %v687_v56  ;;  %v752_v63 = vadd.f32 %v1777_v42, %v751_v58  ;;  %v689_v0 = vpop.f32.mrb[11].mxu0  ;;  %v753_v1 = vpop.f32.mrb[11].mxu1 }
 0x12b   : > { %1446 = vst [vmem:[%s1807_s17 + $0x48] sm:$0xff] %v1406_v51   ;;  %v838_v56 = vmul.f32 %v1780_v44, %v805_v40  ;;  %v854_v58 = vmul.f32 %v1780_v44, %v821_v41  ;;  %v825_v40 = vld [vmem:[%s1772_s11 + $0xe8] sm:$0xff] }
 0x12c   : > { %v899_v2 = vadd.f32 %v867_v60, %v833_v46  ;;  %v915_v3 = vadd.f32 %v883_v61, %v849_v48  ;;  %v868_v4 = vmul.f32 %v1785_v49, %v688_v62  ;;  %v884_v5 = vmul.f32 %v1785_v49, %v752_v63 }
 0x12e   : > { %v900_v8 = vadd.f32 %v868_v4, %v834_v57  ;;  %v916_v9 = vadd.f32 %v884_v5, %v850_v59  ;;  %v806_v5 = vld [vmem:[%s1772_s11 + $0x50] sm:$0xff] }
 0x12f   : > { %v692_v12 = vpop.f32.mrb[12].mxu0  ;;  %v756_v14 = vpop.f32.mrb[12].mxu1 }
 0x130   : > { %v1371_v16 = vpack.c.bf16 %v900_v8, %v899_v2  ;;  %v1411_v17 = vpack.c.bf16 %v916_v9, %v915_v3  ;;  %v693_v18 = vadd.f32 %v1777_v42, %v692_v12  ;;  %v757_v19 = vadd.f32 %v1777_v42, %v756_v14  ;;  %v694_v20 = vpop.f32.mrb[13].mxu0  ;;  %v758_v21 = vpop.f32.mrb[13].mxu1  ;;  %v807_v9 = vld [vmem:[%s1772_s11 + $0x58] sm:$0xff] }
 0x131   : > { %v695_v22 = vpop.f32.mrb[14].mxu0  ;;  %v759_v24 = vpop.f32.mrb[14].mxu1  ;;  %v839_v12 = vmul.f32 %v1780_v44, %v806_v5  ;;  %v855_v14 = vmul.f32 %v1780_v44, %v822_v6  ;;  %v826_v5 = vld [vmem:[%s1772_s11 + $0xf0] sm:$0xff] }
 0x132   : > { %1439 = vst [vmem:[%s1807_s17 + $0x10] sm:$0xff] %v1371_v16   ;;  %1447 = vst [vmem:[%s1807_s17 + $0x50] sm:$0xff] %v1411_v17   ;;  %v869_v26 = vmul.f32 %v1785_v49, %v693_v18  ;;  %v885_v27 = vmul.f32 %v1785_v49, %v757_v19  ;;  %v696_v28 = vadd.f32 %v1777_v42, %v695_v22  ;;  %v697_v30 = vpop.f32.mrb[15].mxu0  ;;  %v761_v31 = vpop.f32.mrb[15].mxu1 }
 0x133   : > { %v760_v29 = vadd.f32 %v1777_v42, %v759_v24  ;;  %v840_v22 = vmul.f32 %v1780_v44, %v807_v9  ;;  %v856_v24 = vmul.f32 %v1780_v44, %v823_v10  ;;  %v827_v9 = vld [vmem:[%s1772_s11 + $0xf8] sm:$0xff] }
 0x134   : > { %v901_v32 = vadd.f32 %v869_v26, %v835_v13  ;;  %v917_v33 = vadd.f32 %v885_v27, %v851_v15  ;;  %v870_v34 = vmul.f32 %v1785_v49, %v696_v28 }
 0x135   : > { %v886_v35 = vmul.f32 %v1785_v49, %v760_v29 }
 0x136   : > { %v902_v38 = vadd.f32 %v870_v34, %v836_v23 }
 0x137   : > { %v918_v39 = vadd.f32 %v886_v35, %v852_v25  ;;  %v700_v43 = vpop.f32.mrb[16].mxu0  ;;  %v764_v46 = vpop.f32.mrb[16].mxu1  ;;  %v808_v35 = vld [vmem:[%s1772_s11 + $0x60] sm:$0xff] }
 0x138   : > { %v1376_v48 = vpack.c.bf16 %v902_v38, %v901_v32  ;;  %v701_v51 = vadd.f32 %v1777_v42, %v700_v43  ;;  %v765_v52 = vadd.f32 %v1777_v42, %v764_v46  ;;  %v702_v53 = vpop.f32.mrb[17].mxu0  ;;  %v766_v54 = vpop.f32.mrb[17].mxu1  ;;  %v841_v43 = vmul.f32 %v1780_v44, %v808_v35 }
 0x139   : > { %v1416_v50 = vpack.c.bf16 %v918_v39, %v917_v33  ;;  %v703_v55 = vpop.f32.mrb[18].mxu0  ;;  %v767_v57 = vpop.f32.mrb[18].mxu1  ;;  %v809_v39 = vld [vmem:[%s1772_s11 + $0x68] sm:$0xff]  ;;  %v857_v46 = vmul.f32 %v1780_v44, %v824_v36 }
 0x13a   : > { %1440 = vst [vmem:[%s1807_s17 + $0x18] sm:$0xff] %v1376_v48   ;;  %v871_v59 = vmul.f32 %v1785_v49, %v701_v51  ;;  %v887_v60 = vmul.f32 %v1785_v49, %v765_v52  ;;  %v704_v61 = vadd.f32 %v1777_v42, %v703_v55  ;;  %v768_v62 = vadd.f32 %v1777_v42, %v767_v57  ;;  %v705_v63 = vpop.f32.mrb[19].mxu0  ;;  %v769_v0 = vpop.f32.mrb[19].mxu1 }
 0x13b   : > { %1448 = vst [vmem:[%s1807_s17 + $0x58] sm:$0xff] %v1416_v50   ;;  %v842_v55 = vmul.f32 %v1780_v44, %v809_v39  ;;  %v858_v57 = vmul.f32 %v1780_v44, %v825_v40 }
 0x13c   : > { %v903_v1 = vadd.f32 %v871_v59, %v837_v45  ;;  %v919_v2 = vadd.f32 %v887_v60, %v853_v47  ;;  %v872_v3 = vmul.f32 %v1785_v49, %v704_v61  ;;  %v888_v4 = vmul.f32 %v1785_v49, %v768_v62 }
 0x13e   : > { %v904_v7 = vadd.f32 %v872_v3, %v838_v56  ;;  %v920_v8 = vadd.f32 %v888_v4, %v854_v58  ;;  %v810_v4 = vld [vmem:[%s1772_s11 + $0x70] sm:$0xff] }
 0x13f   : > { %v708_v11 = vpop.f32.mrb[20].mxu0  ;;  %v772_v13 = vpop.f32.mrb[20].mxu1 }
 0x140   : > { %v1381_v15 = vpack.c.bf16 %v904_v7, %v903_v1  ;;  %v1421_v16 = vpack.c.bf16 %v920_v8, %v919_v2  ;;  %v709_v17 = vadd.f32 %v1777_v42, %v708_v11  ;;  %v773_v18 = vadd.f32 %v1777_v42, %v772_v13  ;;  %v710_v19 = vpop.f32.mrb[21].mxu0  ;;  %v774_v20 = vpop.f32.mrb[21].mxu1  ;;  %v811_v8 = vld [vmem:[%s1772_s11 + $0x78] sm:$0xff] }
 0x141   : > { %v711_v21 = vpop.f32.mrb[22].mxu0  ;;  %v775_v23 = vpop.f32.mrb[22].mxu1  ;;  %v843_v11 = vmul.f32 %v1780_v44, %v810_v4  ;;  %v859_v13 = vmul.f32 %v1780_v44, %v826_v5 }
 0x142   : > { %1441 = vst [vmem:[%s1807_s17 + $0x20] sm:$0xff] %v1381_v15   ;;  %1449 = vst [vmem:[%s1807_s17 + $0x60] sm:$0xff] %v1421_v16   ;;  %v873_v25 = vmul.f32 %v1785_v49, %v709_v17  ;;  %v889_v26 = vmul.f32 %v1785_v49, %v773_v18  ;;  %v712_v27 = vadd.f32 %v1777_v42, %v711_v21  ;;  %v713_v29 = vpop.f32.mrb[23].mxu0  ;;  %v777_v30 = vpop.f32.mrb[23].mxu1 }
 0x143   : > { %v776_v28 = vadd.f32 %v1777_v42, %v775_v23  ;;  %v844_v21 = vmul.f32 %v1780_v44, %v811_v8  ;;  %v860_v23 = vmul.f32 %v1780_v44, %v827_v9 }
 0x144   : > { %v905_v31 = vadd.f32 %v873_v25, %v839_v12  ;;  %v921_v32 = vadd.f32 %v889_v26, %v855_v14  ;;  %v874_v33 = vmul.f32 %v1785_v49, %v712_v27 }
 0x145   : > { %v890_v34 = vmul.f32 %v1785_v49, %v776_v28 }
 0x146   : > { %v906_v37 = vadd.f32 %v874_v33, %v840_v22 }
 0x147   : > { %v922_v38 = vadd.f32 %v890_v34, %v856_v24  ;;  %v716_v41 = vpop.f32.mrb[24].mxu0  ;;  %v780_v45 = vpop.f32.mrb[24].mxu1 }
 0x148   : > { %v1386_v47 = vpack.c.bf16 %v906_v37, %v905_v31  ;;  %v717_v50 = vadd.f32 %v1777_v42, %v716_v41  ;;  %v781_v51 = vadd.f32 %v1777_v42, %v780_v45  ;;  %v718_v52 = vpop.f32.mrb[25].mxu0  ;;  %v782_v53 = vpop.f32.mrb[25].mxu1 }
 0x149   : > { %v1426_v48 = vpack.c.bf16 %v922_v38, %v921_v32  ;;  %v719_v54 = vpop.f32.mrb[26].mxu0  ;;  %v783_v56 = vpop.f32.mrb[26].mxu1 }
 0x14a   : > { %1442 = vst [vmem:[%s1807_s17 + $0x28] sm:$0xff] %v1386_v47   ;;  %v875_v58 = vmul.f32 %v1785_v49, %v717_v50  ;;  %v891_v59 = vmul.f32 %v1785_v49, %v781_v51  ;;  %v720_v60 = vadd.f32 %v1777_v42, %v719_v54  ;;  %v784_v61 = vadd.f32 %v1777_v42, %v783_v56  ;;  %v721_v62 = vpop.f32.mrb[27].mxu0  ;;  %v785_v63 = vpop.f32.mrb[27].mxu1 }
 0x14b   : > { %1450 = vst [vmem:[%s1807_s17 + $0x68] sm:$0xff] %v1426_v48  }
 0x14c   : > { %v907_v0 = vadd.f32 %v875_v58, %v841_v43  ;;  %v923_v1 = vadd.f32 %v891_v59, %v857_v46  ;;  %v876_v2 = vmul.f32 %v1785_v49, %v720_v60  ;;  %v892_v3 = vmul.f32 %v1785_v49, %v784_v61 }
 0x14e   : > { %v908_v6 = vadd.f32 %v876_v2, %v842_v55  ;;  %v924_v7 = vadd.f32 %v892_v3, %v858_v57 }
 0x14f   : > { %v724_v10 = vpop.f32.mrb[28].mxu0  ;;  %v788_v12 = vpop.f32.mrb[28].mxu1 }
 0x150   : > { %v1391_v14 = vpack.c.bf16 %v908_v6, %v907_v0  ;;  %v1431_v15 = vpack.c.bf16 %v924_v7, %v923_v1  ;;  %v725_v16 = vadd.f32 %v1777_v42, %v724_v10  ;;  %v789_v17 = vadd.f32 %v1777_v42, %v788_v12  ;;  %v726_v18 = vpop.f32.mrb[29].mxu0  ;;  %v790_v19 = vpop.f32.mrb[29].mxu1 }
 0x151   : > { %v727_v20 = vpop.f32.mrb[30].mxu0  ;;  %v791_v22 = vpop.f32.mrb[30].mxu1 }
 0x152   : > { %1443 = vst [vmem:[%s1807_s17 + $0x30] sm:$0xff] %v1391_v14   ;;  %1451 = vst [vmem:[%s1807_s17 + $0x70] sm:$0xff] %v1431_v15   ;;  %v877_v24 = vmul.f32 %v1785_v49, %v725_v16  ;;  %v893_v25 = vmul.f32 %v1785_v49, %v789_v17  ;;  %v728_v26 = vadd.f32 %v1777_v42, %v727_v20  ;;  %v729_v28 = vpop.f32.mrb[31].mxu0  ;;  %v793_v29 = vpop.f32.mrb[31].mxu1 }
 0x153   : > { %v792_v27 = vadd.f32 %v1777_v42, %v791_v22 }
 0x154   : > { %v909_v30 = vadd.f32 %v877_v24, %v843_v11  ;;  %v925_v31 = vadd.f32 %v893_v25, %v859_v13  ;;  %v878_v32 = vmul.f32 %v1785_v49, %v728_v26 }
 0x155   : > { %v894_v44 = vmul.f32 %v1785_v49, %v792_v27 }
 0x156   : > { %v910_v33 = vadd.f32 %v878_v32, %v844_v21 }
 0x157   : > { %v926_v34 = vadd.f32 %v894_v44, %v860_v23 }
 0x158   : > { %v1396_v35 = vpack.c.bf16 %v910_v33, %v909_v30 }
 0x159   : > { %v1436_v36 = vpack.c.bf16 %v926_v34, %v925_v31 }
 0x15a   : > { %1444 = vst [vmem:[%s1807_s17 + $0x38] sm:$0xff] %v1396_v35  }
 0x15b   : > { %1452 = vst [vmem:[%s1807_s17 + $0x78] sm:$0xff] %v1436_v36  }
 0x15c PF: > { %s16_s20 = sadd.s32 1, %s1605_s20   ;;  %s1950_s18 = smov %s1601_s19 }
 0x15d   : > { %p13_p2 = scmp.ge.s32.totalorder %s16_s20, 4   ;;  %s1951_s19 = smov %s1953_s22 }
 0x15f   :  { %15 = sbr.rel (!%p13_p2) target bundleno = 2 (0x2), region = 84 }
 0x166   :  { %1115 = vsyncpa [#allocation3], 1 }
 0x167   :  { %1117 = vsyncpa [#allocation3 + $0x1], 1 }

// kernel: one_module_forward.9
= control target key start
LH: loop header
LB: loop body
LE: loop exit
PB: predicated region body
PF: predicated region fallthrough
CT: control target
= control target key end

     0   :  { %10 = vsyncpa [#allocation3], 0  ;;  %s1750_s18 = smov 0   ;;  %s1752_s19 = smov 0   ;;  %s2037_s0 = inlined_call_operand.vmem [shape: bf16[512,144], index: 0, kind: input, shape index: {}]   ;;  %s2038_s1 = inlined_call_operand.vmem [shape: bf16[144,128], index: 1, kind: input, shape index: {}]   ;;  %s2039_s2 = inlined_call_operand.vmem [shape: f32[1,128], index: 2, kind: input, shape index: {}]   ;;  %s2040_s3 = inlined_call_operand.vmem [shape: bf16[512,128], index: 3, kind: input, shape index: {}]   ;;  %s2041_s4 = inlined_call_operand.vmem [shape: f32[2], index: 4, kind: input, shape index: {}]   ;;  %s2042_s5 = inlined_call_operand.vmem [shape: bf16[512,128], index: 5, kind: output, shape index: {}]  }
   0x1   :  { %s1754_s20 = smov 0  }
   0x2 LB: > { %s1248_s21 = sadd.s32 4294967295, %s1716_s20   ;;  %s28_s22 = sadd.s32 1, %s1712_s19  ;;  %s1716_s20 = sphi %s1754_s20, %s16_s20   ;;  %s1712_s19 = sphi %s1752_s19, %s2046_s19   ;;  %s1708_s18 = sphi %s1750_s18, %s2045_s18  }
   0x3   : > { %p30_p0 = scmp.ge.s32.totalorder %s28_s22, 2  ;;  %p1250_p1 = scmp.ge.s32.totalorder %s1716_s20, 1 }
   0x4   : > { %p188_p2 = scmp.lt.s32.totalorder %s1716_s20, 3  ;;  %p1775_p4 = scmp.eq.s32.totalorder %s1248_s21, 0 }
   0x5   : > { %s2048_s22 = smov (%p30_p0, %s28_s22), 0  ;;  %s214_s27 = sshll.u32 %s2041_s4, 4  ;;  %s215_s27 = int_to_ptr.vmem [resolvable:$true] %s214_s27 }
   0x6   : > { %p1771_p3 = pnand %p1250_p1, %p188_p2  ;;  %s1675_s28 = scalar_lea.vmem %s215_s27, 16 }
   0x7   : > { %p1676_p7 = scmp.ne.s32.totalorder %s215_s27, %s1675_s28  ;;  %p1683_p11 = scmp.lt.s32.totalorder %s215_s27, %s215_s27 }
   0x8   : > { %p1586_p5 = pneg %p1771_p3  ;;  %p1684_p12 = scmp.lt.s32.totalorder %s1675_s28, %s1675_s28 }
   0xa   : > { %p1587_p6 = pnand %p1775_p4, %p1586_p5  ;;  %p1685_p13 = por %p1684_p12, %p1683_p11 }
   0xc   : > { %p1677_p8 = pneg %p1587_p6 }
   0xe   : > { %p1678_p9 = pnand %p1677_p8, %p1676_p7 }
  0x10   : > { %p1679_p10 = pneg %p1678_p9 }
  0x12   : > { %p1686_p0 = pnand %p1685_p13, %p1679_p10 }
  0x14   : > { %1689 = shalt.err (!%p1686_p0)
}
  0x15   : > { %s1718_s29 = smov [#allocation2]   ;;  %249 = sbr.rel (%p1771_p3) target bundleno = 348 (0x15c), region = 40 }
  0x16   : > { %1589 = dma.vmem_to_smem (!%p1587_p6), %s215_s27, 16, %s1718_s29, [#allocation3]  }
  0x1c   : > { %1703 = dma.done.wait (%p1775_p4), [#allocation3], 16  }
  0x1d   : > { %1705 = vsyncadd (%p1775_p4), [#allocation3], 4294967280 }
  0x1e   : > { %255 = sfence }
  0x1f   : > { %v1618_v0 = vld [vmem:[%s2038_s1] sm:$0xff]   ;;  %v1719_v1 = vmov 0   ;;  %s1257_s7 = sshll.u32 %s1708_s18, 5  ;;  %v1619_v2 = vld [vmem:[%s2038_s1 + $0x8] sm:$0xff]   ;;  %v1620_v3 = vld [vmem:[%s2038_s1 + $0x10] sm:$0xff]   ;;  %vm585_vm0 = vcmask 130048  }
  0x20   : > { %634 = vmatprep.subr.bf16.mxu0 %v1719_v1  ;;  %1564 = vmatprep.subr.bf16.mxu1 %v1719_v1  ;;  %p298_p1 = scmp.lt.s32.totalorder %s1257_s7, 63  ;;  %v1621_v4 = vld [vmem:[%s2038_s1 + $0x18] sm:$0xff]   ;;  %v1622_v7 = vld [vmem:[%s2038_s1 + $0x20] sm:$0xff]   ;;  %v1623_v8 = vld [vmem:[%s2038_s1 + $0x28] sm:$0xff]   ;;  %s795_s8 = sld [smem:[#allocation2]] }
  0x21   : > { %635 = vmatpush1.bf16.msra.mxu0 %v1618_v0  ;;  %1573 = vmatpush1.bf16.msra.mxu1 %v1618_v0  ;;  %v1624_v9 = vld [vmem:[%s2038_s1 + $0x30] sm:$0xff]   ;;  %v1625_v10 = vld [vmem:[%s2038_s1 + $0x38] sm:$0xff]   ;;  %v1626_v11 = vld [vmem:[%s2038_s1 + $0x40] sm:$0xff]  }
  0x22   : > { %636 = vmatprep.subr.bf16.mxu0 %v1719_v1  ;;  %1565 = vmatprep.subr.bf16.mxu1 %v1719_v1  ;;  %s2050_s7 = smov (!%p298_p1, %s1257_s7), 63  ;;  %v1889_v46 = vld [vmem:[%s2039_s2] ss:$0 sm:$0xff] }
  0x23   : > { %s1357_s12 = sshll.u32 %s2050_s7, 3  ;;  %s1261_s6 = sshll.u32 %s2050_s7, 2 }
  0x24   : > { %s1808_s15 = scalar_lea.vmem %s2037_s0, %s1357_s12  ;;  %s1882_s11 = scalar_lea.vmem %s2040_s3, %s1261_s6 }
  0x25   : > { %637 = vmatpush1.bf16.msra.mxu0 %v1619_v2  ;;  %1574 = vmatpush1.bf16.msra.mxu1 %v1619_v2  ;;  %v1629_v5 = vld [vmem:[%s1808_s15 + $0x4] ss:$8 sps:$4 sm:$0xff]   ;;  %v1627_v12 = vld [vmem:[%s1808_s15] ss:$8 sps:$4 sm:$0xff]   ;;  %v1633_v14 = vld [vmem:[%s1808_s15 + $0x14] ss:$8 sps:$4 sm:$0xff]   ;;  %s1914_s17 = scalar_lea.vmem %s2042_s5, %s1261_s6 }
  0x26   : > { %638 = vmatprep.subr.bf16.mxu0 %v1719_v1  ;;  %1566 = vmatprep.subr.bf16.mxu1 %v1719_v1  ;;  %v1632_v6 = vld [vmem:[%s1808_s15 + $0x84] ss:$8 sps:$4 sm:$0xff]   ;;  %v1630_v13 = vld [vmem:[%s1808_s15 + $0x80] ss:$8 sps:$4 sm:$0xff]   ;;  %v1635_v15 = vld [vmem:[%s1808_s15 + $0x94] ss:$8 sps:$4 sm:$0xff]   ;;  %v1891_v47 = vstv %s795_s8 }
  0x27   : > { %1306 = vmatprep.mubr.msk.bf16.mxu0 %vm585_vm0, %v1629_v5  ;;  %1314 = vmatprep.mubr.msk.bf16.mxu1 %vm585_vm0, %v1632_v6  ;;  %v1637_v16 = vld [vmem:[%s1808_s15 + $0x10] ss:$8 sps:$4 sm:$0xff]   ;;  %v1639_v18 = vld [vmem:[%s1808_s15 + $0x24] ss:$8 sps:$4 sm:$0xff]   ;;  %v1643_v20 = vld [vmem:[%s1808_s15 + $0x20] ss:$8 sps:$4 sm:$0xff]  }
  0x28   : > { %v1638_v17 = vld [vmem:[%s1808_s15 + $0x90] ss:$8 sps:$4 sm:$0xff]   ;;  %v1641_v19 = vld [vmem:[%s1808_s15 + $0xa4] ss:$8 sps:$4 sm:$0xff]   ;;  %v1644_v21 = vld [vmem:[%s1808_s15 + $0xa0] ss:$8 sps:$4 sm:$0xff]  }
  0x29   : > { %639 = vmatpush1.bf16.msra.mxu0 %v1620_v3  ;;  %1575 = vmatpush1.bf16.msra.mxu1 %v1620_v3  ;;  %v1645_v22 = vld [vmem:[%s1808_s15 + $0x34] ss:$8 sps:$4 sm:$0xff]   ;;  %v1649_v24 = vld [vmem:[%s1808_s15 + $0x30] ss:$8 sps:$4 sm:$0xff]   ;;  %v1651_v26 = vld [vmem:[%s1808_s15 + $0x44] ss:$8 sps:$4 sm:$0xff]  }
  0x2a   : > { %640 = vmatprep.subr.bf16.mxu0 %v1719_v1  ;;  %1567 = vmatprep.subr.bf16.mxu1 %v1719_v1  ;;  %v1647_v23 = vld [vmem:[%s1808_s15 + $0xb4] ss:$8 sps:$4 sm:$0xff]   ;;  %v1650_v25 = vld [vmem:[%s1808_s15 + $0xb0] ss:$8 sps:$4 sm:$0xff]   ;;  %v1653_v27 = vld [vmem:[%s1808_s15 + $0xc4] ss:$8 sps:$4 sm:$0xff]  }
  0x2b   : > { %v1655_v28 = vld [vmem:[%s1808_s15 + $0x40] ss:$8 sps:$4 sm:$0xff]   ;;  %v1657_v30 = vld [vmem:[%s1808_s15 + $0x54] ss:$8 sps:$4 sm:$0xff]   ;;  %v1661_v32 = vld [vmem:[%s1808_s15 + $0x50] ss:$8 sps:$4 sm:$0xff]  }
  0x2c   : > { %v1656_v29 = vld [vmem:[%s1808_s15 + $0xc0] ss:$8 sps:$4 sm:$0xff]   ;;  %v1659_v31 = vld [vmem:[%s1808_s15 + $0xd4] ss:$8 sps:$4 sm:$0xff]   ;;  %v1662_v33 = vld [vmem:[%s1808_s15 + $0xd0] ss:$8 sps:$4 sm:$0xff]  }
  0x2d   : > { %641 = vmatpush1.bf16.msra.mxu0 %v1621_v4  ;;  %1576 = vmatpush1.bf16.msra.mxu1 %v1621_v4  ;;  %v1663_v34 = vld [vmem:[%s1808_s15 + $0x64] ss:$8 sps:$4 sm:$0xff]   ;;  %v1667_v36 = vld [vmem:[%s1808_s15 + $0x60] ss:$8 sps:$4 sm:$0xff]   ;;  %v1669_v38 = vld [vmem:[%s1808_s15 + $0x74] ss:$8 sps:$4 sm:$0xff]  }
  0x2e   : > { %642 = vmatprep.subr.bf16.mxu0 %v1719_v1  ;;  %1568 = vmatprep.subr.bf16.mxu1 %v1719_v1  ;;  %v1665_v35 = vld [vmem:[%s1808_s15 + $0xe4] ss:$8 sps:$4 sm:$0xff]   ;;  %v1668_v37 = vld [vmem:[%s1808_s15 + $0xe0] ss:$8 sps:$4 sm:$0xff]   ;;  %v1671_v39 = vld [vmem:[%s1808_s15 + $0xf4] ss:$8 sps:$4 sm:$0xff]  }
  0x2f   : > { %v1673_v40 = vld [vmem:[%s1808_s15 + $0x70] ss:$8 sps:$4 sm:$0xff]   ;;  %s1322_s12 = sld [smem:[#allocation2 + $0x1]]  ;;  %v1391_v42 = vld [vmem:[%s1882_s11] sm:$0xff]   ;;  %v1534_v59 = vld [vmem:[%s1882_s11 + $0x8] sm:$0xff]  }
  0x30   : > { %v1674_v41 = vld [vmem:[%s1808_s15 + $0xf0] ss:$8 sps:$4 sm:$0xff]   ;;  %v1541_v43 = vld [vmem:[%s1882_s11 + $0x40] sm:$0xff]   ;;  %v1392_v44 = vunpack.c.l.bf16 %v1391_v42  ;;  %v1393_v48 = vunpack.c.h.bf16 %v1391_v42  ;;  %v1542_v60 = vld [vmem:[%s1882_s11 + $0x48] sm:$0xff]  }
  0x31   : > { %643 = vmatpush1.bf16.msra.mxu0 %v1622_v7  ;;  %1577 = vmatpush1.bf16.msra.mxu1 %v1622_v7  ;;  %v1424_v45 = vunpack.c.l.bf16 %v1541_v43  ;;  %v1425_v49 = vunpack.c.h.bf16 %v1541_v43  ;;  %v1396_v7 = vunpack.c.l.bf16 %v1534_v59 }
  0x32   : > { %644 = vmatprep.subr.bf16.mxu0 %v1719_v1  ;;  %1569 = vmatprep.subr.bf16.mxu1 %v1719_v1  ;;  %v861_v54 = vmul.f32 %v1392_v44, %v1891_v47  ;;  %v862_v62 = vmul.f32 %v1393_v48, %v1891_v47 }
  0x33   : > { %v877_v56 = vmul.f32 %v1424_v45, %v1891_v47  ;;  %v878_v0 = vmul.f32 %v1425_v49, %v1891_v47 }
  0x35   : > { %645 = vmatpush1.bf16.msra.mxu0 %v1623_v8  ;;  %1578 = vmatpush1.bf16.msra.mxu1 %v1623_v8  ;;  %v1893_v51 = vstv %s1322_s12  ;;  %v1428_v8 = vunpack.c.l.bf16 %v1542_v60 }
  0x36   : > { %646 = vmatprep.subr.bf16.mxu0 %v1719_v1  ;;  %1570 = vmatprep.subr.bf16.mxu1 %v1719_v1 }
  0x39   : > { %647 = vmatpush1.bf16.msra.mxu0 %v1624_v9  ;;  %1579 = vmatpush1.bf16.msra.mxu1 %v1624_v9 }
  0x3a   : > { %648 = vmatprep.subr.bf16.mxu0 %v1719_v1  ;;  %1571 = vmatprep.subr.bf16.mxu1 %v1719_v1 }
  0x3d   : > { %649 = vmatpush1.bf16.msra.mxu0 %v1625_v10  ;;  %1580 = vmatpush1.bf16.msra.mxu1 %v1625_v10 }
  0x3e   : > { %650 = vmatprep.subr.bf16.mxu0 %v1719_v1  ;;  %1572 = vmatprep.subr.bf16.mxu1 %v1719_v1 }
  0x41   : > { %651 = vmatpush1.bf16.msra.mxu0 %v1626_v11  ;;  %1581 = vmatpush1.bf16.msra.mxu1 %v1626_v11 }
  0x44   : > { %667 = vmatmul.mubr.bf16.vlgmr.msra.gmra.mrb[0].mxu0 %v1627_v12  ;;  %731 = vmatmul.mubr.bf16.vlgmr.msra.gmra.mrb[0].mxu1 %v1630_v13  ;;  %v1397_v13 = vunpack.c.h.bf16 %v1534_v59 }
  0x45   : > { %1307 = vmatprep.mubr.msk.bf16.mxu0 %vm585_vm0, %v1633_v14  ;;  %1315 = vmatprep.mubr.msk.bf16.mxu1 %vm585_vm0, %v1635_v15  ;;  %v1429_v14 = vunpack.c.h.bf16 %v1542_v60 }
  0x4c   : > { %675 = vmatmul.mubr.bf16.gmra.mrb[4].mxu0 %v1637_v16  ;;  %739 = vmatmul.mubr.bf16.gmra.mrb[4].mxu1 %v1638_v17 }
  0x4d   : > { %1308 = vmatprep.mubr.msk.bf16.mxu0 %vm585_vm0, %v1639_v18  ;;  %1316 = vmatprep.mubr.msk.bf16.mxu1 %vm585_vm0, %v1641_v19  ;;  %v863_v18 = vmul.f32 %v1396_v7, %v1891_v47 }
  0x54   : > { %683 = vmatmul.mubr.bf16.gmra.mrb[8].mxu0 %v1643_v20  ;;  %747 = vmatmul.mubr.bf16.gmra.mrb[8].mxu1 %v1644_v21  ;;  %v879_v20 = vmul.f32 %v1428_v8, %v1891_v47 }
  0x55   : > { %1309 = vmatprep.mubr.msk.bf16.mxu0 %vm585_vm0, %v1645_v22  ;;  %1317 = vmatprep.mubr.msk.bf16.mxu1 %vm585_vm0, %v1647_v23 }
  0x5c   : > { %691 = vmatmul.mubr.bf16.gmra.mrb[12].mxu0 %v1649_v24  ;;  %755 = vmatmul.mubr.bf16.gmra.mrb[12].mxu1 %v1650_v25 }
  0x5d   : > { %1310 = vmatprep.mubr.msk.bf16.mxu0 %vm585_vm0, %v1651_v26  ;;  %1318 = vmatprep.mubr.msk.bf16.mxu1 %vm585_vm0, %v1653_v27  ;;  %v1535_v27 = vld [vmem:[%s1882_s11 + $0x10] sm:$0xff]  }
  0x5e   : > { %v1401_v45 = vunpack.c.h.bf16 %v1535_v27 }
  0x64   : > { %699 = vmatmul.mubr.bf16.gmra.mrb[16].mxu0 %v1655_v28  ;;  %763 = vmatmul.mubr.bf16.gmra.mrb[16].mxu1 %v1656_v29  ;;  %v1543_v28 = vld [vmem:[%s1882_s11 + $0x50] sm:$0xff]  }
  0x65   : > { %1311 = vmatprep.mubr.msk.bf16.mxu0 %vm585_vm0, %v1657_v30  ;;  %1319 = vmatprep.mubr.msk.bf16.mxu1 %vm585_vm0, %v1659_v31  ;;  %v864_v30 = vmul.f32 %v1397_v13, %v1891_v47  ;;  %v1433_v48 = vunpack.c.h.bf16 %v1543_v28 }
  0x6c   : > { %707 = vmatmul.mubr.bf16.gmra.mrb[20].mxu0 %v1661_v32  ;;  %771 = vmatmul.mubr.bf16.gmra.mrb[20].mxu1 %v1662_v33  ;;  %v880_v32 = vmul.f32 %v1429_v14, %v1891_v47 }
  0x6d   : > { %1312 = vmatprep.mubr.msk.bf16.mxu0 %vm585_vm0, %v1663_v34  ;;  %1320 = vmatprep.mubr.msk.bf16.mxu1 %vm585_vm0, %v1665_v35 }
  0x74   : > { %715 = vmatmul.mubr.bf16.gmra.mrb[24].mxu0 %v1667_v36  ;;  %779 = vmatmul.mubr.bf16.gmra.mrb[24].mxu1 %v1668_v37 }
  0x75   : > { %1313 = vmatprep.mubr.msk.bf16.mxu0 %vm585_vm0, %v1669_v38  ;;  %1321 = vmatprep.mubr.msk.bf16.mxu1 %vm585_vm0, %v1671_v39  ;;  %v1400_v39 = vunpack.c.l.bf16 %v1535_v27 }
  0x7c   : > { %723 = vmatmul.mubr.bf16.gmra.mrb[28].mxu0 %v1673_v40  ;;  %787 = vmatmul.mubr.bf16.gmra.mrb[28].mxu1 %v1674_v41  ;;  %v1432_v40 = vunpack.c.l.bf16 %v1543_v28 }
 0x117   : > { %v668_v50 = vpop.f32.mrb[0].mxu0  ;;  %v732_v52 = vpop.f32.mrb[0].mxu1 }
 0x118   : > { %v669_v53 = vadd.f32 %v1889_v46, %v668_v50  ;;  %v733_v55 = vadd.f32 %v1889_v46, %v732_v52  ;;  %v670_v57 = vpop.f32.mrb[1].mxu0  ;;  %v734_v58 = vpop.f32.mrb[1].mxu1 }
 0x119   : > { %v671_v61 = vpop.f32.mrb[2].mxu0  ;;  %v735_v63 = vpop.f32.mrb[2].mxu1 }
 0x11a   : > { %v895_v1 = vmul.f32 %v1893_v51, %v669_v53  ;;  %v911_v2 = vmul.f32 %v1893_v51, %v733_v55  ;;  %v672_v3 = vadd.f32 %v1889_v46, %v671_v61  ;;  %v736_v4 = vadd.f32 %v1889_v46, %v735_v63  ;;  %v673_v5 = vpop.f32.mrb[3].mxu0  ;;  %v737_v6 = vpop.f32.mrb[3].mxu1  ;;  %v1544_v63 = vld [vmem:[%s1882_s11 + $0x58] sm:$0xff]  }
 0x11b   : > { %v865_v53 = vmul.f32 %v1400_v39, %v1891_v47  ;;  %v881_v55 = vmul.f32 %v1432_v40, %v1891_v47 }
 0x11c   : > { %v927_v9 = vadd.f32 %v895_v1, %v861_v54  ;;  %v943_v10 = vadd.f32 %v911_v2, %v877_v56  ;;  %v896_v11 = vmul.f32 %v1893_v51, %v672_v3  ;;  %v912_v12 = vmul.f32 %v1893_v51, %v736_v4 }
 0x11d   : > { %v866_v1 = vmul.f32 %v1401_v45, %v1891_v47  ;;  %v882_v3 = vmul.f32 %v1433_v48, %v1891_v47 }
 0x11e   : > { %v928_v15 = vadd.f32 %v896_v11, %v862_v62  ;;  %v944_v16 = vadd.f32 %v912_v12, %v878_v0  ;;  %v1536_v62 = vld [vmem:[%s1882_s11 + $0x18] sm:$0xff]   ;;  %v1436_v11 = vunpack.c.l.bf16 %v1544_v63 }
 0x11f   : > { %v676_v17 = vpop.f32.mrb[4].mxu0  ;;  %v740_v19 = vpop.f32.mrb[4].mxu1 }
 0x120   : > { %v1457_v21 = vpack.c.bf16 %v928_v15, %v927_v9  ;;  %v1497_v22 = vpack.c.bf16 %v944_v16, %v943_v10  ;;  %v677_v23 = vadd.f32 %v1889_v46, %v676_v17  ;;  %v741_v24 = vadd.f32 %v1889_v46, %v740_v19  ;;  %v678_v25 = vpop.f32.mrb[5].mxu0  ;;  %v742_v26 = vpop.f32.mrb[5].mxu1 }
 0x121   : > { %v679_v29 = vpop.f32.mrb[6].mxu0  ;;  %v743_v31 = vpop.f32.mrb[6].mxu1  ;;  %v1404_v10 = vunpack.c.l.bf16 %v1536_v62  ;;  %v1405_v16 = vunpack.c.h.bf16 %v1536_v62  ;;  %v1437_v17 = vunpack.c.h.bf16 %v1544_v63 }
 0x122   : > { %1458 = vst [vmem:[%s1914_s17] sm:$0xff] %v1457_v21   ;;  %1556 = vst [vmem:[%s1914_s17 + $0x40] sm:$0xff] %v1497_v22   ;;  %v897_v33 = vmul.f32 %v1893_v51, %v677_v23  ;;  %v913_v34 = vmul.f32 %v1893_v51, %v741_v24  ;;  %v680_v35 = vadd.f32 %v1889_v46, %v679_v29  ;;  %v681_v37 = vpop.f32.mrb[7].mxu0  ;;  %v745_v38 = vpop.f32.mrb[7].mxu1 }
 0x123   : > { %v744_v36 = vadd.f32 %v1889_v46, %v743_v31  ;;  %v867_v21 = vmul.f32 %v1404_v10, %v1891_v47  ;;  %v883_v23 = vmul.f32 %v1436_v11, %v1891_v47  ;;  %v1545_v31 = vld [vmem:[%s1882_s11 + $0x60] sm:$0xff]  }
 0x124   : > { %v929_v41 = vadd.f32 %v897_v33, %v863_v18  ;;  %v945_v42 = vadd.f32 %v913_v34, %v879_v20  ;;  %v898_v43 = vmul.f32 %v1893_v51, %v680_v35  ;;  %v868_v33 = vmul.f32 %v1405_v16, %v1891_v47 }
 0x125   : > { %v914_v44 = vmul.f32 %v1893_v51, %v744_v36  ;;  %v884_v35 = vmul.f32 %v1437_v17, %v1891_v47 }
 0x126   : > { %v930_v49 = vadd.f32 %v898_v43, %v864_v30  ;;  %v1537_v30 = vld [vmem:[%s1882_s11 + $0x20] sm:$0xff]   ;;  %v1440_v43 = vunpack.c.l.bf16 %v1545_v31 }
 0x127   : > { %v946_v50 = vadd.f32 %v914_v44, %v880_v32  ;;  %v684_v52 = vpop.f32.mrb[8].mxu0  ;;  %v748_v54 = vpop.f32.mrb[8].mxu1 }
 0x128   : > { %v1462_v56 = vpack.c.bf16 %v930_v49, %v929_v41  ;;  %v685_v58 = vadd.f32 %v1889_v46, %v684_v52  ;;  %v749_v59 = vadd.f32 %v1889_v46, %v748_v54  ;;  %v686_v60 = vpop.f32.mrb[9].mxu0  ;;  %v750_v61 = vpop.f32.mrb[9].mxu1  ;;  %v1441_v52 = vunpack.c.h.bf16 %v1545_v31 }
 0x129   : > { %v1502_v57 = vpack.c.bf16 %v946_v50, %v945_v42  ;;  %v687_v0 = vpop.f32.mrb[10].mxu0  ;;  %v751_v2 = vpop.f32.mrb[10].mxu1  ;;  %v1408_v42 = vunpack.c.l.bf16 %v1537_v30  ;;  %v1409_v50 = vunpack.c.h.bf16 %v1537_v30 }
 0x12a   : > { %1549 = vst [vmem:[%s1914_s17 + $0x8] sm:$0xff] %v1462_v56   ;;  %v899_v4 = vmul.f32 %v1893_v51, %v685_v58  ;;  %v915_v5 = vmul.f32 %v1893_v51, %v749_v59  ;;  %v688_v6 = vadd.f32 %v1889_v46, %v687_v0  ;;  %v752_v7 = vadd.f32 %v1889_v46, %v751_v2  ;;  %v689_v8 = vpop.f32.mrb[11].mxu0  ;;  %v753_v9 = vpop.f32.mrb[11].mxu1  ;;  %v1546_v2 = vld [vmem:[%s1882_s11 + $0x68] sm:$0xff]  }
 0x12b   : > { %1557 = vst [vmem:[%s1914_s17 + $0x48] sm:$0xff] %v1502_v57   ;;  %v869_v56 = vmul.f32 %v1408_v42, %v1891_v47  ;;  %v885_v58 = vmul.f32 %v1440_v43, %v1891_v47 }
 0x12c   : > { %v931_v12 = vadd.f32 %v899_v4, %v865_v53  ;;  %v947_v13 = vadd.f32 %v915_v5, %v881_v55  ;;  %v900_v14 = vmul.f32 %v1893_v51, %v688_v6  ;;  %v916_v15 = vmul.f32 %v1893_v51, %v752_v7 }
 0x12d   : > { %v870_v4 = vmul.f32 %v1409_v50, %v1891_v47  ;;  %v886_v6 = vmul.f32 %v1441_v52, %v1891_v47 }
 0x12e   : > { %v932_v18 = vadd.f32 %v900_v14, %v866_v1  ;;  %v948_v19 = vadd.f32 %v916_v15, %v882_v3  ;;  %v1538_v1 = vld [vmem:[%s1882_s11 + $0x28] sm:$0xff]   ;;  %v1444_v14 = vunpack.c.l.bf16 %v1546_v2 }
 0x12f   : > { %v692_v20 = vpop.f32.mrb[12].mxu0  ;;  %v756_v22 = vpop.f32.mrb[12].mxu1 }
 0x130   : > { %v1467_v24 = vpack.c.bf16 %v932_v18, %v931_v12  ;;  %v1507_v25 = vpack.c.bf16 %v948_v19, %v947_v13  ;;  %v693_v26 = vadd.f32 %v1889_v46, %v692_v20  ;;  %v757_v27 = vadd.f32 %v1889_v46, %v756_v22  ;;  %v694_v28 = vpop.f32.mrb[13].mxu0  ;;  %v758_v29 = vpop.f32.mrb[13].mxu1 }
 0x131   : > { %v695_v32 = vpop.f32.mrb[14].mxu0  ;;  %v759_v34 = vpop.f32.mrb[14].mxu1  ;;  %v1412_v13 = vunpack.c.l.bf16 %v1538_v1  ;;  %v1413_v19 = vunpack.c.h.bf16 %v1538_v1  ;;  %v1445_v20 = vunpack.c.h.bf16 %v1546_v2 }
 0x132   : > { %1550 = vst [vmem:[%s1914_s17 + $0x10] sm:$0xff] %v1467_v24   ;;  %1558 = vst [vmem:[%s1914_s17 + $0x50] sm:$0xff] %v1507_v25   ;;  %v901_v36 = vmul.f32 %v1893_v51, %v693_v26  ;;  %v917_v37 = vmul.f32 %v1893_v51, %v757_v27  ;;  %v696_v38 = vadd.f32 %v1889_v46, %v695_v32  ;;  %v697_v40 = vpop.f32.mrb[15].mxu0  ;;  %v761_v41 = vpop.f32.mrb[15].mxu1 }
 0x133   : > { %v760_v39 = vadd.f32 %v1889_v46, %v759_v34  ;;  %v871_v24 = vmul.f32 %v1412_v13, %v1891_v47  ;;  %v887_v26 = vmul.f32 %v1444_v14, %v1891_v47  ;;  %v1547_v34 = vld [vmem:[%s1882_s11 + $0x70] sm:$0xff]  }
 0x134   : > { %v933_v44 = vadd.f32 %v901_v36, %v867_v21  ;;  %v949_v45 = vadd.f32 %v917_v37, %v883_v23  ;;  %v902_v48 = vmul.f32 %v1893_v51, %v696_v38  ;;  %v872_v36 = vmul.f32 %v1413_v19, %v1891_v47 }
 0x135   : > { %v918_v49 = vmul.f32 %v1893_v51, %v760_v39  ;;  %v888_v38 = vmul.f32 %v1445_v20, %v1891_v47 }
 0x136   : > { %v934_v53 = vadd.f32 %v902_v48, %v868_v33  ;;  %v1539_v33 = vld [vmem:[%s1882_s11 + $0x30] sm:$0xff]   ;;  %v1448_v48 = vunpack.c.l.bf16 %v1547_v34 }
 0x137   : > { %v950_v54 = vadd.f32 %v918_v49, %v884_v35  ;;  %v700_v55 = vpop.f32.mrb[16].mxu0  ;;  %v764_v57 = vpop.f32.mrb[16].mxu1 }
 0x138   : > { %v1472_v59 = vpack.c.bf16 %v934_v53, %v933_v44  ;;  %v701_v61 = vadd.f32 %v1889_v46, %v700_v55  ;;  %v765_v62 = vadd.f32 %v1889_v46, %v764_v57  ;;  %v702_v63 = vpop.f32.mrb[17].mxu0  ;;  %v766_v0 = vpop.f32.mrb[17].mxu1  ;;  %v1449_v55 = vunpack.c.h.bf16 %v1547_v34 }
 0x139   : > { %v1512_v60 = vpack.c.bf16 %v950_v54, %v949_v45  ;;  %v703_v3 = vpop.f32.mrb[18].mxu0  ;;  %v767_v5 = vpop.f32.mrb[18].mxu1  ;;  %v1416_v45 = vunpack.c.l.bf16 %v1539_v33  ;;  %v1417_v54 = vunpack.c.h.bf16 %v1539_v33 }
 0x13a   : > { %1551 = vst [vmem:[%s1914_s17 + $0x18] sm:$0xff] %v1472_v59   ;;  %v903_v7 = vmul.f32 %v1893_v51, %v701_v61  ;;  %v919_v8 = vmul.f32 %v1893_v51, %v765_v62  ;;  %v704_v9 = vadd.f32 %v1889_v46, %v703_v3  ;;  %v768_v10 = vadd.f32 %v1889_v46, %v767_v5  ;;  %v705_v11 = vpop.f32.mrb[19].mxu0  ;;  %v769_v12 = vpop.f32.mrb[19].mxu1  ;;  %v1548_v5 = vld [vmem:[%s1882_s11 + $0x78] sm:$0xff]  }
 0x13b   : > { %1559 = vst [vmem:[%s1914_s17 + $0x58] sm:$0xff] %v1512_v60   ;;  %v873_v59 = vmul.f32 %v1416_v45, %v1891_v47  ;;  %v889_v61 = vmul.f32 %v1448_v48, %v1891_v47 }
 0x13c   : > { %v935_v15 = vadd.f32 %v903_v7, %v869_v56  ;;  %v951_v16 = vadd.f32 %v919_v8, %v885_v58  ;;  %v904_v17 = vmul.f32 %v1893_v51, %v704_v9  ;;  %v920_v18 = vmul.f32 %v1893_v51, %v768_v10 }
 0x13d   : > { %v874_v7 = vmul.f32 %v1417_v54, %v1891_v47  ;;  %v890_v9 = vmul.f32 %v1449_v55, %v1891_v47 }
 0x13e   : > { %v936_v21 = vadd.f32 %v904_v17, %v870_v4  ;;  %v952_v22 = vadd.f32 %v920_v18, %v886_v6  ;;  %v1540_v4 = vld [vmem:[%s1882_s11 + $0x38] sm:$0xff]   ;;  %v1452_v17 = vunpack.c.l.bf16 %v1548_v5 }
 0x13f   : > { %v708_v23 = vpop.f32.mrb[20].mxu0  ;;  %v772_v25 = vpop.f32.mrb[20].mxu1 }
 0x140   : > { %v1477_v27 = vpack.c.bf16 %v936_v21, %v935_v15  ;;  %v1517_v28 = vpack.c.bf16 %v952_v22, %v951_v16  ;;  %v709_v29 = vadd.f32 %v1889_v46, %v708_v23  ;;  %v773_v30 = vadd.f32 %v1889_v46, %v772_v25  ;;  %v710_v31 = vpop.f32.mrb[21].mxu0  ;;  %v774_v32 = vpop.f32.mrb[21].mxu1 }
 0x141   : > { %v711_v35 = vpop.f32.mrb[22].mxu0  ;;  %v775_v37 = vpop.f32.mrb[22].mxu1  ;;  %v1420_v16 = vunpack.c.l.bf16 %v1540_v4  ;;  %v1421_v22 = vunpack.c.h.bf16 %v1540_v4  ;;  %v1453_v23 = vunpack.c.h.bf16 %v1548_v5 }
 0x142   : > { %1552 = vst [vmem:[%s1914_s17 + $0x20] sm:$0xff] %v1477_v27   ;;  %1560 = vst [vmem:[%s1914_s17 + $0x60] sm:$0xff] %v1517_v28   ;;  %v905_v39 = vmul.f32 %v1893_v51, %v709_v29  ;;  %v921_v40 = vmul.f32 %v1893_v51, %v773_v30  ;;  %v712_v41 = vadd.f32 %v1889_v46, %v711_v35  ;;  %v713_v43 = vpop.f32.mrb[23].mxu0  ;;  %v777_v44 = vpop.f32.mrb[23].mxu1 }
 0x143   : > { %v776_v42 = vadd.f32 %v1889_v46, %v775_v37  ;;  %v875_v27 = vmul.f32 %v1420_v16, %v1891_v47  ;;  %v891_v29 = vmul.f32 %v1452_v17, %v1891_v47  ;;  %v876_v37 = vmul.f32 %v1421_v22, %v1891_v47 }
 0x144   : > { %v937_v49 = vadd.f32 %v905_v39, %v871_v24  ;;  %v953_v50 = vadd.f32 %v921_v40, %v887_v26  ;;  %v906_v52 = vmul.f32 %v1893_v51, %v712_v41  ;;  %v892_v39 = vmul.f32 %v1453_v23, %v1891_v47 }
 0x145   : > { %v922_v53 = vmul.f32 %v1893_v51, %v776_v42 }
 0x146   : > { %v938_v56 = vadd.f32 %v906_v52, %v872_v36 }
 0x147   : > { %v954_v57 = vadd.f32 %v922_v53, %v888_v38  ;;  %v716_v58 = vpop.f32.mrb[24].mxu0  ;;  %v780_v60 = vpop.f32.mrb[24].mxu1 }
 0x148   : > { %v1482_v62 = vpack.c.bf16 %v938_v56, %v937_v49  ;;  %v717_v0 = vadd.f32 %v1889_v46, %v716_v58  ;;  %v781_v1 = vadd.f32 %v1889_v46, %v780_v60  ;;  %v718_v2 = vpop.f32.mrb[25].mxu0  ;;  %v782_v3 = vpop.f32.mrb[25].mxu1 }
 0x149   : > { %v1522_v63 = vpack.c.bf16 %v954_v57, %v953_v50  ;;  %v719_v6 = vpop.f32.mrb[26].mxu0  ;;  %v783_v8 = vpop.f32.mrb[26].mxu1 }
 0x14a   : > { %1553 = vst [vmem:[%s1914_s17 + $0x28] sm:$0xff] %v1482_v62   ;;  %v907_v10 = vmul.f32 %v1893_v51, %v717_v0  ;;  %v923_v11 = vmul.f32 %v1893_v51, %v781_v1  ;;  %v720_v12 = vadd.f32 %v1889_v46, %v719_v6  ;;  %v784_v13 = vadd.f32 %v1889_v46, %v783_v8  ;;  %v721_v14 = vpop.f32.mrb[27].mxu0  ;;  %v785_v15 = vpop.f32.mrb[27].mxu1 }
 0x14b   : > { %1561 = vst [vmem:[%s1914_s17 + $0x68] sm:$0xff] %v1522_v63  }
 0x14c   : > { %v939_v18 = vadd.f32 %v907_v10, %v873_v59  ;;  %v955_v19 = vadd.f32 %v923_v11, %v889_v61  ;;  %v908_v20 = vmul.f32 %v1893_v51, %v720_v12  ;;  %v924_v21 = vmul.f32 %v1893_v51, %v784_v13 }
 0x14e   : > { %v940_v24 = vadd.f32 %v908_v20, %v874_v7  ;;  %v956_v25 = vadd.f32 %v924_v21, %v890_v9 }
 0x14f   : > { %v724_v26 = vpop.f32.mrb[28].mxu0  ;;  %v788_v28 = vpop.f32.mrb[28].mxu1 }
 0x150   : > { %v1487_v30 = vpack.c.bf16 %v940_v24, %v939_v18  ;;  %v1527_v31 = vpack.c.bf16 %v956_v25, %v955_v19  ;;  %v725_v32 = vadd.f32 %v1889_v46, %v724_v26  ;;  %v789_v33 = vadd.f32 %v1889_v46, %v788_v28  ;;  %v726_v34 = vpop.f32.mrb[29].mxu0  ;;  %v790_v35 = vpop.f32.mrb[29].mxu1 }
 0x151   : > { %v727_v36 = vpop.f32.mrb[30].mxu0  ;;  %v791_v38 = vpop.f32.mrb[30].mxu1 }
 0x152   : > { %1554 = vst [vmem:[%s1914_s17 + $0x30] sm:$0xff] %v1487_v30   ;;  %1562 = vst [vmem:[%s1914_s17 + $0x70] sm:$0xff] %v1527_v31   ;;  %v909_v40 = vmul.f32 %v1893_v51, %v725_v32  ;;  %v925_v41 = vmul.f32 %v1893_v51, %v789_v33  ;;  %v728_v42 = vadd.f32 %v1889_v46, %v727_v36  ;;  %v729_v44 = vpop.f32.mrb[31].mxu0  ;;  %v793_v45 = vpop.f32.mrb[31].mxu1 }
 0x153   : > { %v792_v43 = vadd.f32 %v1889_v46, %v791_v38 }
 0x154   : > { %v941_v48 = vadd.f32 %v909_v40, %v875_v27  ;;  %v957_v49 = vadd.f32 %v925_v41, %v891_v29  ;;  %v910_v50 = vmul.f32 %v1893_v51, %v728_v42 }
 0x155   : > { %v926_v47 = vmul.f32 %v1893_v51, %v792_v43 }
 0x156   : > { %v942_v52 = vadd.f32 %v910_v50, %v876_v37 }
 0x157   : > { %v958_v53 = vadd.f32 %v926_v47, %v892_v39 }
 0x158   : > { %v1492_v54 = vpack.c.bf16 %v942_v52, %v941_v48 }
 0x159   : > { %v1532_v55 = vpack.c.bf16 %v958_v53, %v957_v49 }
 0x15a   : > { %1555 = vst [vmem:[%s1914_s17 + $0x38] sm:$0xff] %v1492_v54  }
 0x15b   : > { %1563 = vst [vmem:[%s1914_s17 + $0x78] sm:$0xff] %v1532_v55  }
 0x15c PF: > { %s16_s20 = sadd.s32 1, %s1716_s20   ;;  %s2045_s18 = smov %s1712_s19 }
 0x15d   : > { %p13_p2 = scmp.ge.s32.totalorder %s16_s20, 4   ;;  %s2046_s19 = smov %s2048_s22 }
 0x15f   :  { %15 = sbr.rel (!%p13_p2) target bundleno = 2 (0x2), region = 84 }
 0x166   :  { %1147 = vsyncpa [#allocation3], 1 }
 0x167   :  { %1149 = vsyncpa [#allocation3 + $0x1], 1 }

// kernel: one_module_forward.10
= control target key start
LH: loop header
LB: loop body
LE: loop exit
PB: predicated region body
PF: predicated region fallthrough
CT: control target
= control target key end

     0   :  { %s1494_s12 = smov 0   ;;  %s1496_s13 = smov 0   ;;  %s1668_s0 = inlined_call_operand.vmem [shape: bf16[512,256], index: 0, kind: input, shape index: {}]   ;;  %s1669_s1 = inlined_call_operand.vmem [shape: bf16[256,128], index: 1, kind: input, shape index: {}]   ;;  %s1670_s2 = inlined_call_operand.vmem [shape: f32[1,128], index: 2, kind: input, shape index: {}]   ;;  %s1671_s3 = inlined_call_operand.vmem [shape: bf16[512,128], index: 3, kind: output, shape index: {}]  }
   0x1   :  { %s1498_s14 = smov 0  }
   0x2 LB: > { %s25_s15 = sadd.s32 1, %s1468_s13  ;;  %p1017_p0 = scmp.ge.s32.totalorder %s1472_s14, 1  ;;  %s1472_s14 = sphi %s1498_s14, %s13_s14   ;;  %s1468_s13 = sphi %s1496_s13, %s1673_s13   ;;  %s1464_s12 = sphi %s1494_s12, %s1672_s12  }
   0x3   : > { %p27_p1 = scmp.ge.s32.totalorder %s25_s15, 2  ;;  %p170_p2 = scmp.lt.s32.totalorder %s1472_s14, 3 }
   0x5   : > { %s1675_s15 = smov (%p27_p1, %s25_s15), 0  ;;  %p171_p3 = pnand %p1017_p0, %p170_p2 }
   0x6   : > { %v1386_v0 = vld [vmem:[%s1669_s1 + $0x40] sm:$0xff] (!%p171_p3)   ;;  %s1018_s18 = sshll.u32 (!%p171_p3), %s1464_s12, 5  ;;  %v1388_v2 = vld [vmem:[%s1669_s1 + $0x48] sm:$0xff] (!%p171_p3)   ;;  %v1390_v4 = vld [vmem:[%s1669_s1 + $0x50] sm:$0xff] (!%p171_p3)  }
   0x7   : > { %174 = sbr.rel (%p171_p3) target bundleno = 320 (0x140), region = 32  ;;  %v1387_v1 = vld [vmem:[%s1669_s1] sm:$0xff] (!%p171_p3)   ;;  %1234 = vmatprep.subr.bf16.mxu0 (!%p171_p3), %v1386_v0  ;;  %1346 = vmatprep.subr.bf16.mxu1 (!%p171_p3), %v1386_v0  ;;  %v1389_v3 = vld [vmem:[%s1669_s1 + $0x8] sm:$0xff] (!%p171_p3)   ;;  %p206_p4 = scmp.lt.s32.totalorder (!%p171_p3), %s1018_s18, 63  ;;  %v1391_v5 = vld [vmem:[%s1669_s1 + $0x10] sm:$0xff] (!%p171_p3)  }
   0x8   : > { %1235 = vmatpush3.bf16.msra.mxu0 (!%p171_p3), %v1387_v1  ;;  %1354 = vmatpush3.bf16.msra.mxu1 (!%p171_p3), %v1387_v1  ;;  %v1392_v6 = vld [vmem:[%s1669_s1 + $0x58] sm:$0xff] (!%p171_p3)   ;;  %v1394_v8 = vld [vmem:[%s1669_s1 + $0x60] sm:$0xff] (!%p171_p3)   ;;  %v1396_v10 = vld [vmem:[%s1669_s1 + $0x68] sm:$0xff] (!%p171_p3)  }
   0x9   : > { %1236 = vmatprep.subr.bf16.mxu0 (!%p171_p3), %v1388_v2  ;;  %1347 = vmatprep.subr.bf16.mxu1 (!%p171_p3), %v1388_v2  ;;  %v1393_v7 = vld [vmem:[%s1669_s1 + $0x18] sm:$0xff] (!%p171_p3)   ;;  %v1395_v9 = vld [vmem:[%s1669_s1 + $0x20] sm:$0xff] (!%p171_p3)   ;;  %v1397_v13 = vld [vmem:[%s1669_s1 + $0x28] sm:$0xff] (!%p171_p3)  }
   0xa   : > { %v1398_v14 = vld [vmem:[%s1669_s1 + $0x70] sm:$0xff] (!%p171_p3)   ;;  %v1400_v16 = vld [vmem:[%s1669_s1 + $0x78] sm:$0xff] (!%p171_p3)   ;;  %v1603_v50 = vld [vmem:[%s1670_s2] ss:$0 sm:$0xff] (!%p171_p3) }
   0xb   : > { %v1399_v15 = vld [vmem:[%s1669_s1 + $0x30] sm:$0xff] (!%p171_p3)   ;;  %v1401_v17 = vld [vmem:[%s1669_s1 + $0x38] sm:$0xff] (!%p171_p3)  }
   0xc   : > { %1237 = vmatpush3.bf16.msra.mxu0 (!%p171_p3), %v1389_v3  ;;  %1355 = vmatpush3.bf16.msra.mxu1 (!%p171_p3), %v1389_v3 }
   0xd   : > { %1238 = vmatprep.subr.bf16.mxu0 (!%p171_p3), %v1390_v4  ;;  %1348 = vmatprep.subr.bf16.mxu1 (!%p171_p3), %v1390_v4 }
   0xe   : > { %s1677_s18 = smov (!%p206_p4, %s1018_s18), 63 }
   0xf   : > { %s1106_s6 = sshll.u32 %s1677_s18, 3  ;;  %s1022_s5 = sshll.u32 %s1677_s18, 2 }
  0x10   : > { %1239 = vmatpush3.bf16.msra.mxu0 %v1391_v5  ;;  %1356 = vmatpush3.bf16.msra.mxu1 %v1391_v5  ;;  %s1545_s11 = scalar_lea.vmem %s1668_s0, %s1106_s6  ;;  %s1613_s8 = scalar_lea.vmem %s1671_s3, %s1022_s5 }
  0x11   : > { %1240 = vmatprep.subr.bf16.mxu0 %v1392_v6  ;;  %1349 = vmatprep.subr.bf16.mxu1 %v1392_v6  ;;  %v1404_v11 = vld [vmem:[%s1545_s11 + $0x4] ss:$8 sps:$4 sm:$0xff]   ;;  %v1402_v18 = vld [vmem:[%s1545_s11] ss:$8 sps:$4 sm:$0xff]   ;;  %v1408_v20 = vld [vmem:[%s1545_s11 + $0x14] ss:$8 sps:$4 sm:$0xff]  }
  0x12   : > { %v1407_v12 = vld [vmem:[%s1545_s11 + $0x84] ss:$8 sps:$4 sm:$0xff]   ;;  %588 = vmatprep.mubr.bf16.mxu0 %v1404_v11  ;;  %v1405_v19 = vld [vmem:[%s1545_s11 + $0x80] ss:$8 sps:$4 sm:$0xff]   ;;  %v1410_v21 = vld [vmem:[%s1545_s11 + $0x94] ss:$8 sps:$4 sm:$0xff]  }
  0x13   : > { %652 = vmatprep.mubr.bf16.mxu1 %v1407_v12  ;;  %v1412_v22 = vld [vmem:[%s1545_s11 + $0x10] ss:$8 sps:$4 sm:$0xff]   ;;  %v1414_v24 = vld [vmem:[%s1545_s11 + $0x24] ss:$8 sps:$4 sm:$0xff]   ;;  %v1418_v26 = vld [vmem:[%s1545_s11 + $0x20] ss:$8 sps:$4 sm:$0xff]  }
  0x14   : > { %1241 = vmatpush3.bf16.msra.mxu0 %v1393_v7  ;;  %1357 = vmatpush3.bf16.msra.mxu1 %v1393_v7  ;;  %v1413_v23 = vld [vmem:[%s1545_s11 + $0x90] ss:$8 sps:$4 sm:$0xff]   ;;  %v1416_v25 = vld [vmem:[%s1545_s11 + $0xa4] ss:$8 sps:$4 sm:$0xff]   ;;  %v1419_v27 = vld [vmem:[%s1545_s11 + $0xa0] ss:$8 sps:$4 sm:$0xff]  }
  0x15   : > { %1242 = vmatprep.subr.bf16.mxu0 %v1394_v8  ;;  %1350 = vmatprep.subr.bf16.mxu1 %v1394_v8  ;;  %v1420_v28 = vld [vmem:[%s1545_s11 + $0x34] ss:$8 sps:$4 sm:$0xff]   ;;  %v1424_v30 = vld [vmem:[%s1545_s11 + $0x30] ss:$8 sps:$4 sm:$0xff]   ;;  %v1426_v32 = vld [vmem:[%s1545_s11 + $0x44] ss:$8 sps:$4 sm:$0xff]  }
  0x16   : > { %v1422_v29 = vld [vmem:[%s1545_s11 + $0xb4] ss:$8 sps:$4 sm:$0xff]   ;;  %v1425_v31 = vld [vmem:[%s1545_s11 + $0xb0] ss:$8 sps:$4 sm:$0xff]   ;;  %v1428_v33 = vld [vmem:[%s1545_s11 + $0xc4] ss:$8 sps:$4 sm:$0xff]  }
  0x17   : > { %v1430_v34 = vld [vmem:[%s1545_s11 + $0x40] ss:$8 sps:$4 sm:$0xff]   ;;  %v1432_v36 = vld [vmem:[%s1545_s11 + $0x54] ss:$8 sps:$4 sm:$0xff]   ;;  %v1436_v38 = vld [vmem:[%s1545_s11 + $0x50] ss:$8 sps:$4 sm:$0xff]  }
  0x18   : > { %1243 = vmatpush3.bf16.msra.mxu0 %v1395_v9  ;;  %1358 = vmatpush3.bf16.msra.mxu1 %v1395_v9  ;;  %v1431_v35 = vld [vmem:[%s1545_s11 + $0xc0] ss:$8 sps:$4 sm:$0xff]   ;;  %v1434_v37 = vld [vmem:[%s1545_s11 + $0xd4] ss:$8 sps:$4 sm:$0xff]   ;;  %v1437_v39 = vld [vmem:[%s1545_s11 + $0xd0] ss:$8 sps:$4 sm:$0xff]  }
  0x19   : > { %1244 = vmatprep.subr.bf16.mxu0 %v1396_v10  ;;  %1351 = vmatprep.subr.bf16.mxu1 %v1396_v10  ;;  %v1438_v40 = vld [vmem:[%s1545_s11 + $0x64] ss:$8 sps:$4 sm:$0xff]   ;;  %v1442_v42 = vld [vmem:[%s1545_s11 + $0x60] ss:$8 sps:$4 sm:$0xff]   ;;  %v1444_v44 = vld [vmem:[%s1545_s11 + $0x74] ss:$8 sps:$4 sm:$0xff]  }
  0x1a   : > { %v1440_v41 = vld [vmem:[%s1545_s11 + $0xe4] ss:$8 sps:$4 sm:$0xff]   ;;  %v1443_v43 = vld [vmem:[%s1545_s11 + $0xe0] ss:$8 sps:$4 sm:$0xff]   ;;  %v1446_v45 = vld [vmem:[%s1545_s11 + $0xf4] ss:$8 sps:$4 sm:$0xff]  }
  0x1b   : > { %v1448_v46 = vld [vmem:[%s1545_s11 + $0x70] ss:$8 sps:$4 sm:$0xff]  }
  0x1c   : > { %1245 = vmatpush3.bf16.msra.mxu0 %v1397_v13  ;;  %1359 = vmatpush3.bf16.msra.mxu1 %v1397_v13  ;;  %v1449_v47 = vld [vmem:[%s1545_s11 + $0xf0] ss:$8 sps:$4 sm:$0xff]  }
  0x1d   : > { %1246 = vmatprep.subr.bf16.mxu0 %v1398_v14  ;;  %1352 = vmatprep.subr.bf16.mxu1 %v1398_v14 }
  0x20   : > { %1247 = vmatpush3.bf16.msra.mxu0 %v1399_v15  ;;  %1360 = vmatpush3.bf16.msra.mxu1 %v1399_v15 }
  0x21   : > { %1248 = vmatprep.subr.bf16.mxu0 %v1400_v16  ;;  %1353 = vmatprep.subr.bf16.mxu1 %v1400_v16 }
  0x24   : > { %1249 = vmatpush3.bf16.msra.mxu0 %v1401_v17  ;;  %1361 = vmatpush3.bf16.msra.mxu1 %v1401_v17 }
  0x27   : > { %589 = vmatmul.mubr.bf16.vlgmr.msra.gmra.mrb[0].mxu0 %v1402_v18  ;;  %653 = vmatmul.mubr.bf16.vlgmr.msra.gmra.mrb[0].mxu1 %v1405_v19 }
  0x28   : > { %596 = vmatprep.mubr.bf16.mxu0 %v1408_v20  ;;  %660 = vmatprep.mubr.bf16.mxu1 %v1410_v21 }
  0x2f   : > { %597 = vmatmul.mubr.bf16.gmra.mrb[4].mxu0 %v1412_v22  ;;  %661 = vmatmul.mubr.bf16.gmra.mrb[4].mxu1 %v1413_v23 }
  0x30   : > { %604 = vmatprep.mubr.bf16.mxu0 %v1414_v24  ;;  %668 = vmatprep.mubr.bf16.mxu1 %v1416_v25 }
  0x37   : > { %605 = vmatmul.mubr.bf16.gmra.mrb[8].mxu0 %v1418_v26  ;;  %669 = vmatmul.mubr.bf16.gmra.mrb[8].mxu1 %v1419_v27 }
  0x38   : > { %612 = vmatprep.mubr.bf16.mxu0 %v1420_v28  ;;  %676 = vmatprep.mubr.bf16.mxu1 %v1422_v29 }
  0x3f   : > { %613 = vmatmul.mubr.bf16.gmra.mrb[12].mxu0 %v1424_v30  ;;  %677 = vmatmul.mubr.bf16.gmra.mrb[12].mxu1 %v1425_v31 }
  0x40   : > { %620 = vmatprep.mubr.bf16.mxu0 %v1426_v32  ;;  %684 = vmatprep.mubr.bf16.mxu1 %v1428_v33 }
  0x47   : > { %621 = vmatmul.mubr.bf16.gmra.mrb[16].mxu0 %v1430_v34  ;;  %685 = vmatmul.mubr.bf16.gmra.mrb[16].mxu1 %v1431_v35 }
  0x48   : > { %628 = vmatprep.mubr.bf16.mxu0 %v1432_v36  ;;  %692 = vmatprep.mubr.bf16.mxu1 %v1434_v37 }
  0x4f   : > { %629 = vmatmul.mubr.bf16.gmra.mrb[20].mxu0 %v1436_v38  ;;  %693 = vmatmul.mubr.bf16.gmra.mrb[20].mxu1 %v1437_v39 }
  0x50   : > { %636 = vmatprep.mubr.bf16.mxu0 %v1438_v40  ;;  %700 = vmatprep.mubr.bf16.mxu1 %v1440_v41 }
  0x57   : > { %637 = vmatmul.mubr.bf16.gmra.mrb[24].mxu0 %v1442_v42  ;;  %701 = vmatmul.mubr.bf16.gmra.mrb[24].mxu1 %v1443_v43 }
  0x58   : > { %644 = vmatprep.mubr.bf16.mxu0 %v1444_v44  ;;  %708 = vmatprep.mubr.bf16.mxu1 %v1446_v45 }
  0x5f   : > { %645 = vmatmul.mubr.bf16.gmra.mrb[28].mxu0 %v1448_v46  ;;  %709 = vmatmul.mubr.bf16.gmra.mrb[28].mxu1 %v1449_v47 }
  0xfa   : > { %v1250_v48 = vpop.f32.mrb[0].mxu0  ;;  %v1298_v49 = vpop.f32.mrb[0].mxu1 }
  0xfb   : > { %v1251_v51 = vpop.f32.mrb[1].mxu0  ;;  %v1299_v52 = vpop.f32.mrb[1].mxu1 }
  0xfc   : > { %v1252_v53 = vadd.f32 %v1251_v51, %v1250_v48  ;;  %v1300_v54 = vadd.f32 %v1299_v52, %v1298_v49  ;;  %v1253_v55 = vpop.f32.mrb[2].mxu0  ;;  %v1301_v56 = vpop.f32.mrb[2].mxu1 }
  0xfd   : > { %v1254_v57 = vpop.f32.mrb[3].mxu0  ;;  %v1302_v58 = vpop.f32.mrb[3].mxu1 }
  0xfe   : > { %v591_v59 = vadd.f32 %v1252_v53, %v1603_v50  ;;  %v655_v60 = vadd.f32 %v1300_v54, %v1603_v50  ;;  %v1255_v61 = vadd.f32 %v1254_v57, %v1253_v55  ;;  %v1303_v62 = vadd.f32 %v1302_v58, %v1301_v56 }
 0x100   : > { %v594_v63 = vadd.f32 %v1255_v61, %v1603_v50  ;;  %v658_v0 = vadd.f32 %v1303_v62, %v1603_v50  ;;  %v717_v1 = vmax.f32 %v591_v59, 0.0  ;;  %v733_v2 = vmax.f32 %v655_v60, 0.0 }
 0x102   : > { %v718_v3 = vmax.f32 %v594_v63, 0.0  ;;  %v734_v4 = vmax.f32 %v658_v0, 0.0  ;;  %v1256_v5 = vpop.f32.mrb[4].mxu0  ;;  %v1304_v6 = vpop.f32.mrb[4].mxu1 }
 0x103   : > { %v1257_v7 = vpop.f32.mrb[5].mxu0  ;;  %v1305_v8 = vpop.f32.mrb[5].mxu1 }
 0x104   : > { %v1142_v9 = vpack.c.bf16 %v718_v3, %v717_v1  ;;  %v1182_v10 = vpack.c.bf16 %v734_v4, %v733_v2  ;;  %v1258_v11 = vadd.f32 %v1257_v7, %v1256_v5  ;;  %v1306_v12 = vadd.f32 %v1305_v8, %v1304_v6  ;;  %v1259_v13 = vpop.f32.mrb[6].mxu0  ;;  %v1307_v14 = vpop.f32.mrb[6].mxu1 }
 0x105   : > { %v1260_v15 = vpop.f32.mrb[7].mxu0  ;;  %v1308_v16 = vpop.f32.mrb[7].mxu1 }
 0x106   : > { %1143 = vst [vmem:[%s1613_s8] sm:$0xff] %v1142_v9   ;;  %1226 = vst [vmem:[%s1613_s8 + $0x40] sm:$0xff] %v1182_v10   ;;  %v599_v17 = vadd.f32 %v1258_v11, %v1603_v50  ;;  %v663_v18 = vadd.f32 %v1306_v12, %v1603_v50  ;;  %v1261_v19 = vadd.f32 %v1260_v15, %v1259_v13 }
 0x107   : > { %v1309_v20 = vadd.f32 %v1308_v16, %v1307_v14 }
 0x108   : > { %v602_v21 = vadd.f32 %v1261_v19, %v1603_v50  ;;  %v719_v23 = vmax.f32 %v599_v17, 0.0  ;;  %v735_v24 = vmax.f32 %v663_v18, 0.0 }
 0x109   : > { %v666_v22 = vadd.f32 %v1309_v20, %v1603_v50 }
 0x10a   : > { %v720_v25 = vmax.f32 %v602_v21, 0.0  ;;  %v1262_v27 = vpop.f32.mrb[8].mxu0  ;;  %v1310_v28 = vpop.f32.mrb[8].mxu1 }
 0x10b   : > { %v736_v26 = vmax.f32 %v666_v22, 0.0  ;;  %v1263_v29 = vpop.f32.mrb[9].mxu0  ;;  %v1311_v30 = vpop.f32.mrb[9].mxu1 }
 0x10c   : > { %v1147_v31 = vpack.c.bf16 %v720_v25, %v719_v23  ;;  %v1264_v33 = vadd.f32 %v1263_v29, %v1262_v27  ;;  %v1312_v34 = vadd.f32 %v1311_v30, %v1310_v28  ;;  %v1265_v35 = vpop.f32.mrb[10].mxu0  ;;  %v1313_v36 = vpop.f32.mrb[10].mxu1 }
 0x10d   : > { %v1187_v32 = vpack.c.bf16 %v736_v26, %v735_v24  ;;  %v1266_v37 = vpop.f32.mrb[11].mxu0  ;;  %v1314_v38 = vpop.f32.mrb[11].mxu1 }
 0x10e   : > { %1219 = vst [vmem:[%s1613_s8 + $0x8] sm:$0xff] %v1147_v31   ;;  %v607_v39 = vadd.f32 %v1264_v33, %v1603_v50  ;;  %v671_v40 = vadd.f32 %v1312_v34, %v1603_v50  ;;  %v1267_v41 = vadd.f32 %v1266_v37, %v1265_v35  ;;  %v1315_v42 = vadd.f32 %v1314_v38, %v1313_v36 }
 0x10f   : > { %1227 = vst [vmem:[%s1613_s8 + $0x48] sm:$0xff] %v1187_v32  }
 0x110   : > { %v610_v43 = vadd.f32 %v1267_v41, %v1603_v50  ;;  %v674_v44 = vadd.f32 %v1315_v42, %v1603_v50  ;;  %v721_v45 = vmax.f32 %v607_v39, 0.0  ;;  %v737_v46 = vmax.f32 %v671_v40, 0.0 }
 0x112   : > { %v722_v47 = vmax.f32 %v610_v43, 0.0  ;;  %v738_v48 = vmax.f32 %v674_v44, 0.0  ;;  %v1268_v49 = vpop.f32.mrb[12].mxu0  ;;  %v1316_v51 = vpop.f32.mrb[12].mxu1 }
 0x113   : > { %v1269_v52 = vpop.f32.mrb[13].mxu0  ;;  %v1317_v53 = vpop.f32.mrb[13].mxu1 }
 0x114   : > { %v1152_v54 = vpack.c.bf16 %v722_v47, %v721_v45  ;;  %v1192_v55 = vpack.c.bf16 %v738_v48, %v737_v46  ;;  %v1270_v56 = vadd.f32 %v1269_v52, %v1268_v49  ;;  %v1318_v57 = vadd.f32 %v1317_v53, %v1316_v51  ;;  %v1271_v58 = vpop.f32.mrb[14].mxu0  ;;  %v1319_v59 = vpop.f32.mrb[14].mxu1 }
 0x115   : > { %v1272_v60 = vpop.f32.mrb[15].mxu0  ;;  %v1320_v61 = vpop.f32.mrb[15].mxu1 }
 0x116   : > { %1220 = vst [vmem:[%s1613_s8 + $0x10] sm:$0xff] %v1152_v54   ;;  %1228 = vst [vmem:[%s1613_s8 + $0x50] sm:$0xff] %v1192_v55   ;;  %v615_v62 = vadd.f32 %v1270_v56, %v1603_v50  ;;  %v679_v63 = vadd.f32 %v1318_v57, %v1603_v50  ;;  %v1273_v0 = vadd.f32 %v1272_v60, %v1271_v58 }
 0x117   : > { %v1321_v1 = vadd.f32 %v1320_v61, %v1319_v59 }
 0x118   : > { %v618_v2 = vadd.f32 %v1273_v0, %v1603_v50  ;;  %v723_v4 = vmax.f32 %v615_v62, 0.0  ;;  %v739_v5 = vmax.f32 %v679_v63, 0.0 }
 0x119   : > { %v682_v3 = vadd.f32 %v1321_v1, %v1603_v50 }
 0x11a   : > { %v724_v6 = vmax.f32 %v618_v2, 0.0  ;;  %v1274_v8 = vpop.f32.mrb[16].mxu0  ;;  %v1322_v9 = vpop.f32.mrb[16].mxu1 }
 0x11b   : > { %v740_v7 = vmax.f32 %v682_v3, 0.0  ;;  %v1275_v10 = vpop.f32.mrb[17].mxu0  ;;  %v1323_v11 = vpop.f32.mrb[17].mxu1 }
 0x11c   : > { %v1157_v12 = vpack.c.bf16 %v724_v6, %v723_v4  ;;  %v1276_v14 = vadd.f32 %v1275_v10, %v1274_v8  ;;  %v1324_v15 = vadd.f32 %v1323_v11, %v1322_v9  ;;  %v1277_v16 = vpop.f32.mrb[18].mxu0  ;;  %v1325_v17 = vpop.f32.mrb[18].mxu1 }
 0x11d   : > { %v1197_v13 = vpack.c.bf16 %v740_v7, %v739_v5  ;;  %v1278_v18 = vpop.f32.mrb[19].mxu0  ;;  %v1326_v19 = vpop.f32.mrb[19].mxu1 }
 0x11e   : > { %1221 = vst [vmem:[%s1613_s8 + $0x18] sm:$0xff] %v1157_v12   ;;  %v623_v20 = vadd.f32 %v1276_v14, %v1603_v50  ;;  %v687_v21 = vadd.f32 %v1324_v15, %v1603_v50  ;;  %v1279_v22 = vadd.f32 %v1278_v18, %v1277_v16  ;;  %v1327_v23 = vadd.f32 %v1326_v19, %v1325_v17 }
 0x11f   : > { %1229 = vst [vmem:[%s1613_s8 + $0x58] sm:$0xff] %v1197_v13  }
 0x120   : > { %v626_v24 = vadd.f32 %v1279_v22, %v1603_v50  ;;  %v690_v25 = vadd.f32 %v1327_v23, %v1603_v50  ;;  %v725_v26 = vmax.f32 %v623_v20, 0.0  ;;  %v741_v27 = vmax.f32 %v687_v21, 0.0 }
 0x122   : > { %v726_v28 = vmax.f32 %v626_v24, 0.0  ;;  %v742_v29 = vmax.f32 %v690_v25, 0.0  ;;  %v1280_v30 = vpop.f32.mrb[20].mxu0  ;;  %v1328_v31 = vpop.f32.mrb[20].mxu1 }
 0x123   : > { %v1281_v32 = vpop.f32.mrb[21].mxu0  ;;  %v1329_v33 = vpop.f32.mrb[21].mxu1 }
 0x124   : > { %v1162_v34 = vpack.c.bf16 %v726_v28, %v725_v26  ;;  %v1202_v35 = vpack.c.bf16 %v742_v29, %v741_v27  ;;  %v1282_v36 = vadd.f32 %v1281_v32, %v1280_v30  ;;  %v1330_v37 = vadd.f32 %v1329_v33, %v1328_v31  ;;  %v1283_v38 = vpop.f32.mrb[22].mxu0  ;;  %v1331_v39 = vpop.f32.mrb[22].mxu1 }
 0x125   : > { %v1284_v40 = vpop.f32.mrb[23].mxu0  ;;  %v1332_v41 = vpop.f32.mrb[23].mxu1 }
 0x126   : > { %1222 = vst [vmem:[%s1613_s8 + $0x20] sm:$0xff] %v1162_v34   ;;  %1230 = vst [vmem:[%s1613_s8 + $0x60] sm:$0xff] %v1202_v35   ;;  %v631_v42 = vadd.f32 %v1282_v36, %v1603_v50  ;;  %v695_v43 = vadd.f32 %v1330_v37, %v1603_v50  ;;  %v1285_v44 = vadd.f32 %v1284_v40, %v1283_v38 }
 0x127   : > { %v1333_v45 = vadd.f32 %v1332_v41, %v1331_v39 }
 0x128   : > { %v634_v46 = vadd.f32 %v1285_v44, %v1603_v50  ;;  %v727_v48 = vmax.f32 %v631_v42, 0.0  ;;  %v743_v49 = vmax.f32 %v695_v43, 0.0 }
 0x129   : > { %v698_v47 = vadd.f32 %v1333_v45, %v1603_v50 }
 0x12a   : > { %v728_v51 = vmax.f32 %v634_v46, 0.0  ;;  %v1286_v53 = vpop.f32.mrb[24].mxu0  ;;  %v1334_v54 = vpop.f32.mrb[24].mxu1 }
 0x12b   : > { %v744_v52 = vmax.f32 %v698_v47, 0.0  ;;  %v1287_v55 = vpop.f32.mrb[25].mxu0  ;;  %v1335_v56 = vpop.f32.mrb[25].mxu1 }
 0x12c   : > { %v1167_v57 = vpack.c.bf16 %v728_v51, %v727_v48  ;;  %v1288_v59 = vadd.f32 %v1287_v55, %v1286_v53  ;;  %v1336_v60 = vadd.f32 %v1335_v56, %v1334_v54  ;;  %v1289_v61 = vpop.f32.mrb[26].mxu0  ;;  %v1337_v62 = vpop.f32.mrb[26].mxu1 }
 0x12d   : > { %v1207_v58 = vpack.c.bf16 %v744_v52, %v743_v49  ;;  %v1290_v63 = vpop.f32.mrb[27].mxu0  ;;  %v1338_v0 = vpop.f32.mrb[27].mxu1 }
 0x12e   : > { %1223 = vst [vmem:[%s1613_s8 + $0x28] sm:$0xff] %v1167_v57   ;;  %v639_v1 = vadd.f32 %v1288_v59, %v1603_v50  ;;  %v703_v2 = vadd.f32 %v1336_v60, %v1603_v50  ;;  %v1291_v3 = vadd.f32 %v1290_v63, %v1289_v61  ;;  %v1339_v4 = vadd.f32 %v1338_v0, %v1337_v62 }
 0x12f   : > { %1231 = vst [vmem:[%s1613_s8 + $0x68] sm:$0xff] %v1207_v58  }
 0x130   : > { %v642_v5 = vadd.f32 %v1291_v3, %v1603_v50  ;;  %v706_v6 = vadd.f32 %v1339_v4, %v1603_v50  ;;  %v729_v7 = vmax.f32 %v639_v1, 0.0  ;;  %v745_v8 = vmax.f32 %v703_v2, 0.0 }
 0x132   : > { %v730_v9 = vmax.f32 %v642_v5, 0.0  ;;  %v746_v10 = vmax.f32 %v706_v6, 0.0  ;;  %v1292_v11 = vpop.f32.mrb[28].mxu0  ;;  %v1340_v12 = vpop.f32.mrb[28].mxu1 }
 0x133   : > { %v1293_v13 = vpop.f32.mrb[29].mxu0  ;;  %v1341_v14 = vpop.f32.mrb[29].mxu1 }
 0x134   : > { %v1172_v15 = vpack.c.bf16 %v730_v9, %v729_v7  ;;  %v1212_v16 = vpack.c.bf16 %v746_v10, %v745_v8  ;;  %v1294_v17 = vadd.f32 %v1293_v13, %v1292_v11  ;;  %v1342_v18 = vadd.f32 %v1341_v14, %v1340_v12  ;;  %v1295_v19 = vpop.f32.mrb[30].mxu0  ;;  %v1343_v20 = vpop.f32.mrb[30].mxu1 }
 0x135   : > { %v1296_v21 = vpop.f32.mrb[31].mxu0  ;;  %v1344_v22 = vpop.f32.mrb[31].mxu1 }
 0x136   : > { %1224 = vst [vmem:[%s1613_s8 + $0x30] sm:$0xff] %v1172_v15   ;;  %1232 = vst [vmem:[%s1613_s8 + $0x70] sm:$0xff] %v1212_v16   ;;  %v647_v23 = vadd.f32 %v1294_v17, %v1603_v50  ;;  %v711_v24 = vadd.f32 %v1342_v18, %v1603_v50  ;;  %v1297_v25 = vadd.f32 %v1296_v21, %v1295_v19 }
 0x137   : > { %v1345_v26 = vadd.f32 %v1344_v22, %v1343_v20 }
 0x138   : > { %v650_v27 = vadd.f32 %v1297_v25, %v1603_v50  ;;  %v731_v29 = vmax.f32 %v647_v23, 0.0  ;;  %v747_v30 = vmax.f32 %v711_v24, 0.0 }
 0x139   : > { %v714_v28 = vadd.f32 %v1345_v26, %v1603_v50 }
 0x13a   : > { %v732_v31 = vmax.f32 %v650_v27, 0.0 }
 0x13b   : > { %v748_v32 = vmax.f32 %v714_v28, 0.0 }
 0x13c   : > { %v1177_v33 = vpack.c.bf16 %v732_v31, %v731_v29 }
 0x13d   : > { %v1217_v34 = vpack.c.bf16 %v748_v32, %v747_v30 }
 0x13e   : > { %1225 = vst [vmem:[%s1613_s8 + $0x38] sm:$0xff] %v1177_v33  }
 0x13f   : > { %1233 = vst [vmem:[%s1613_s8 + $0x78] sm:$0xff] %v1217_v34  }
 0x140 PF: > { %s13_s14 = sadd.s32 1, %s1472_s14   ;;  %s1672_s12 = smov %s1468_s13 }
 0x141   : > { %p10_p5 = scmp.ge.s32.totalorder %s13_s14, 4   ;;  %s1673_s13 = smov %s1675_s15 }
 0x143   :  { %12 = sbr.rel (!%p10_p5) target bundleno = 2 (0x2), region = 68 }

// kernel: one_module_forward.11
= control target key start
LH: loop header
LB: loop body
LE: loop exit
PB: predicated region body
PF: predicated region fallthrough
CT: control target
= control target key end

     0   :  { %10 = vsyncpa [#allocation4], 0  ;;  %s2561_s0 = inlined_call_operand.vmem [shape: bf16[512,288], index: 0, kind: input, shape index: {}]   ;;  %s2562_s1 = inlined_call_operand.vmem [shape: bf16[288,128], index: 1, kind: input, shape index: {}]   ;;  %s2563_s2 = inlined_call_operand.vmem [shape: f32[1,128], index: 2, kind: input, shape index: {}]   ;;  %s2564_s3 = inlined_call_operand.vmem [shape: f32[512,128], index: 3, kind: input, shape index: {}]   ;;  %s2565_s4 = inlined_call_operand.vmem [shape: f32[2], index: 4, kind: input, shape index: {}]   ;;  %s2566_s5 = inlined_call_operand.hbm [shape: f32[512,128], index: 5, kind: output, shape index: {}]  }
   0x1   :  { %11 = vsyncpa [#allocation3], 0 }
   0x2   :  { %13 = vsyncpa [#allocation3 + $0x1], 0  ;;  %s2055_s18 = smov 0   ;;  %s2057_s19 = smov 0  }
   0x3   :  { %s2059_s20 = smov 0   ;;  %s2061_s21 = smov 0  }
   0x4   :  { %s2063_s22 = smov 0   ;;  %s2065_s23 = smov 0  }
   0x5 LB: > { %s1485_s24 = sadd.s32 4294967295, %s2019_s23   ;;  %s1486_s25 = sadd.s32 4294967294, %s2019_s23   ;;  %s2019_s23 = sphi %s2065_s23, %s19_s23   ;;  %s2015_s22 = sphi %s2063_s22, %s2575_s22   ;;  %s2011_s21 = sphi %s2061_s21, %s2574_s21   ;;  %s2007_s20 = sphi %s2059_s20, %s2573_s20   ;;  %s2003_s19 = sphi %s2057_s19, %s2572_s19   ;;  %s1999_s18 = sphi %s2055_s18, %s2571_s18  }
   0x6   : > { %s31_s26 = sadd.s32 1, %s2015_s22  ;;  %s167_s27 = sadd.s32 1, %s2007_s20 }
   0x7   : > { %p33_p0 = scmp.ge.s32.totalorder %s31_s26, 2  ;;  %p177_p1 = scmp.ne.s32.totalorder %s2007_s20, %s2003_s19 }
   0x8   : > { %p178_p2 = scmp.eq.s32.totalorder %s1485_s24, 1  ;;  %p183_p3 = scmp.ne.s32.totalorder %s2003_s19, %s1999_s18 }
   0x9   : > { %s2577_s26 = smov (%p33_p0, %s31_s26), 0  ;;  %p184_p5 = scmp.eq.s32.totalorder %s1486_s25, 1 }
   0xa   : > { %p2095_p4 = por %p178_p2, %p177_p1  ;;  %s162_s29 = ssub.s32 %s2015_s22, %s2577_s26 }
   0xb   : > { %p1487_p6 = scmp.ge.s32.totalorder %s2019_s23, 1  ;;  %p165_p7 = scmp.eq.s32.totalorder %s162_s29, 0 }
   0xc   : > { %p2102_p8 = por %p184_p5, %p183_p3  ;;  %p191_p9 = scmp.lt.s32.totalorder %s2019_s23, 3 }
   0xd   : > { %s2108_s6 = scalar_select %p165_p7, %s2007_s20, %s167_s27  }
   0xe   : > { %p2110_p10 = pnand %p1487_p6, %p191_p9  ;;  %p2114_p11 = scmp.eq.s32.totalorder %s1485_s24, 0 }
   0xf   : > { %s217_s11 = sshll.u32 %s2565_s4, 4  ;;  %s218_s11 = int_to_ptr.vmem [resolvable:$true] %s217_s11 }
  0x10   : > { %p1778_p12 = pneg %p2110_p10  ;;  %s1922_s12 = scalar_lea.vmem %s218_s11, 16 }
  0x11   : > { %p1923_p0 = scmp.ne.s32.totalorder %s218_s11, %s1922_s12  ;;  %p1930_p5 = scmp.lt.s32.totalorder %s218_s11, %s218_s11 }
  0x12   : > { %p1779_p13 = pnand %p2114_p11, %p1778_p12  ;;  %p1931_p6 = scmp.lt.s32.totalorder %s1922_s12, %s1922_s12 }
  0x14   : > { %p1924_p1 = pneg %p1779_p13  ;;  %p1932_p7 = por %p1931_p6, %p1930_p5 }
  0x16   : > { %p1925_p2 = pnand %p1924_p1, %p1923_p0 }
  0x18   : > { %p1926_p3 = pneg %p1925_p2 }
  0x1a   : > { %p1933_p9 = pnand %p1932_p7, %p1926_p3 }
  0x1c   : > { %1936 = shalt.err (!%p1933_p9)
}
  0x1d   : > { %s2021_s13 = smov [#allocation2]   ;;  %252 = sbr.rel (%p2110_p10) target bundleno = 402 (0x192), region = 40 }
  0x1e   : > { %1781 = dma.vmem_to_smem (!%p1779_p13), %s218_s11, 16, %s2021_s13, [#allocation4]  }
  0x24   : > { %1990 = dma.done.wait (%p2114_p11), [#allocation4], 16  }
  0x25   : > { %1992 = vsyncadd (%p2114_p11), [#allocation4], 4294967280 }
  0x26   : > { %258 = sfence }
  0x27   : > { %v1840_v0 = vld [vmem:[%s2562_s1 + $0x40] sm:$0xff]   ;;  %s1495_s16 = sshll.u32 %s2011_s21, 5  ;;  %v1842_v2 = vld [vmem:[%s2562_s1 + $0x48] sm:$0xff]   ;;  %v1844_v4 = vld [vmem:[%s2562_s1 + $0x50] sm:$0xff]   ;;  %vm777_vm0 = vcmask 261120   ;;  %s1588_s9 = sshll.u32 %s2011_s21, 12 }
  0x28   : > { %v1841_v1 = vld [vmem:[%s2562_s1] sm:$0xff]   ;;  %1589 = vmatprep.subr.bf16.mxu0 %v1840_v0  ;;  %1755 = vmatprep.subr.bf16.mxu1 %v1840_v0  ;;  %p298_p10 = scmp.lt.s32.totalorder %s1495_s16, 63  ;;  %v1843_v3 = vld [vmem:[%s2562_s1 + $0x8] sm:$0xff]   ;;  %v1845_v5 = vld [vmem:[%s2562_s1 + $0x10] sm:$0xff]  }
  0x29   : > { %1590 = vmatpush3.bf16.msra.mxu0 %v1841_v1  ;;  %1763 = vmatpush3.bf16.msra.mxu1 %v1841_v1  ;;  %v1846_v6 = vld [vmem:[%s2562_s1 + $0x58] sm:$0xff]   ;;  %v1848_v8 = vld [vmem:[%s2562_s1 + $0x60] sm:$0xff]   ;;  %v1850_v10 = vld [vmem:[%s2562_s1 + $0x68] sm:$0xff]  }
  0x2a   : > { %1591 = vmatprep.subr.bf16.mxu0 %v1842_v2  ;;  %1756 = vmatprep.subr.bf16.mxu1 %v1842_v2  ;;  %s2579_s16 = smov (!%p298_p10, %s1495_s16), 63  ;;  %v1847_v7 = vld [vmem:[%s2562_s1 + $0x18] sm:$0xff]   ;;  %v1849_v9 = vld [vmem:[%s2562_s1 + $0x20] sm:$0xff]   ;;  %v1851_v13 = vld [vmem:[%s2562_s1 + $0x28] sm:$0xff]  }
  0x2b   : > { %s1771_s14 = smul.u32 12, %s2579_s16  ;;  %v1852_v14 = vld [vmem:[%s2562_s1 + $0x70] sm:$0xff]   ;;  %v1854_v16 = vld [vmem:[%s2562_s1 + $0x78] sm:$0xff]   ;;  %v1862_v18 = vld [vmem:[%s2562_s1 + $0x80] sm:$0xff]   ;;  %s1498_s13 = sshll.u32 %s2579_s16, 3 }
  0x2c   : > { %v1853_v15 = vld [vmem:[%s2562_s1 + $0x30] sm:$0xff]   ;;  %v1855_v17 = vld [vmem:[%s2562_s1 + $0x38] sm:$0xff]   ;;  %v1875_v23 = vld [vmem:[%s2562_s1 + $0x88] sm:$0xff]   ;;  %s2282_s24 = scalar_lea.vmem %s2564_s3, %s1498_s13  ;;  %s294_s16 = sand.u32 1, %s2003_s19  }
  0x2d   : > { %1592 = vmatpush3.bf16.msra.mxu0 %v1843_v3  ;;  %1764 = vmatpush3.bf16.msra.mxu1 %v1843_v3  ;;  %s2165_s7 = scalar_lea.vmem %s2561_s0, %s1771_s14  ;;  %s1582_s14 = sld [smem:[#allocation2 + $0x1]] }
  0x2e   : > { %1593 = vmatprep.subr.bf16.mxu0 %v1844_v4  ;;  %1757 = vmatprep.subr.bf16.mxu1 %v1844_v4  ;;  %v1858_v11 = vld [vmem:[%s2165_s7 + $0x4] ss:$12 sps:$4 sm:$0xff]   ;;  %v1856_v19 = vld [vmem:[%s2165_s7] ss:$12 sps:$4 sm:$0xff]   ;;  %v1863_v21 = vld [vmem:[%s2165_s7 + $0x1c] ss:$12 sps:$4 sm:$0xff]  }
  0x2f   : > { %v1861_v12 = vld [vmem:[%s2165_s7 + $0x124] ss:$12 sps:$4 sm:$0xff]   ;;  %858 = vmatprep.mubr.bf16.mxu0 %v1858_v11  ;;  %v1859_v20 = vld [vmem:[%s2165_s7 + $0x120] ss:$12 sps:$4 sm:$0xff]   ;;  %v1865_v22 = vld [vmem:[%s2165_s7 + $0x13c] ss:$12 sps:$4 sm:$0xff]  }
  0x30   : > { %954 = vmatprep.mubr.bf16.mxu1 %v1861_v12  ;;  %v1867_v24 = vld [vmem:[%s2165_s7 + $0x18] ss:$12 sps:$4 sm:$0xff]   ;;  %v1869_v26 = vld [vmem:[%s2165_s7 + $0x34] ss:$12 sps:$4 sm:$0xff]   ;;  %v1873_v28 = vld [vmem:[%s2165_s7 + $0x30] ss:$12 sps:$4 sm:$0xff]  }
  0x31   : > { %1594 = vmatpush3.bf16.msra.mxu0 %v1845_v5  ;;  %1765 = vmatpush3.bf16.msra.mxu1 %v1845_v5  ;;  %v1868_v25 = vld [vmem:[%s2165_s7 + $0x138] ss:$12 sps:$4 sm:$0xff]   ;;  %v1871_v27 = vld [vmem:[%s2165_s7 + $0x154] ss:$12 sps:$4 sm:$0xff]   ;;  %v1874_v29 = vld [vmem:[%s2165_s7 + $0x150] ss:$12 sps:$4 sm:$0xff]  }
  0x32   : > { %1595 = vmatprep.subr.bf16.mxu0 %v1846_v6  ;;  %1758 = vmatprep.subr.bf16.mxu1 %v1846_v6  ;;  %v1876_v30 = vld [vmem:[%s2165_s7 + $0x4c] ss:$12 sps:$4 sm:$0xff]   ;;  %v1880_v32 = vld [vmem:[%s2165_s7 + $0x48] ss:$12 sps:$4 sm:$0xff]   ;;  %v1882_v34 = vld [vmem:[%s2165_s7 + $0x64] ss:$12 sps:$4 sm:$0xff]  }
  0x33   : > { %v1878_v31 = vld [vmem:[%s2165_s7 + $0x16c] ss:$12 sps:$4 sm:$0xff]   ;;  %v1881_v33 = vld [vmem:[%s2165_s7 + $0x168] ss:$12 sps:$4 sm:$0xff]   ;;  %v1891_v41 = vld [vmem:[%s2165_s7 + $0x50] ss:$12 sps:$4 sm:$0xff]  }
  0x34   : > { %v1884_v35 = vld [vmem:[%s2165_s7 + $0x8] ss:$12 sps:$4 sm:$0xff]   ;;  %v1885_v36 = vld [vmem:[%s2165_s7 + $0x60] ss:$12 sps:$4 sm:$0xff]   ;;  %v1889_v39 = vld [vmem:[%s2165_s7 + $0x38] ss:$12 sps:$4 sm:$0xff]  }
  0x35   : > { %1596 = vmatpush3.bf16.msra.mxu0 %v1847_v7  ;;  %1766 = vmatpush3.bf16.msra.mxu1 %v1847_v7  ;;  %v1886_v37 = vld [vmem:[%s2165_s7 + $0x20] ss:$12 sps:$4 sm:$0xff]   ;;  %v1887_v38 = vld [vmem:[%s2165_s7 + $0x7c] ss:$12 sps:$4 sm:$0xff]   ;;  %v1890_v40 = vld [vmem:[%s2165_s7 + $0x78] ss:$12 sps:$4 sm:$0xff]  }
  0x36   : > { %1597 = vmatprep.subr.bf16.mxu0 %v1848_v8  ;;  %1759 = vmatprep.subr.bf16.mxu1 %v1848_v8  ;;  %v1892_v42 = vld [vmem:[%s2165_s7 + $0x94] ss:$12 sps:$4 sm:$0xff]   ;;  %v1895_v44 = vld [vmem:[%s2165_s7 + $0x90] ss:$12 sps:$4 sm:$0xff]   ;;  %v1897_v46 = vld [vmem:[%s2165_s7 + $0xac] ss:$12 sps:$4 sm:$0xff]  }
  0x37   : > { %v1894_v43 = vld [vmem:[%s2165_s7 + $0x68] ss:$12 sps:$4 sm:$0xff]   ;;  %v1896_v45 = vld [vmem:[%s2165_s7 + $0x80] ss:$12 sps:$4 sm:$0xff]   ;;  %v1899_v47 = vld [vmem:[%s2165_s7 + $0x98] ss:$12 sps:$4 sm:$0xff]  }
  0x38   : > { %v1900_v48 = vld [vmem:[%s2165_s7 + $0xa8] ss:$12 sps:$4 sm:$0xff]   ;;  %v1901_v49 = vld [vmem:[%s2165_s7 + $0xb0] ss:$12 sps:$4 sm:$0xff]   ;;  %v1905_v52 = vld [vmem:[%s2165_s7 + $0xc0] ss:$12 sps:$4 sm:$0xff]  }
  0x39   : > { %1598 = vmatpush3.bf16.msra.mxu0 %v1849_v9  ;;  %1767 = vmatpush3.bf16.msra.mxu1 %v1849_v9  ;;  %v1902_v50 = vld [vmem:[%s2165_s7 + $0xc4] ss:$12 sps:$4 sm:$0xff]   ;;  %v1904_v51 = vld [vmem:[%s2165_s7 + $0xc8] ss:$12 sps:$4 sm:$0xff]   ;;  %v1906_v53 = vld [vmem:[%s2165_s7 + $0xe0] ss:$12 sps:$4 sm:$0xff]  }
  0x3a   : > { %1599 = vmatprep.subr.bf16.mxu0 %v1850_v10  ;;  %1760 = vmatprep.subr.bf16.mxu1 %v1850_v10  ;;  %v1907_v54 = vld [vmem:[%s2165_s7 + $0xdc] ss:$12 sps:$4 sm:$0xff]   ;;  %v1909_v55 = vld [vmem:[%s2165_s7 + $0xf8] ss:$12 sps:$4 sm:$0xff]   ;;  %v1912_v58 = vld [vmem:[%s2165_s7 + $0xf4] ss:$12 sps:$4 sm:$0xff]  }
  0x3b   : > { %v1910_v56 = vld [vmem:[%s2165_s7 + $0xd8] ss:$12 sps:$4 sm:$0xff]   ;;  %v1911_v57 = vld [vmem:[%s2165_s7 + $0x110] ss:$12 sps:$4 sm:$0xff]   ;;  %v1914_v59 = vld [vmem:[%s2165_s7 + $0x128] ss:$12 sps:$4 sm:$0xff]  }
  0x3c   : > { %v1915_v60 = vld [vmem:[%s2165_s7 + $0xf0] ss:$12 sps:$4 sm:$0xff]   ;;  %v1916_v61 = vld [vmem:[%s2165_s7 + $0x140] ss:$12 sps:$4 sm:$0xff]   ;;  %v1919_v63 = vld [vmem:[%s2165_s7 + $0x158] ss:$12 sps:$4 sm:$0xff]  }
  0x3d   : > { %1600 = vmatpush3.bf16.msra.mxu0 %v1851_v13  ;;  %1768 = vmatpush3.bf16.msra.mxu1 %v1851_v13  ;;  %v1917_v62 = vld [vmem:[%s2165_s7 + $0x10c] ss:$12 sps:$4 sm:$0xff]   ;;  %v1920_v0 = vld [vmem:[%s2165_s7 + $0x108] ss:$12 sps:$4 sm:$0xff]   ;;  %v1921_v1 = vld [vmem:[%s2165_s7 + $0x170] ss:$12 sps:$4 sm:$0xff]  }
  0x3e   : > { %1601 = vmatprep.subr.bf16.mxu0 %v1852_v14  ;;  %1761 = vmatprep.subr.bf16.mxu1 %v1852_v14  ;;  %s1180_s7 = sld [smem:[#allocation2]]  ;;  %s1494_s29 = sshll.u32 %s294_s16, 8 }
  0x3f   : > { %s2320_s8 = scalar_lea.vmem [#allocation5], %s1494_s29  ;;  %s2515_s21 = scalar_lea.sflag [#allocation3], %s294_s16 }
  0x40   : > { %s1359_s10 = sshll.u32 %s2320_s8, 4  ;;  %s2509_s10 = int_to_ptr.vmem [resolvable:$true] %s1359_s10 }
  0x41   : > { %1602 = vmatpush3.bf16.msra.mxu0 %v1853_v15  ;;  %1769 = vmatpush3.bf16.msra.mxu1 %v1853_v15  ;;  %s1937_s13 = scalar_lea.vmem %s2509_s10, 4096 }
  0x42   : > { %1603 = vmatprep.subr.bf16.mxu0 %v1854_v16  ;;  %1762 = vmatprep.subr.bf16.mxu1 %v1854_v16  ;;  %p1938_p11 = scmp.ne.s32.totalorder %s2509_s10, %s1937_s13 }
  0x44   : > { %p1939_p12 = pnand %p1938_p11, %p2095_p4 }
  0x45   : > { %1604 = vmatpush3.bf16.msra.mxu0 %v1855_v17  ;;  %1770 = vmatpush3.bf16.msra.mxu1 %v1855_v17 }
  0x46   : > { %1719 = vmatprep.subr.bf16.mxu1 %v1862_v18  ;;  %p1940_p13 = pneg %p1939_p12 }
  0x48   : > { %859 = vmatmul.mubr.bf16.vlgmr.msra.gmra.mrb[0].mxu0 %v1856_v19  ;;  %955 = vmatmul.mubr.bf16.vlgmr.msra.gmra.mrb[0].mxu1 %v1859_v20 }
  0x49   : > { %1720 = vmatpush3.bf16.msra.mxu1 %v1862_v18  ;;  %866 = vmatprep.mubr.bf16.mxu0 %v1863_v21 }
  0x4a   : > { %962 = vmatprep.mubr.bf16.mxu1 %v1865_v22  ;;  %1721 = vmatprep.subr.bf16.mxu1 %v1875_v23 }
  0x4d   : > { %1722 = vmatpush3.bf16.msra.mxu1 %v1875_v23 }
  0x50   : > { %867 = vmatmul.mubr.bf16.gmra.mrb[4].mxu0 %v1867_v24  ;;  %963 = vmatmul.mubr.bf16.gmra.mrb[4].mxu1 %v1868_v25 }
  0x51   : > { %874 = vmatprep.mubr.bf16.mxu0 %v1869_v26  ;;  %970 = vmatprep.mubr.bf16.mxu1 %v1871_v27 }
  0x58   : > { %875 = vmatmul.mubr.bf16.gmra.mrb[8].mxu0 %v1873_v28  ;;  %971 = vmatmul.mubr.bf16.gmra.mrb[8].mxu1 %v1874_v29 }
  0x59   : > { %882 = vmatprep.mubr.bf16.mxu0 %v1876_v30  ;;  %978 = vmatprep.mubr.bf16.mxu1 %v1878_v31 }
  0x60   : > { %883 = vmatmul.mubr.bf16.gmra.mrb[12].mxu0 %v1880_v32  ;;  %979 = vmatmul.mubr.bf16.gmra.mrb[12].mxu1 %v1881_v33 }
  0x61   : > { %890 = vmatprep.mubr.bf16.mxu0 %v1882_v34  ;;  %1723 = vmatprep.mubr.msk.bf16.mxu1 %vm777_vm0, %v1884_v35 }
  0x68   : > { %891 = vmatmul.mubr.bf16.gmra.mrb[16].mxu0 %v1885_v36  ;;  %1724 = vmatmul.mubr.msk.bf16.vlgmr.msra.gmra.mrb[16].mxu1 %vm777_vm0, %v1886_v37 }
  0x69   : > { %898 = vmatprep.mubr.bf16.mxu0 %v1887_v38  ;;  %1727 = vmatprep.mubr.msk.bf16.mxu1 %vm777_vm0, %v1889_v39 }
  0x70   : > { %899 = vmatmul.mubr.bf16.gmra.mrb[20].mxu0 %v1890_v40  ;;  %1728 = vmatmul.mubr.msk.bf16.gmra.mrb[20].mxu1 %vm777_vm0, %v1891_v41 }
  0x71   : > { %906 = vmatprep.mubr.bf16.mxu0 %v1892_v42  ;;  %1731 = vmatprep.mubr.msk.bf16.mxu1 %vm777_vm0, %v1894_v43 }
  0x78   : > { %907 = vmatmul.mubr.bf16.gmra.mrb[24].mxu0 %v1895_v44  ;;  %1732 = vmatmul.mubr.msk.bf16.gmra.mrb[24].mxu1 %vm777_vm0, %v1896_v45 }
  0x79   : > { %914 = vmatprep.mubr.bf16.mxu0 %v1897_v46  ;;  %1735 = vmatprep.mubr.msk.bf16.mxu1 %vm777_vm0, %v1899_v47 }
  0x80   : > { %915 = vmatmul.mubr.bf16.gmra.mrb[28].mxu0 %v1900_v48  ;;  %1736 = vmatmul.mubr.msk.bf16.gmra.mrb[28].mxu1 %vm777_vm0, %v1901_v49 }
  0x81   : > { %922 = vmatprep.mubr.bf16.mxu0 %v1902_v50  ;;  %1739 = vmatprep.mubr.msk.bf16.mxu1 %vm777_vm0, %v1904_v51  ;;  %v2287_v50 = vld [vmem:[%s2563_s2] ss:$0 sm:$0xff] }
  0x88   : > { %923 = vmatmul.mubr.bf16.gmra.mrb[32].mxu0 %v1905_v52  ;;  %1740 = vmatmul.mubr.msk.bf16.gmra.mrb[32].mxu1 %vm777_vm0, %v1906_v53 }
  0x89   : > { %930 = vmatprep.mubr.bf16.mxu0 %v1907_v54  ;;  %1743 = vmatprep.mubr.msk.bf16.mxu1 %vm777_vm0, %v1909_v55  ;;  %v1183_v54 = vld [vmem:[%s2282_s24 + $0x10] sm:$0xff]  ;;  %v2292_v55 = vstv %s1180_s7  ;;  %s2507_s7 = scalar_lea.hbm %s2566_s5, %s1588_s9 }
  0x90   : > { %931 = vmatmul.mubr.bf16.gmra.mrb[36].mxu0 %v1910_v56  ;;  %1744 = vmatmul.mubr.msk.bf16.gmra.mrb[36].mxu1 %vm777_vm0, %v1911_v57 }
  0x91   : > { %938 = vmatprep.mubr.bf16.mxu0 %v1912_v58  ;;  %1747 = vmatprep.mubr.msk.bf16.mxu1 %vm777_vm0, %v1914_v59 }
  0x98   : > { %939 = vmatmul.mubr.bf16.gmra.mrb[40].mxu0 %v1915_v60  ;;  %1748 = vmatmul.mubr.msk.bf16.gmra.mrb[40].mxu1 %vm777_vm0, %v1916_v61  ;;  %v1181_v60 = vld [vmem:[%s2282_s24] sm:$0xff] }
  0x99   : > { %946 = vmatprep.mubr.bf16.mxu0 %v1917_v62  ;;  %1751 = vmatprep.mubr.msk.bf16.mxu1 %vm777_vm0, %v1919_v63  ;;  %v2297_v62 = vstv %s1582_s14  ;;  %s2022_s14 = smov [#allocation5]  }
  0x9a   : > { %s1941_s15 = sshll.u32 %s2022_s14, 4  ;;  %s1942_s15 = int_to_ptr.vmem [resolvable:$false] %s1941_s15 }
  0x9b   : > { %s1943_s17 = scalar_lea.vmem %s1942_s15, 8192  ;;  %p1944_p0 = scmp.lt.s32.totalorder %s2509_s10, %s1942_s15 }
  0x9c   : > { %p1945_p1 = scmp.lt.s32.totalorder %s1943_s17, %s1937_s13 }
  0x9e   : > { %p1946_p2 = por %p1945_p1, %p1944_p0 }
  0xa0   : > { %947 = vmatmul.mubr.bf16.gmra.mrb[44].mxu0 %v1920_v0  ;;  %1752 = vmatmul.mubr.msk.bf16.gmra.mrb[44].mxu1 %vm777_vm0, %v1921_v1  ;;  %p1947_p3 = pnand %p1946_p2, %p1940_p13 }
 0x11b   : > { %v1605_v2 = vpop.f32.mrb[0].mxu0  ;;  %v1677_v3 = vpop.f32.mrb[0].mxu1 }
 0x11c   : > { %v1606_v4 = vpop.f32.mrb[1].mxu0  ;;  %v1678_v5 = vpop.f32.mrb[1].mxu1 }
 0x11d   : > { %v1607_v6 = vadd.f32 %v1606_v4, %v1605_v2  ;;  %v1608_v7 = vpop.f32.mrb[2].mxu0  ;;  %v2258_v8 = vadd.f32 %v1678_v5, %v1677_v3  ;;  %v1680_v9 = vpop.f32.mrb[2].mxu1  ;;  %v1184_v3 = vld [vmem:[%s2282_s24 + $0x18] sm:$0xff] }
 0x11e   : > { %v1609_v10 = vpop.f32.mrb[3].mxu0  ;;  %v1681_v11 = vpop.f32.mrb[3].mxu1 }
 0x11f   : > { %v1610_v12 = vadd.f32 %v1609_v10, %v1608_v7  ;;  %v2260_v13 = vadd.f32 %v1681_v11, %v1680_v9  ;;  %v861_v56 = vadd.f32 %v1607_v6, %v2287_v50  ;;  %v1216_v6 = vmul.f32 %v2292_v55, %v1183_v54  ;;  %v1182_v11 = vld [vmem:[%s2282_s24 + $0x8] sm:$0xff] }
 0x121   : > { %v864_v4 = vadd.f32 %v1610_v12, %v2287_v50  ;;  %v1217_v12 = vmul.f32 %v2292_v55, %v1184_v3 }
 0x123   : > { %v1611_v14 = vpop.f32.mrb[4].mxu0  ;;  %v1683_v15 = vpop.f32.mrb[4].mxu1 }
 0x124   : > { %v1612_v16 = vpop.f32.mrb[5].mxu0  ;;  %v1684_v17 = vpop.f32.mrb[5].mxu1 }
 0x125   : > { %v1613_v18 = vadd.f32 %v1612_v16, %v1611_v14  ;;  %v1614_v19 = vpop.f32.mrb[6].mxu0  ;;  %v2262_v20 = vadd.f32 %v1684_v17, %v1683_v15  ;;  %v1686_v21 = vpop.f32.mrb[6].mxu1  ;;  %v1214_v15 = vmul.f32 %v2292_v55, %v1181_v60  ;;  %v1186_v60 = vld [vmem:[%s2282_s24 + $0x28] sm:$0xff] }
 0x126   : > { %v1615_v22 = vpop.f32.mrb[7].mxu0  ;;  %v1687_v23 = vpop.f32.mrb[7].mxu1 }
 0x127   : > { %v1616_v24 = vadd.f32 %v1615_v22, %v1614_v19  ;;  %v2264_v25 = vadd.f32 %v1687_v23, %v1686_v21  ;;  %v869_v51 = vadd.f32 %v1613_v18, %v2287_v50  ;;  %v1215_v23 = vmul.f32 %v2292_v55, %v1182_v11 }
 0x129   : > { %v872_v61 = vadd.f32 %v1616_v24, %v2287_v50 }
 0x12b   : > { %v1617_v26 = vpop.f32.mrb[8].mxu0  ;;  %v1689_v27 = vpop.f32.mrb[8].mxu1 }
 0x12c   : > { %v1618_v28 = vpop.f32.mrb[9].mxu0  ;;  %v1690_v29 = vpop.f32.mrb[9].mxu1 }
 0x12d   : > { %v2266_v30 = vadd.f32 %v1618_v28, %v1617_v26  ;;  %v1620_v31 = vpop.f32.mrb[10].mxu0  ;;  %v2268_v32 = vadd.f32 %v1690_v29, %v1689_v27  ;;  %v1692_v33 = vpop.f32.mrb[10].mxu1 }
 0x12e   : > { %v1621_v34 = vpop.f32.mrb[11].mxu0  ;;  %v1693_v35 = vpop.f32.mrb[11].mxu1 }
 0x12f   : > { %v2270_v36 = vadd.f32 %v1621_v34, %v1620_v31  ;;  %v2272_v37 = vadd.f32 %v1693_v35, %v1692_v33  ;;  %v1187_v34 = vld [vmem:[%s2282_s24 + $0x30] sm:$0xff]  ;;  %v877_v35 = vadd.f32 %v2266_v30, %v2287_v50 }
 0x133   : > { %v1623_v38 = vpop.f32.mrb[12].mxu0  ;;  %v1695_v39 = vpop.f32.mrb[12].mxu1 }
 0x134   : > { %v1624_v40 = vpop.f32.mrb[13].mxu0  ;;  %v1696_v41 = vpop.f32.mrb[13].mxu1 }
 0x135   : > { %v1625_v42 = vadd.f32 %v1624_v40, %v1623_v38  ;;  %v1626_v43 = vpop.f32.mrb[14].mxu0  ;;  %v2274_v44 = vadd.f32 %v1696_v41, %v1695_v39  ;;  %v1698_v45 = vpop.f32.mrb[14].mxu1 }
 0x136   : > { %v1627_v46 = vpop.f32.mrb[15].mxu0  ;;  %v1699_v47 = vpop.f32.mrb[15].mxu1 }
 0x137   : > { %v1628_v48 = vadd.f32 %v1627_v46, %v1626_v43  ;;  %v2277_v49 = vadd.f32 %v1699_v47, %v1698_v45  ;;  %v885_v27 = vadd.f32 %v1625_v42, %v2287_v50  ;;  %v1185_v42 = vld [vmem:[%s2282_s24 + $0x20] sm:$0xff] }
 0x139   : > { %v888_v43 = vadd.f32 %v1628_v48, %v2287_v50 }
 0x13b   : > { %v1629_v52 = vpop.f32.mrb[16].mxu0  ;;  %v1725_v53 = vpop.f32.mrb[16].mxu1 }
 0x13c   : > { %v1030_v57 = vadd.f32 %v1725_v53, %v869_v51  ;;  %v1630_v58 = vpop.f32.mrb[17].mxu0  ;;  %v1021_v59 = vpop.f32.mrb[17].mxu1  ;;  %v880_v53 = vadd.f32 %v2270_v36, %v2287_v50 }
 0x13d   : > { %v2299_v63 = vadd.f32 %v1630_v58, %v1629_v52  ;;  %v1022_v0 = vadd.f32 %v1021_v59, %v861_v56  ;;  %v1632_v1 = vpop.f32.mrb[18].mxu0  ;;  %v1726_v2 = vpop.f32.mrb[18].mxu1  ;;  %v1188_v52 = vld [vmem:[%s2282_s24 + $0x38] sm:$0xff]  ;;  %v1220_v56 = vmul.f32 %v2292_v55, %v1187_v34 }
 0x13e   : > { %v1150_v5 = vmax.f32 %v1030_v57, 0.0  ;;  %v1033_v7 = vadd.f32 %v1726_v2, %v872_v61  ;;  %v1633_v9 = vpop.f32.mrb[19].mxu0  ;;  %v1024_v10 = vpop.f32.mrb[19].mxu1  ;;  %v1218_v61 = vmul.f32 %v2292_v55, %v1185_v42  ;;  %v1221_v36 = vmul.f32 %v2292_v55, %v1188_v52  ;;  %v1192_v34 = vld [vmem:[%s2282_s24 + $0x58] sm:$0xff]  ;;  %v1190_v42 = vld [vmem:[%s2282_s24 + $0x48] sm:$0xff] }
 0x13f   : > { %v1148_v14 = vmax.f32 %v1022_v0, 0.0  ;;  %v2308_v16 = vadd.f32 %v1633_v9, %v1632_v1  ;;  %v1025_v17 = vadd.f32 %v1024_v10, %v864_v4 }
 0x140   : > { %v1250_v18 = vmul.f32 %v2297_v62, %v1150_v5  ;;  %v1151_v19 = vmax.f32 %v1033_v7, 0.0 }
 0x141   : > { %v1248_v21 = vmul.f32 %v2297_v62, %v1148_v14  ;;  %v1149_v22 = vmax.f32 %v1025_v17, 0.0 }
 0x142   : > { %v1282_v24 = vadd.f32 %v1250_v18, %v1216_v6  ;;  %v1251_v26 = vmul.f32 %v2297_v62, %v1151_v19  ;;  %v1219_v6 = vmul.f32 %v2292_v55, %v1186_v60  ;;  %v1191_v18 = vld [vmem:[%s2282_s24 + $0x50] sm:$0xff]  ;;  %v893_v19 = vadd.f32 %v2299_v63, %v2287_v50 }
 0x143   : > { %v1280_v28 = vadd.f32 %v1248_v21, %v1214_v15  ;;  %v1249_v29 = vmul.f32 %v2297_v62, %v1149_v22  ;;  %v1635_v31 = vpop.f32.mrb[20].mxu0  ;;  %v1729_v33 = vpop.f32.mrb[20].mxu1  ;;  %v896_v63 = vadd.f32 %v2308_v16, %v2287_v50  ;;  %v1225_v16 = vmul.f32 %v2292_v55, %v1192_v34 }
 0x144   : > { %1314 = vst [vmem:[%s2320_s8 + $0x10] sm:$0xff] %v1282_v24  ;;  %v1283_v38 = vadd.f32 %v1251_v26, %v1217_v12  ;;  %v1046_v39 = vadd.f32 %v1729_v33, %v885_v27  ;;  %v1636_v40 = vpop.f32.mrb[21].mxu0  ;;  %v1037_v41 = vpop.f32.mrb[21].mxu1  ;;  %v1189_v24 = vld [vmem:[%s2282_s24 + $0x40] sm:$0xff] }
 0x145   : > { %1312 = vst [vmem:[%s2320_s8] sm:$0xff] %v1280_v28  ;;  %v1281_v45 = vadd.f32 %v1249_v29, %v1215_v23  ;;  %v1637_v46 = vadd.f32 %v1636_v40, %v1635_v31  ;;  %v1038_v47 = vadd.f32 %v1037_v41, %v877_v35  ;;  %v1638_v30 = vpop.f32.mrb[22].mxu0  ;;  %v1730_v51 = vpop.f32.mrb[22].mxu1 }
 0x146   : > { %1315 = vst [vmem:[%s2320_s8 + $0x18] sm:$0xff] %v1283_v38  ;;  %v1154_v54 = vmax.f32 %v1046_v39, 0.0  ;;  %v1049_v57 = vadd.f32 %v1730_v51, %v888_v43  ;;  %v1639_v58 = vpop.f32.mrb[23].mxu0  ;;  %v1040_v59 = vpop.f32.mrb[23].mxu1  ;;  %v1224_v38 = vmul.f32 %v2292_v55, %v1191_v18  ;;  %v1195_v18 = vld [vmem:[%s2282_s24 + $0x70] sm:$0xff] }
 0x147   : > { %1313 = vst [vmem:[%s2320_s8 + $0x8] sm:$0xff] %v1281_v45  ;;  %v1152_v48 = vmax.f32 %v1038_v47, 0.0  ;;  %v1640_v0 = vadd.f32 %v1639_v58, %v1638_v30  ;;  %v1041_v1 = vadd.f32 %v1040_v59, %v880_v53  ;;  %v901_v10 = vadd.f32 %v1637_v46, %v2287_v50 }
 0x148   : > { %v1254_v2 = vmul.f32 %v2297_v62, %v1154_v54  ;;  %v1155_v3 = vmax.f32 %v1049_v57, 0.0  ;;  %v1222_v45 = vmul.f32 %v2292_v55, %v1189_v24  ;;  %v1223_v54 = vmul.f32 %v2292_v55, %v1190_v42 }
 0x149   : > { %v1252_v4 = vmul.f32 %v2297_v62, %v1152_v48  ;;  %v1153_v5 = vmax.f32 %v1041_v1, 0.0  ;;  %v904_v26 = vadd.f32 %v1640_v0, %v2287_v50  ;;  %v1193_v0 = vld [vmem:[%s2282_s24 + $0x60] sm:$0xff] }
 0x14a   : > { %v1286_v7 = vadd.f32 %v1254_v2, %v1220_v56  ;;  %v1255_v9 = vmul.f32 %v2297_v62, %v1155_v3 }
 0x14b   : > { %v1284_v11 = vadd.f32 %v1252_v4, %v1218_v61  ;;  %v1253_v14 = vmul.f32 %v2297_v62, %v1153_v5  ;;  %v1641_v15 = vpop.f32.mrb[24].mxu0  ;;  %v1733_v17 = vpop.f32.mrb[24].mxu1 }
 0x14c   : > { %1318 = vst [vmem:[%s2320_s8 + $0x30] sm:$0xff] %v1286_v7  ;;  %v1287_v12 = vadd.f32 %v1255_v9, %v1221_v36  ;;  %v1062_v21 = vadd.f32 %v1733_v17, %v901_v10  ;;  %v1642_v22 = vpop.f32.mrb[25].mxu0  ;;  %v1053_v23 = vpop.f32.mrb[25].mxu1  ;;  %v1194_v10 = vld [vmem:[%s2282_s24 + $0x68] sm:$0xff] }
 0x14d   : > { %1316 = vst [vmem:[%s2320_s8 + $0x20] sm:$0xff] %v1284_v11  ;;  %v1285_v27 = vadd.f32 %v1253_v14, %v1219_v6  ;;  %v1643_v28 = vadd.f32 %v1642_v22, %v1641_v15  ;;  %v1054_v29 = vadd.f32 %v1053_v23, %v893_v19  ;;  %v1644_v31 = vpop.f32.mrb[26].mxu0  ;;  %v1734_v33 = vpop.f32.mrb[26].mxu1  ;;  %v1226_v11 = vmul.f32 %v2292_v55, %v1193_v0 }
 0x14e   : > { %1319 = vst [vmem:[%s2320_s8 + $0x38] sm:$0xff] %v1287_v12  ;;  %v1158_v35 = vmax.f32 %v1062_v21, 0.0  ;;  %v1065_v39 = vadd.f32 %v1734_v33, %v904_v26  ;;  %v1645_v40 = vpop.f32.mrb[27].mxu0  ;;  %v1056_v41 = vpop.f32.mrb[27].mxu1  ;;  %v1227_v22 = vmul.f32 %v2292_v55, %v1194_v10  ;;  %v1199_v10 = vld [vmem:[%s2282_s24 + $0x90] sm:$0xff] }
 0x14f   : > { %1317 = vst [vmem:[%s2320_s8 + $0x28] sm:$0xff] %v1285_v27  ;;  %v1156_v43 = vmax.f32 %v1054_v29, 0.0  ;;  %v1646_v46 = vadd.f32 %v1645_v40, %v1644_v31  ;;  %v1057_v47 = vadd.f32 %v1056_v41, %v896_v63  ;;  %v909_v61 = vadd.f32 %v1643_v28, %v2287_v50  ;;  %v1196_v27 = vld [vmem:[%s2282_s24 + $0x78] sm:$0xff] }
 0x150   : > { %v1258_v30 = vmul.f32 %v2297_v62, %v1158_v35  ;;  %v1159_v51 = vmax.f32 %v1065_v39, 0.0  ;;  %v1228_v29 = vmul.f32 %v2292_v55, %v1195_v18  ;;  %v1229_v39 = vmul.f32 %v2292_v55, %v1196_v27  ;;  %v1208_v27 = vld [vmem:[%s2282_s24 + $0xd8] sm:$0xff] }
 0x151   : > { %v1256_v52 = vmul.f32 %v2297_v62, %v1156_v43  ;;  %v1157_v53 = vmax.f32 %v1057_v47, 0.0  ;;  %v912_v9 = vadd.f32 %v1646_v46, %v2287_v50 }
 0x152   : > { %v1290_v56 = vadd.f32 %v1258_v30, %v1224_v38  ;;  %v1259_v57 = vmul.f32 %v2297_v62, %v1159_v51 }
 0x153   : > { %v1288_v58 = vadd.f32 %v1256_v52, %v1222_v45  ;;  %v1257_v59 = vmul.f32 %v2297_v62, %v1157_v53  ;;  %v1647_v60 = vpop.f32.mrb[28].mxu0  ;;  %v1737_v48 = vpop.f32.mrb[28].mxu1 }
 0x154   : > { %1322 = vst [vmem:[%s2320_s8 + $0x50] sm:$0xff] %v1290_v56  ;;  %v1291_v1 = vadd.f32 %v1259_v57, %v1225_v16  ;;  %v1648_v2 = vpop.f32.mrb[29].mxu0  ;;  %v1069_v3 = vpop.f32.mrb[29].mxu1  ;;  %v1197_v57 = vld [vmem:[%s2282_s24 + $0x80] sm:$0xff] }
 0x155   : > { %1320 = vst [vmem:[%s2320_s8 + $0x40] sm:$0xff] %v1288_v58  ;;  %v1289_v36 = vadd.f32 %v1257_v59, %v1223_v54  ;;  %v1649_v4 = vadd.f32 %v1648_v2, %v1647_v60  ;;  %v1070_v5 = vadd.f32 %v1069_v3, %v909_v61  ;;  %v1650_v6 = vpop.f32.mrb[30].mxu0  ;;  %v1738_v7 = vpop.f32.mrb[30].mxu1  ;;  %v1230_v0 = vmul.f32 %v2292_v55, %v1197_v57 }
 0x156   : > { %1323 = vst [vmem:[%s2320_s8 + $0x58] sm:$0xff] %v1291_v1  ;;  %v1651_v14 = vpop.f32.mrb[31].mxu0  ;;  %v1072_v15 = vpop.f32.mrb[31].mxu1 }
 0x157   : > { %1321 = vst [vmem:[%s2320_s8 + $0x48] sm:$0xff] %v1289_v36  ;;  %v917_v17 = vadd.f32 %v1649_v4, %v2287_v50  ;;  %v1160_v19 = vmax.f32 %v1070_v5, 0.0  ;;  %v1652_v12 = vadd.f32 %v1651_v14, %v1650_v6  ;;  %v1073_v21 = vadd.f32 %v1072_v15, %v912_v9  ;;  %v1200_v14 = vld [vmem:[%s2282_s24 + $0x98] sm:$0xff] }
 0x159   : > { %v1078_v23 = vadd.f32 %v1737_v48, %v917_v17  ;;  %v1260_v24 = vmul.f32 %v2297_v62, %v1160_v19  ;;  %v920_v26 = vadd.f32 %v1652_v12, %v2287_v50  ;;  %v1161_v28 = vmax.f32 %v1073_v21, 0.0  ;;  %v1198_v48 = vld [vmem:[%s2282_s24 + $0x88] sm:$0xff]  ;;  %v1207_v17 = vld [vmem:[%s2282_s24 + $0xd0] sm:$0xff]  ;;  %v1205_v12 = vld [vmem:[%s2282_s24 + $0xc0] sm:$0xff] }
 0x15b   : > { %v1162_v31 = vmax.f32 %v1078_v23, 0.0  ;;  %v1292_v33 = vadd.f32 %v1260_v24, %v1226_v11  ;;  %v1081_v34 = vadd.f32 %v1738_v7, %v920_v26  ;;  %v1261_v63 = vmul.f32 %v2297_v62, %v1161_v28  ;;  %v1653_v35 = vpop.f32.mrb[32].mxu0  ;;  %v1741_v38 = vpop.f32.mrb[32].mxu1  ;;  %v1201_v26 = vld [vmem:[%s2282_s24 + $0xa0] sm:$0xff]  ;;  %v1206_v28 = vld [vmem:[%s2282_s24 + $0xc8] sm:$0xff] }
 0x15c   : > { %v1654_v40 = vpop.f32.mrb[33].mxu0  ;;  %v1085_v41 = vpop.f32.mrb[33].mxu1  ;;  %v1231_v7 = vmul.f32 %v2292_v55, %v1198_v48 }
 0x15d   : > { %v1262_v42 = vmul.f32 %v2297_v62, %v1162_v31  ;;  %1324 = vst [vmem:[%s2320_s8 + $0x60] sm:$0xff] %v1292_v33  ;;  %v1163_v43 = vmax.f32 %v1081_v34, 0.0  ;;  %v1293_v45 = vadd.f32 %v1261_v63, %v1227_v22  ;;  %v1655_v46 = vadd.f32 %v1654_v40, %v1653_v35  ;;  %v1656_v47 = vpop.f32.mrb[34].mxu0  ;;  %v1742_v30 = vpop.f32.mrb[34].mxu1  ;;  %v1202_v34 = vld [vmem:[%s2282_s24 + $0xa8] sm:$0xff] }
 0x15e   : > { %v1657_v51 = vpop.f32.mrb[35].mxu0  ;;  %v1088_v16 = vpop.f32.mrb[35].mxu1  ;;  %v1233_v31 = vmul.f32 %v2292_v55, %v1200_v14  ;;  %v1240_v33 = vmul.f32 %v2292_v55, %v1207_v17  ;;  %v1238_v40 = vmul.f32 %v2292_v55, %v1205_v12 }
 0x15f   : > { %v1294_v52 = vadd.f32 %v1262_v42, %v1228_v29  ;;  %v1263_v53 = vmul.f32 %v2297_v62, %v1163_v43  ;;  %1325 = vst [vmem:[%s2320_s8 + $0x68] sm:$0xff] %v1293_v45  ;;  %v925_v54 = vadd.f32 %v1655_v46, %v2287_v50  ;;  %v1658_v56 = vadd.f32 %v1657_v51, %v1656_v47  ;;  %v1209_v42 = vld [vmem:[%s2282_s24 + $0xe0] sm:$0xff] }
 0x160   : > { %v1232_v29 = vmul.f32 %v2292_v55, %v1199_v10  ;;  %v965_v43 = vadd.f32 %v2262_v20, %v2287_v50  ;;  %v2422_v45 = vmul.f32 %v2292_v55, %v1201_v26  ;;  %v1241_v46 = vmul.f32 %v2292_v55, %v1208_v27  ;;  %v1212_v20 = vld [vmem:[%s2282_s24 + $0xf8] sm:$0xff] }
 0x161   : > { %1326 = vst [vmem:[%s2320_s8 + $0x70] sm:$0xff] %v1294_v52  ;;  %v1295_v58 = vadd.f32 %v1263_v53, %v1229_v39  ;;  %v1086_v59 = vadd.f32 %v1085_v41, %v925_v54  ;;  %v928_v60 = vadd.f32 %v1658_v56, %v2287_v50  ;;  %v1211_v41 = vld [vmem:[%s2282_s24 + $0xf0] sm:$0xff]  ;;  %v2426_v47 = vmul.f32 %v2292_v55, %v1206_v28 }
 0x162   : > { %v957_v53 = vadd.f32 %v2258_v8, %v2287_v50  ;;  %v2432_v54 = vmul.f32 %v2292_v55, %v1202_v34  ;;  %v981_v26 = vadd.f32 %v2274_v44, %v2287_v50 }
 0x163   : > { %1327 = vst [vmem:[%s2320_s8 + $0x78] sm:$0xff] %v1295_v58  ;;  %v1164_v61 = vmax.f32 %v1086_v59, 0.0  ;;  %v1089_v1 = vadd.f32 %v1088_v16, %v928_v60  ;;  %v1659_v2 = vpop.f32.mrb[36].mxu0  ;;  %v2391_v3 = vpop.f32.mrb[36].mxu1  ;;  %v968_v59 = vadd.f32 %v2264_v25, %v2287_v50  ;;  %v2438_v60 = vmul.f32 %v2292_v55, %v1211_v41 }
 0x164   : > { %v1660_v36 = vpop.f32.mrb[37].mxu0  ;;  %v2393_v4 = vpop.f32.mrb[37].mxu1  ;;  %v960_v25 = vadd.f32 %v2260_v13, %v2287_v50 }
 0x165   : > { %v1264_v5 = vmul.f32 %v2297_v62, %v1164_v61  ;;  %v1165_v6 = vmax.f32 %v1089_v1, 0.0  ;;  %v1661_v9 = vadd.f32 %v1660_v36, %v1659_v2  ;;  %v1662_v11 = vpop.f32.mrb[38].mxu0  ;;  %v2399_v15 = vpop.f32.mrb[38].mxu1 }
 0x166   : > { %v1663_v18 = vpop.f32.mrb[39].mxu0  ;;  %v2402_v19 = vpop.f32.mrb[39].mxu1 }
 0x167   : > { %v1296_v21 = vadd.f32 %v1264_v5, %v1230_v0  ;;  %v1265_v22 = vmul.f32 %v2297_v62, %v1165_v6  ;;  %v933_v23 = vadd.f32 %v1661_v9, %v2287_v50  ;;  %v1664_v24 = vadd.f32 %v1663_v18, %v1662_v11 }
 0x168   : > { %v2447_v9 = vmul.f32 %v2292_v55, %v1212_v20 }
 0x169   : > { %1328 = vst [vmem:[%s2320_s8 + $0x80] sm:$0xff] %v1296_v21  ;;  %v1297_v63 = vadd.f32 %v1265_v22, %v1231_v7  ;;  %v1094_v35 = vadd.f32 %v1741_v38, %v933_v23  ;;  %v936_v39 = vadd.f32 %v1664_v24, %v2287_v50 }
 0x16b   : > { %1329 = vst [vmem:[%s2320_s8 + $0x88] sm:$0xff] %v1297_v63  ;;  %v1166_v38 = vmax.f32 %v1094_v35, 0.0  ;;  %v1097_v51 = vadd.f32 %v1742_v30, %v936_v39  ;;  %v1665_v16 = vpop.f32.mrb[40].mxu0  ;;  %v1749_v52 = vpop.f32.mrb[40].mxu1  ;;  %v2441_v30 = vmul.f32 %v2292_v55, %v1209_v42 }
 0x16c   : > { %v1126_v56 = vadd.f32 %v1749_v52, %v965_v43  ;;  %v1666_v57 = vpop.f32.mrb[41].mxu0  ;;  %v1117_v58 = vpop.f32.mrb[41].mxu1 }
 0x16d   : > { %v1266_v48 = vmul.f32 %v2297_v62, %v1166_v38  ;;  %v1167_v61 = vmax.f32 %v1097_v51, 0.0  ;;  %v1667_v8 = vadd.f32 %v1666_v57, %v1665_v16  ;;  %v1118_v0 = vadd.f32 %v1117_v58, %v957_v53  ;;  %v1668_v1 = vpop.f32.mrb[42].mxu0  ;;  %v1750_v2 = vpop.f32.mrb[42].mxu1 }
 0x16e   : > { %v1174_v36 = vmax.f32 %v1126_v56, 0.0  ;;  %v1129_v5 = vadd.f32 %v1750_v2, %v968_v59  ;;  %v1669_v6 = vpop.f32.mrb[43].mxu0  ;;  %v1120_v7 = vpop.f32.mrb[43].mxu1  ;;  %v1210_v59 = vld [vmem:[%s2282_s24 + $0xe8] sm:$0xff]  ;;  %v1203_v2 = vld [vmem:[%s2282_s24 + $0xb0] sm:$0xff] }
 0x16f   : > { %v1298_v10 = vadd.f32 %v1266_v48, %v1232_v29  ;;  %v1267_v11 = vmul.f32 %v2297_v62, %v1167_v61  ;;  %v941_v14 = vadd.f32 %v1667_v8, %v2287_v50  ;;  %v1172_v17 = vmax.f32 %v1118_v0, 0.0 }
 0x170   : > { %v1274_v18 = vmul.f32 %v2297_v62, %v1174_v36  ;;  %v1175_v12 = vmax.f32 %v1129_v5, 0.0  ;;  %v1670_v21 = vadd.f32 %v1669_v6, %v1668_v1  ;;  %v1121_v22 = vadd.f32 %v1120_v7, %v960_v25 }
 0x171   : > { %1330 = vst [vmem:[%s2320_s8 + $0x90] sm:$0xff] %v1298_v10  ;;  %v1299_v23 = vadd.f32 %v1267_v11, %v1233_v31  ;;  %v1102_v13 = vadd.f32 %v2393_v4, %v941_v14  ;;  %v1272_v24 = vmul.f32 %v2297_v62, %v1172_v17  ;;  %v973_v4 = vadd.f32 %v2268_v32, %v2287_v50  ;;  %v1204_v14 = vld [vmem:[%s2282_s24 + $0xb8] sm:$0xff] }
 0x172   : > { %v1306_v27 = vadd.f32 %v1274_v18, %v1240_v33  ;;  %v1275_v28 = vmul.f32 %v2297_v62, %v1175_v12  ;;  %v944_v29 = vadd.f32 %v1670_v21, %v2287_v50  ;;  %v1173_v34 = vmax.f32 %v1121_v22, 0.0 }
 0x173   : > { %1331 = vst [vmem:[%s2320_s8 + $0x98] sm:$0xff] %v1299_v23  ;;  %v1168_v63 = vmax.f32 %v1102_v13, 0.0  ;;  %v1304_v35 = vadd.f32 %v1272_v24, %v1238_v40  ;;  %v1671_v39 = vpop.f32.mrb[44].mxu0  ;;  %v1753_v41 = vpop.f32.mrb[44].mxu1  ;;  %v984_v31 = vadd.f32 %v2277_v49, %v2287_v50  ;;  %v976_v49 = vadd.f32 %v2272_v37, %v2287_v50 }
 0x174   : > { %1338 = vst [vmem:[%s2320_s8 + $0xd0] sm:$0xff] %v1306_v27  ;;  %v1307_v44 = vadd.f32 %v1275_v28, %v1241_v46  ;;  %v1105_v33 = vadd.f32 %v2402_v19, %v944_v29  ;;  %v1273_v42 = vmul.f32 %v2297_v62, %v1173_v34  ;;  %v1142_v43 = vadd.f32 %v1753_v41, %v981_v26  ;;  %v1672_v38 = vpop.f32.mrb[45].mxu0  ;;  %v1133_v51 = vpop.f32.mrb[45].mxu1 }
 0x175   : > { %v1268_v40 = vmul.f32 %v2297_v62, %v1168_v63  ;;  %1336 = vst [vmem:[%s2320_s8 + $0xc0] sm:$0xff] %v1304_v35  ;;  %v1673_v16 = vadd.f32 %v1672_v38, %v1671_v39  ;;  %v1134_v52 = vadd.f32 %v1133_v51, %v973_v4  ;;  %v1674_v32 = vpop.f32.mrb[46].mxu0  ;;  %v1754_v53 = vpop.f32.mrb[46].mxu1  ;;  %v1243_v25 = vmul.f32 %v2292_v55, %v1210_v59 }
 0x176   : > { %1339 = vst [vmem:[%s2320_s8 + $0xd8] sm:$0xff] %v1307_v44  ;;  %v1169_v19 = vmax.f32 %v1105_v33, 0.0  ;;  %v1305_v46 = vadd.f32 %v1273_v42, %v2426_v47  ;;  %v1178_v20 = vmax.f32 %v1142_v43, 0.0  ;;  %v1145_v56 = vadd.f32 %v1754_v53, %v984_v31  ;;  %v1675_v57 = vpop.f32.mrb[47].mxu0  ;;  %v1136_v58 = vpop.f32.mrb[47].mxu1 }
 0x177   : > { %v1300_v48 = vadd.f32 %v1268_v40, %v2422_v45  ;;  %v949_v61 = vadd.f32 %v1673_v16, %v2287_v50  ;;  %v1176_v8 = vmax.f32 %v1134_v52, 0.0  ;;  %v1676_v0 = vadd.f32 %v1675_v57, %v1674_v32 }
 0x178   : > { %v1269_v37 = vmul.f32 %v2297_v62, %v1169_v19  ;;  %1337 = vst [vmem:[%s2320_s8 + $0xc8] sm:$0xff] %v1305_v46  ;;  %v1278_v1 = vmul.f32 %v2297_v62, %v1178_v20  ;;  %v1179_v47 = vmax.f32 %v1145_v56, 0.0  ;;  %v1137_v36 = vadd.f32 %v1136_v58, %v976_v49 }
 0x179   : > { %1332 = vst [vmem:[%s2320_s8 + $0xa0] sm:$0xff] %v1300_v48  ;;  %v1110_v5 = vadd.f32 %v2391_v3, %v949_v61  ;;  %v1276_v45 = vmul.f32 %v2297_v62, %v1176_v8  ;;  %v952_v6 = vadd.f32 %v1676_v0, %v2287_v50  ;;  %v1236_v3 = vmul.f32 %v2292_v55, %v1203_v2 }
 0x17a   : > { %v1301_v7 = vadd.f32 %v1269_v37, %v2432_v54  ;;  %v1310_v10 = vadd.f32 %v1278_v1, %v2438_v60  ;;  %v1279_v11 = vmul.f32 %v2297_v62, %v1179_v47  ;;  %v1177_v17 = vmax.f32 %v1137_v36, 0.0 }
 0x17b   : > { %v1170_v18 = vmax.f32 %v1110_v5, 0.0  ;;  %v1308_v12 = vadd.f32 %v1276_v45, %v2441_v30  ;;  %v1113_v50 = vadd.f32 %v2399_v15, %v952_v6  ;;  %v1237_v23 = vmul.f32 %v2292_v55, %v1204_v14 }
 0x17c   : > { %1333 = vst [vmem:[%s2320_s8 + $0xa8] sm:$0xff] %v1301_v7  ;;  %1342 = vst [vmem:[%s2320_s8 + $0xf0] sm:$0xff] %v1310_v10  ;;  %v1311_v54 = vadd.f32 %v1279_v11, %v2447_v9  ;;  %v1277_v60 = vmul.f32 %v2297_v62, %v1177_v17 }
 0x17d   : > { %v1270_v21 = vmul.f32 %v2297_v62, %v1170_v18  ;;  %1340 = vst [vmem:[%s2320_s8 + $0xe0] sm:$0xff] %v1308_v12  ;;  %v1171_v22 = vmax.f32 %v1113_v50, 0.0 }
 0x17e   : > { %1343 = vst [vmem:[%s2320_s8 + $0xf8] sm:$0xff] %v1311_v54  ;;  %v1309_v15 = vadd.f32 %v1277_v60, %v1243_v25 }
 0x17f   : > { %v1302_v30 = vadd.f32 %v1270_v21, %v1236_v3  ;;  %v1271_v13 = vmul.f32 %v2297_v62, %v1171_v22 }
 0x180   : > { %1341 = vst [vmem:[%s2320_s8 + $0xe8] sm:$0xff] %v1309_v15 }
 0x181   : > { %1334 = vst [vmem:[%s2320_s8 + $0xb0] sm:$0xff] %v1302_v30  ;;  %v1303_v55 = vadd.f32 %v1271_v13, %v1237_v23 }
 0x183   : > { %1335 = vst [vmem:[%s2320_s8 + $0xb8] sm:$0xff] %v1303_v55 }
 0x184   : > { %1950 = shalt.err (!%p1947_p3)
}
 0x185   : > { %s1951_s24 = scalar_lea.hbm %s2507_s7, 4096  ;;  %s1955_s16 = scalar_lea.hbm %s2566_s5, 8192 }
 0x186   : > { %p1952_p5 = scmp.ne.s32.totalorder %s2507_s7, %s1951_s24  ;;  %p1956_p9 = scmp.lt.u32.totalorder %s2507_s7, %s2566_s5 }
 0x187   : > { %p1957_p10 = scmp.lt.u32.totalorder %s1955_s16, %s1951_s24  ;;  %p1959_p12 = scmp.lt.u32.totalorder %s1951_s24, %s2507_s7 }
 0x188   : > { %p1953_p6 = pnand %p1952_p5, %p2095_p4 }
 0x189   : > { %p1958_p11 = por %p1957_p10, %p1956_p9 }
 0x18a   : > { %p1954_p7 = pneg %p1953_p6 }
 0x18b   : > { %p1960_p13 = por %p1959_p12, %p1958_p11 }
 0x18d   : > { %p1961_p0 = pnand %p1960_p13, %p1954_p7 }
 0x18f   : > { %1964 = shalt.err (!%p1961_p0)
}
 0x190   : > { %s2023_s9 = smov 128   ;;  %s2024_s11 = smov 8  }
 0x191   : > { %1776 = dma.vmem_to_hbm [thread:$0]  (%p2095_p4), %s2509_s10, 4096, %s2507_s7, %s2515_s21, %s2023_s9, %s2023_s9, %s2024_s11  }
 0x192 PF: > { %p1788_p1 = scmp.ge.s32.totalorder %s2019_s23, 2  ;;  %s1374_s12 = sand.u32 1, %s1999_s18  }
 0x193   : > { %s1375_s13 = scalar_lea.sflag [#allocation3], %s1374_s12 }
 0x194   : > { %p1783_p2 = pnand %p1788_p1, %p2102_p8 }
 0x196   : > { %1994 = dma.done.wait (!%p1783_p2), %s1375_s13, 4096  }
 0x197   : > { %1996 = vsyncadd (!%p1783_p2), %s1375_s13, 4294963200  ;;  %s19_s23 = sadd.s32 1, %s2019_s23   ;;  %s2571_s18 = smov %s2003_s19 }
 0x198   : > { %p16_p3 = scmp.ge.s32.totalorder %s19_s23, 4   ;;  %s2572_s19 = smov %s2007_s20 }
 0x199   : > { %s2573_s20 = smov %s2108_s6  ;;  %s2574_s21 = smov %s2015_s22 }
 0x19a   : > { %s2575_s22 = smov %s2577_s26  ;;  %18 = sbr.rel (!%p16_p3) target bundleno = 5 (0x5), region = 89 }
 0x1a1   :  { %1380 = vsyncpa [#allocation3], 1 }
 0x1a2   :  { %1382 = vsyncpa [#allocation3 + $0x1], 1 }
 0x1a3   :  { %1383 = vsyncpa [#allocation4], 1 }
 0x1a4   :  { %1385 = vsyncpa [#allocation4 + $0x1], 1 }

</bundles_post_ra>
